<compile_context>
chip_gen: v7x
topology: tpu7x:2x2x1
jax: 0.10.0
libtpu: 0.0.40
codegen_flags: <defaults>
</compile_context>

<pallas_src>
import jax
import jax.numpy as jnp
import numpy as np
from jax import lax
from jax.experimental import pallas as pl
from jax.experimental.pallas import tpu as pltpu

BN_EPS = 1e-5


# ----------------------------- fused kernel -----------------------------
def lf_dnn_kernel(*refs):
    (audio_x_ref, video_x_ref, text_x_ref,
     aw1, ab1, aw2, ab2, aw3, ab3,
     vw1, vb1, vw2, vb2, vw3, vb3,
     wih_i, wih_f, wih_g, wih_o,
     whh_i, whh_f, whh_g, whh_o,
     bi_r, bf_r, bg_r, bo_r,
     w_lin, b_lin,
     pw1, pb1, pw2, pb2, pw3, pb3,
     a_out, v_out, t_out, f_out, m_out) = refs

    def dense(x, w_ref, b_ref):
        return jnp.dot(x, w_ref[...], preferred_element_type=jnp.float32) + b_ref[...]

    def dense_relu(x, w_ref, b_ref):
        return jnp.maximum(dense(x, w_ref, b_ref), 0.0)

    # ---- audio SubNet (BatchNorm folded into first Linear; dropout = eval identity) ----
    a = audio_x_ref[...]
    a = dense_relu(a, aw1, ab1)
    a = dense_relu(a, aw2, ab2)
    a = dense_relu(a, aw3, ab3)
    a_out[...] = a

    # ---- video SubNet ----
    v = video_x_ref[...]
    v = dense_relu(v, vw1, vb1)
    v = dense_relu(v, vw2, vb2)
    v = dense_relu(v, vw3, vb3)
    v_out[...] = v

    # ---- TextSubNet: single-layer LSTM -> final hidden -> Linear ----
    B = audio_x_ref.shape[0]
    x = text_x_ref[...]                       # (T*B, Din), time-major flat
    T = x.shape[0] // B
    H = whh_i.shape[0]

    # Hoisted input projections: one larger matmul per gate instead of T tiny ones,
    # with the (b_ih + b_hh) bias folded in.  PyTorch gate order: i, f, g, o.
    xg_i = dense(x, wih_i, bi_r)              # (T*B, H)
    xg_f = dense(x, wih_f, bf_r)
    xg_g = dense(x, wih_g, bg_r)
    xg_o = dense(x, wih_o, bo_r)

    h = jnp.zeros((B, H), jnp.float32)
    c = jnp.zeros((B, H), jnp.float32)
    for t in range(T):                        # static unroll (T small & static)
        r0 = t * B                            # step-t rows: contiguous, sublane-aligned
        i_g = jax.nn.sigmoid(xg_i[r0:r0 + B, :] +
                             jnp.dot(h, whh_i[...], preferred_element_type=jnp.float32))
        f_g = jax.nn.sigmoid(xg_f[r0:r0 + B, :] +
                             jnp.dot(h, whh_f[...], preferred_element_type=jnp.float32))
        g_g = jnp.tanh(xg_g[r0:r0 + B, :] +
                       jnp.dot(h, whh_g[...], preferred_element_type=jnp.float32))
        o_g = jax.nn.sigmoid(xg_o[r0:r0 + B, :] +
                             jnp.dot(h, whh_o[...], preferred_element_type=jnp.float32))
        c = f_g * c + i_g * g_g
        h = o_g * jnp.tanh(c)

    th = dense(h, w_lin, b_lin)               # dropout on final hidden: eval identity
    t_out[...] = th

    # ---- late fusion + post-fusion MLP (stays in VMEM, no HBM round trip / XLA concat) ----
    fused = jnp.concatenate([a, v, th], axis=-1)
    f_out[...] = fused

    p = dense_relu(fused, pw1, pb1)           # post-fusion dropout: eval identity
    p = dense_relu(p, pw2, pb2)
    m_out[...] = dense(p, pw3, pb3)


def _vmem_spec():
    return pl.BlockSpec(memory_space=pltpu.MemorySpace.VMEM)


def lf_dnn_forward(text_x, audio_x, video_x, kp):
    """Fused LF_DNN forward.  `kp` must come from prepare_params()."""
    text_x = text_x.astype(jnp.float32)
    audio_x = audio_x.astype(jnp.float32)
    video_x = video_x.astype(jnp.float32)

    B, T, Din = text_x.shape
    # Time-major flat layout so each LSTM step reads a contiguous, sublane-aligned row block.
    text_flat = jnp.transpose(text_x, (1, 0, 2)).reshape(T * B, Din)

    ap, vp, tp, pp = kp["audio"], kp["video"], kp["text"], kp["post"]
    Ha = ap["w1"].shape[1]
    Hv = vp["w1"].shape[1]
    To = tp["w_lin"].shape[1]
    Fdim = Ha + Hv + To

    args = [
        audio_x, video_x, text_flat,
        ap["w1"], ap["b1"], ap["w2"], ap["b2"], ap["w3"], ap["b3"],
        vp["w1"], vp["b1"], vp["w2"], vp["b2"], vp["w3"], vp["b3"],
        tp["w_ih_i"], tp["w_ih_f"], tp["w_ih_g"], tp["w_ih_o"],
        tp["w_hh_i"], tp["w_hh_f"], tp["w_hh_g"], tp["w_hh_o"],
        tp["b_i"], tp["b_f"], tp["b_g"], tp["b_o"],
        tp["w_lin"], tp["b_lin"],
        pp["w1"], pp["b1"], pp["w2"], pp["b2"], pp["w3"], pp["b3"],
    ]

    out_shape = (
        jax.ShapeDtypeStruct((B, Ha), jnp.float32),
        jax.ShapeDtypeStruct((B, Hv), jnp.float32),
        jax.ShapeDtypeStruct((B, To), jnp.float32),
        jax.ShapeDtypeStruct((B, Fdim), jnp.float32),
        jax.ShapeDtypeStruct((B, 1), jnp.float32),
    )
    a_h, v_h, t_h, f_h, m = pl.pallas_call(
        lf_dnn_kernel,
        out_shape=out_shape,
        in_specs=[_vmem_spec() for _ in args],
        out_specs=tuple(_vmem_spec() for _ in out_shape),
    )(*args)
    return {"Feature_t": t_h, "Feature_a": a_h, "Feature_v": v_h,
            "Feature_f": f_h, "M": m}


# -------------------- one-time host-side parameter preparation --------------------
def _fold_batchnorm(sp):
    """Fold eval-mode BatchNorm1d into the first Linear (mathematically exact in eval mode)."""
    scale = sp["gamma"] * lax.rsqrt(sp["var"] + BN_EPS)        # (1, in)
    shift = sp["beta"] - sp["mean"] * scale                    # (1, in)
    w1 = sp["w1"] * scale.reshape(-1, 1)                       # row-scale W1
    b1 = sp["b1"] + shift @ sp["w1"]                           # (1, hidden)
    return {"w1": w1, "b1": b1, "w2": sp["w2"], "b2": sp["b2"],
            "w3": sp["w3"], "b3": sp["b3"]}


def _split_lstm_gates(tp):
    """Split combined (.., 4H) LSTM weights into per-gate tensors (lane-aligned in-kernel math)."""
    H = tp["w_hh"].shape[0]
    out = {"w_lin": tp["w_lin"], "b_lin": tp["b_lin"]}
    for k, name in enumerate(("i", "f", "g", "o")):            # PyTorch gate order
        sl = slice(k * H, (k + 1) * H)
        out[f"w_ih_{name}"] = tp["w_ih"][:, sl]
        out[f"w_hh_{name}"] = tp["w_hh"][:, sl]
        out[f"b_{name}"] = tp["b"][:, sl]
    return out


def prepare_params(params):
    """One-time host-side prep: BN folding + per-gate LSTM weight split."""
    return {
        "audio": _fold_batchnorm(params["audio"]),
        "video": _fold_batchnorm(params["video"]),
        "text": _split_lstm_gates(params["text"]),
        "post": params["post"],
    }


# -------------------- deterministic parameter init (PyTorch-style layout) --------------------
def _uniform(key, shape, bound):
    return jax.random.uniform(key, shape, jnp.float32, -bound, bound)


def init_subnet_params(key, in_size, hidden):
    ks = jax.random.split(key, 10)
    b = 1.0 / float(np.sqrt(in_size))
    bh = 1.0 / float(np.sqrt(hidden))
    return {
        "gamma": _uniform(ks[0], (1, in_size), 1.0) + 1.0,
        "beta": _uniform(ks[1], (1, in_size), 0.1),
        "mean": _uniform(ks[2], (1, in_size), 0.1),
        "var": jax.random.uniform(ks[3], (1, in_size), jnp.float32, 0.5, 1.5),
        "w1": _uniform(ks[4], (in_size, hidden), b),
        "b1": _uniform(ks[5], (1, hidden), b),
        "w2": _uniform(ks[6], (hidden, hidden), bh),
        "b2": _uniform(ks[7], (1, hidden), bh),
        "w3": _uniform(ks[8], (hidden, hidden), bh),
        "b3": _uniform(ks[9], (1, hidden), bh),
    }


def init_text_params(key, in_size, hidden, out_size):
    ks = jax.random.split(key, 6)
    bh = 1.0 / float(np.sqrt(hidden))
    return {
        "w_ih": _uniform(ks[0], (in_size, 4 * hidden), bh),   # W_ih^T, gate order i,f,g,o
        "w_hh": _uniform(ks[1], (hidden, 4 * hidden), bh),    # W_hh^T
        "b": _uniform(ks[2], (1, 4 * hidden), bh) + _uniform(ks[3], (1, 4 * hidden), bh),
        "w_lin": _uniform(ks[4], (hidden, out_size), bh),
        "b_lin": _uniform(ks[5], (1, out_size), bh),
    }


def init_post_params(key, fusion_dim, post_dim):
    ks = jax.random.split(key, 6)
    bf = 1.0 / float(np.sqrt(fusion_dim))
    bp = 1.0 / float(np.sqrt(post_dim))
    return {
        "w1": _uniform(ks[0], (fusion_dim, post_dim), bf),
        "b1": _uniform(ks[1], (1, post_dim), bf),
        "w2": _uniform(ks[2], (post_dim, post_dim), bp),
        "b2": _uniform(ks[3], (1, post_dim), bp),
        "w3": _uniform(ks[4], (post_dim, 1), bp),
        "b3": _uniform(ks[5], (1, 1), bp),
    }


# -------------------- pure-JAX reference (original, unfolded params) --------------------
def lf_dnn_reference(text_x, audio_x, video_x, params):
    mm = lambda a, b: jnp.dot(a, b, precision=lax.Precision.HIGHEST)

    def subnet(x, p):
        xn = (x - p["mean"]) * lax.rsqrt(p["var"] + BN_EPS) * p["gamma"] + p["beta"]
        y = jax.nn.relu(mm(xn, p["w1"]) + p["b1"])
        y = jax.nn.relu(mm(y, p["w2"]) + p["b2"])
        return jax.nn.relu(mm(y, p["w3"]) + p["b3"])

    def text_subnet(x, p):
        B, T, _ = x.shape
        H = p["w_hh"].shape[0]
        h = jnp.zeros((B, H), jnp.float32)
        c = jnp.zeros((B, H), jnp.float32)
        for t in range(T):
            gates = mm(x[:, t, :], p["w_ih"]) + mm(h, p["w_hh"]) + p["b"]
            i = jax.nn.sigmoid(gates[:, 0 * H:1 * H])
            f = jax.nn.sigmoid(gates[:, 1 * H:2 * H])
            g = jnp.tanh(gates[:, 2 * H:3 * H])
            o = jax.nn.sigmoid(gates[:, 3 * H:4 * H])
            c = f * c + i * g
            h = o * jnp.tanh(c)
        return mm(h, p["w_lin"]) + p["b_lin"]

    a_h = subnet(audio_x, params["audio"])
    v_h = subnet(video_x, params["video"])
    t_h = text_subnet(text_x, params["text"])
    f_h = jnp.concatenate([a_h, v_h, t_h], axis=-1)
    pp = params["post"]
    x = jax.nn.relu(mm(f_h, pp["w1"]) + pp["b1"])
    x = jax.nn.relu(mm(x, pp["w2"]) + pp["b2"])
    m = mm(x, pp["w3"]) + pp["b3"]
    return {"Feature_t": t_h, "Feature_a": a_h, "Feature_v": v_h, "Feature_f": f_h, "M": m}


if __name__ == "__main__":
    # small config (args.feature_dims, args.hidden_dims, args.text_out, args.post_fusion_dim)
    B, T = 8, 8
    text_in, audio_in, video_in = 32, 16, 16
    text_hidden, audio_hidden, video_hidden = 32, 16, 16
    text_out = 32
    post_fusion_dim = 32

    root = jax.random.PRNGKey(0)
    k_a, k_v, k_t, k_p, k_xt, k_xa, k_xv = jax.random.split(root, 7)

    params = {
        "audio": init_subnet_params(k_a, audio_in, audio_hidden),
        "video": init_subnet_params(k_v, video_in, video_hidden),
        "text": init_text_params(k_t, text_in, text_hidden, text_out),
        "post": init_post_params(k_p, audio_hidden + video_hidden + text_out, post_fusion_dim),
    }
    kernel_params = prepare_params(params)   # one-time host-side fold/split

    text_x = jax.random.normal(k_xt, (B, T, text_in), jnp.float32)
    audio_x = jax.random.normal(k_xa, (B, audio_in), jnp.float32)
    video_x = jax.random.normal(k_xv, (B, video_in), jnp.float32)

    res = jax.jit(lf_dnn_forward)(text_x, audio_x, video_x, kernel_params)
    jax.block_until_ready(res)

    assert res["Feature_a"].shape == (B, audio_hidden)
    assert res["Feature_v"].shape == (B, video_hidden)
    assert res["Feature_t"].shape == (B, text_out)
    assert res["Feature_f"].shape == (B, audio_hidden + video_hidden + text_out)
    assert res["M"].shape == (B, 1)

    ref = lf_dnn_reference(text_x, audio_x, video_x, params)
    # Tolerance covers default MXU matmul precision inside the kernel vs HIGHEST-precision reference.
    for name in ("Feature_a", "Feature_v", "Feature_t", "Feature_f", "M"):
        np.testing.assert_allclose(np.asarray(res[name]), np.asarray(ref[name]),
                                   rtol=2e-2, atol=2e-2)

    print("KERNEL_OK")
</pallas_src>

<mosaic_0001>
module attributes {stable_mosaic.version = 11 : i64} {
  func.func @lf_dnn_kernel(%arg0: memref<8x16xf32, #tpu.memory_space<vmem>>, %arg1: memref<8x16xf32, #tpu.memory_space<vmem>>, %arg2: memref<64x32xf32, #tpu.memory_space<vmem>>, %arg3: memref<16x16xf32, #tpu.memory_space<vmem>>, %arg4: memref<1x16xf32, #tpu.memory_space<vmem>>, %arg5: memref<16x16xf32, #tpu.memory_space<vmem>>, %arg6: memref<1x16xf32, #tpu.memory_space<vmem>>, %arg7: memref<16x16xf32, #tpu.memory_space<vmem>>, %arg8: memref<1x16xf32, #tpu.memory_space<vmem>>, %arg9: memref<16x16xf32, #tpu.memory_space<vmem>>, %arg10: memref<1x16xf32, #tpu.memory_space<vmem>>, %arg11: memref<16x16xf32, #tpu.memory_space<vmem>>, %arg12: memref<1x16xf32, #tpu.memory_space<vmem>>, %arg13: memref<16x16xf32, #tpu.memory_space<vmem>>, %arg14: memref<1x16xf32, #tpu.memory_space<vmem>>, %arg15: memref<32x32xf32, #tpu.memory_space<vmem>>, %arg16: memref<32x32xf32, #tpu.memory_space<vmem>>, %arg17: memref<32x32xf32, #tpu.memory_space<vmem>>, %arg18: memref<32x32xf32, #tpu.memory_space<vmem>>, %arg19: memref<32x32xf32, #tpu.memory_space<vmem>>, %arg20: memref<32x32xf32, #tpu.memory_space<vmem>>, %arg21: memref<32x32xf32, #tpu.memory_space<vmem>>, %arg22: memref<32x32xf32, #tpu.memory_space<vmem>>, %arg23: memref<1x32xf32, #tpu.memory_space<vmem>>, %arg24: memref<1x32xf32, #tpu.memory_space<vmem>>, %arg25: memref<1x32xf32, #tpu.memory_space<vmem>>, %arg26: memref<1x32xf32, #tpu.memory_space<vmem>>, %arg27: memref<32x32xf32, #tpu.memory_space<vmem>>, %arg28: memref<1x32xf32, #tpu.memory_space<vmem>>, %arg29: memref<64x32xf32, #tpu.memory_space<vmem>>, %arg30: memref<1x32xf32, #tpu.memory_space<vmem>>, %arg31: memref<32x32xf32, #tpu.memory_space<vmem>>, %arg32: memref<1x32xf32, #tpu.memory_space<vmem>>, %arg33: memref<32x1xf32, #tpu.memory_space<vmem>>, %arg34: memref<1x1xf32, #tpu.memory_space<vmem>>, %arg35: memref<8x16xf32, #tpu.memory_space<vmem>>, %arg36: memref<8x16xf32, #tpu.memory_space<vmem>>, %arg37: memref<8x32xf32, #tpu.memory_space<vmem>>, %arg38: memref<8x64xf32, #tpu.memory_space<vmem>>, %arg39: memref<8x1xf32, #tpu.memory_space<vmem>>) attributes {dimension_semantics = [], scalar_prefetch = 0 : i64, scratch_operands = 0 : i64, tpu.core_type = #tpu.core_type<tc>} {
    %c0 = arith.constant 0 : index
    %c0_0 = arith.constant 0 : index
    %0 = vector.load %arg0[%c0, %c0_0] : memref<8x16xf32, #tpu.memory_space<vmem>>, vector<8x16xf32>
    %c0_1 = arith.constant 0 : index
    %c0_2 = arith.constant 0 : index
    %1 = vector.load %arg3[%c0_1, %c0_2] : memref<16x16xf32, #tpu.memory_space<vmem>>, vector<16x16xf32>
    %cst = arith.constant dense<0.000000e+00> : vector<8x16xf32>
    %2 = tpu.matmul %0, %1, %cst {dimension_numbers = #tpu.dot_dimension_numbers<[1], [0], [0], [1], [0, 0, 1, 1], [], []>} : vector<8x16xf32>, vector<16x16xf32>, vector<8x16xf32> -> vector<8x16xf32>
    %c0_3 = arith.constant 0 : index
    %c0_4 = arith.constant 0 : index
    %3 = vector.load %arg4[%c0_3, %c0_4] : memref<1x16xf32, #tpu.memory_space<vmem>>, vector<1x16xf32>
    %4 = vector.broadcast %3 : vector<1x16xf32> to vector<8x16xf32>
    %5 = arith.addf %2, %4 : vector<8x16xf32>
    %cst_5 = arith.constant 0.000000e+00 : f32
    %6 = vector.broadcast %cst_5 : f32 to vector<8x16xf32>
    %7 = arith.maximumf %5, %6 : vector<8x16xf32>
    %c0_6 = arith.constant 0 : index
    %c0_7 = arith.constant 0 : index
    %8 = vector.load %arg5[%c0_6, %c0_7] : memref<16x16xf32, #tpu.memory_space<vmem>>, vector<16x16xf32>
    %cst_8 = arith.constant dense<0.000000e+00> : vector<8x16xf32>
    %9 = tpu.matmul %7, %8, %cst_8 {dimension_numbers = #tpu.dot_dimension_numbers<[1], [0], [0], [1], [0, 0, 1, 1], [], []>} : vector<8x16xf32>, vector<16x16xf32>, vector<8x16xf32> -> vector<8x16xf32>
    %c0_9 = arith.constant 0 : index
    %c0_10 = arith.constant 0 : index
    %10 = vector.load %arg6[%c0_9, %c0_10] : memref<1x16xf32, #tpu.memory_space<vmem>>, vector<1x16xf32>
    %11 = vector.broadcast %10 : vector<1x16xf32> to vector<8x16xf32>
    %12 = arith.addf %9, %11 : vector<8x16xf32>
    %cst_11 = arith.constant 0.000000e+00 : f32
    %13 = vector.broadcast %cst_11 : f32 to vector<8x16xf32>
    %14 = arith.maximumf %12, %13 : vector<8x16xf32>
    %c0_12 = arith.constant 0 : index
    %c0_13 = arith.constant 0 : index
    %15 = vector.load %arg7[%c0_12, %c0_13] : memref<16x16xf32, #tpu.memory_space<vmem>>, vector<16x16xf32>
    %cst_14 = arith.constant dense<0.000000e+00> : vector<8x16xf32>
    %16 = tpu.matmul %14, %15, %cst_14 {dimension_numbers = #tpu.dot_dimension_numbers<[1], [0], [0], [1], [0, 0, 1, 1], [], []>} : vector<8x16xf32>, vector<16x16xf32>, vector<8x16xf32> -> vector<8x16xf32>
    %c0_15 = arith.constant 0 : index
    %c0_16 = arith.constant 0 : index
    %17 = vector.load %arg8[%c0_15, %c0_16] : memref<1x16xf32, #tpu.memory_space<vmem>>, vector<1x16xf32>
    %18 = vector.broadcast %17 : vector<1x16xf32> to vector<8x16xf32>
    %19 = arith.addf %16, %18 : vector<8x16xf32>
    %cst_17 = arith.constant 0.000000e+00 : f32
    %20 = vector.broadcast %cst_17 : f32 to vector<8x16xf32>
    %21 = arith.maximumf %19, %20 : vector<8x16xf32>
    %c0_18 = arith.constant 0 : index
    %c0_19 = arith.constant 0 : index
    %22 = vector.load %arg35[%c0_18, %c0_19] : memref<8x16xf32, #tpu.memory_space<vmem>>, vector<8x16xf32>
    tpu.vector_store %arg35[%c0_18, %c0_19], %21 {strides = array<i32>} : memref<8x16xf32, #tpu.memory_space<vmem>>, vector<8x16xf32>,
    %c0_20 = arith.constant 0 : index
    %c0_21 = arith.constant 0 : index
    %23 = vector.load %arg1[%c0_20, %c0_21] : memref<8x16xf32, #tpu.memory_space<vmem>>, vector<8x16xf32>
    %c0_22 = arith.constant 0 : index
    %c0_23 = arith.constant 0 : index
    %24 = vector.load %arg9[%c0_22, %c0_23] : memref<16x16xf32, #tpu.memory_space<vmem>>, vector<16x16xf32>
    %cst_24 = arith.constant dense<0.000000e+00> : vector<8x16xf32>
    %25 = tpu.matmul %23, %24, %cst_24 {dimension_numbers = #tpu.dot_dimension_numbers<[1], [0], [0], [1], [0, 0, 1, 1], [], []>} : vector<8x16xf32>, vector<16x16xf32>, vector<8x16xf32> -> vector<8x16xf32>
    %c0_25 = arith.constant 0 : index
    %c0_26 = arith.constant 0 : index
    %26 = vector.load %arg10[%c0_25, %c0_26] : memref<1x16xf32, #tpu.memory_space<vmem>>, vector<1x16xf32>
    %27 = vector.broadcast %26 : vector<1x16xf32> to vector<8x16xf32>
    %28 = arith.addf %25, %27 : vector<8x16xf32>
    %cst_27 = arith.constant 0.000000e+00 : f32
    %29 = vector.broadcast %cst_27 : f32 to vector<8x16xf32>
    %30 = arith.maximumf %28, %29 : vector<8x16xf32>
    %c0_28 = arith.constant 0 : index
    %c0_29 = arith.constant 0 : index
    %31 = vector.load %arg11[%c0_28, %c0_29] : memref<16x16xf32, #tpu.memory_space<vmem>>, vector<16x16xf32>
    %cst_30 = arith.constant dense<0.000000e+00> : vector<8x16xf32>
    %32 = tpu.matmul %30, %31, %cst_30 {dimension_numbers = #tpu.dot_dimension_numbers<[1], [0], [0], [1], [0, 0, 1, 1], [], []>} : vector<8x16xf32>, vector<16x16xf32>, vector<8x16xf32> -> vector<8x16xf32>
    %c0_31 = arith.constant 0 : index
    %c0_32 = arith.constant 0 : index
    %33 = vector.load %arg12[%c0_31, %c0_32] : memref<1x16xf32, #tpu.memory_space<vmem>>, vector<1x16xf32>
    %34 = vector.broadcast %33 : vector<1x16xf32> to vector<8x16xf32>
    %35 = arith.addf %32, %34 : vector<8x16xf32>
    %cst_33 = arith.constant 0.000000e+00 : f32
    %36 = vector.broadcast %cst_33 : f32 to vector<8x16xf32>
    %37 = arith.maximumf %35, %36 : vector<8x16xf32>
    %c0_34 = arith.constant 0 : index
    %c0_35 = arith.constant 0 : index
    %38 = vector.load %arg13[%c0_34, %c0_35] : memref<16x16xf32, #tpu.memory_space<vmem>>, vector<16x16xf32>
    %cst_36 = arith.constant dense<0.000000e+00> : vector<8x16xf32>
    %39 = tpu.matmul %37, %38, %cst_36 {dimension_numbers = #tpu.dot_dimension_numbers<[1], [0], [0], [1], [0, 0, 1, 1], [], []>} : vector<8x16xf32>, vector<16x16xf32>, vector<8x16xf32> -> vector<8x16xf32>
    %c0_37 = arith.constant 0 : index
    %c0_38 = arith.constant 0 : index
    %40 = vector.load %arg14[%c0_37, %c0_38] : memref<1x16xf32, #tpu.memory_space<vmem>>, vector<1x16xf32>
    %41 = vector.broadcast %40 : vector<1x16xf32> to vector<8x16xf32>
    %42 = arith.addf %39, %41 : vector<8x16xf32>
    %cst_39 = arith.constant 0.000000e+00 : f32
    %43 = vector.broadcast %cst_39 : f32 to vector<8x16xf32>
    %44 = arith.maximumf %42, %43 : vector<8x16xf32>
    %c0_40 = arith.constant 0 : index
    %c0_41 = arith.constant 0 : index
    %45 = vector.load %arg36[%c0_40, %c0_41] : memref<8x16xf32, #tpu.memory_space<vmem>>, vector<8x16xf32>
    tpu.vector_store %arg36[%c0_40, %c0_41], %44 {strides = array<i32>} : memref<8x16xf32, #tpu.memory_space<vmem>>, vector<8x16xf32>,
    %c0_42 = arith.constant 0 : index
    %c0_43 = arith.constant 0 : index
    %46 = vector.load %arg2[%c0_42, %c0_43] : memref<64x32xf32, #tpu.memory_space<vmem>>, vector<64x32xf32>
    %c0_44 = arith.constant 0 : index
    %c0_45 = arith.constant 0 : index
    %47 = vector.load %arg15[%c0_44, %c0_45] : memref<32x32xf32, #tpu.memory_space<vmem>>, vector<32x32xf32>
    %cst_46 = arith.constant dense<0.000000e+00> : vector<64x32xf32>
    %48 = tpu.matmul %46, %47, %cst_46 {dimension_numbers = #tpu.dot_dimension_numbers<[1], [0], [0], [1], [0, 0, 1, 1], [], []>} : vector<64x32xf32>, vector<32x32xf32>, vector<64x32xf32> -> vector<64x32xf32>
    %c0_47 = arith.constant 0 : index
    %c0_48 = arith.constant 0 : index
    %49 = vector.load %arg23[%c0_47, %c0_48] : memref<1x32xf32, #tpu.memory_space<vmem>>, vector<1x32xf32>
    %50 = vector.broadcast %49 : vector<1x32xf32> to vector<64x32xf32>
    %51 = arith.addf %48, %50 : vector<64x32xf32>
    %c0_49 = arith.constant 0 : index
    %c0_50 = arith.constant 0 : index
    %52 = vector.load %arg16[%c0_49, %c0_50] : memref<32x32xf32, #tpu.memory_space<vmem>>, vector<32x32xf32>
    %cst_51 = arith.constant dense<0.000000e+00> : vector<64x32xf32>
    %53 = tpu.matmul %46, %52, %cst_51 {dimension_numbers = #tpu.dot_dimension_numbers<[1], [0], [0], [1], [0, 0, 1, 1], [], []>} : vector<64x32xf32>, vector<32x32xf32>, vector<64x32xf32> -> vector<64x32xf32>
    %c0_52 = arith.constant 0 : index
    %c0_53 = arith.constant 0 : index
    %54 = vector.load %arg24[%c0_52, %c0_53] : memref<1x32xf32, #tpu.memory_space<vmem>>, vector<1x32xf32>
    %55 = vector.broadcast %54 : vector<1x32xf32> to vector<64x32xf32>
    %56 = arith.addf %53, %55 : vector<64x32xf32>
    %c0_54 = arith.constant 0 : index
    %c0_55 = arith.constant 0 : index
    %57 = vector.load %arg17[%c0_54, %c0_55] : memref<32x32xf32, #tpu.memory_space<vmem>>, vector<32x32xf32>
    %cst_56 = arith.constant dense<0.000000e+00> : vector<64x32xf32>
    %58 = tpu.matmul %46, %57, %cst_56 {dimension_numbers = #tpu.dot_dimension_numbers<[1], [0], [0], [1], [0, 0, 1, 1], [], []>} : vector<64x32xf32>, vector<32x32xf32>, vector<64x32xf32> -> vector<64x32xf32>
    %c0_57 = arith.constant 0 : index
    %c0_58 = arith.constant 0 : index
    %59 = vector.load %arg25[%c0_57, %c0_58] : memref<1x32xf32, #tpu.memory_space<vmem>>, vector<1x32xf32>
    %60 = vector.broadcast %59 : vector<1x32xf32> to vector<64x32xf32>
    %61 = arith.addf %58, %60 : vector<64x32xf32>
    %c0_59 = arith.constant 0 : index
    %c0_60 = arith.constant 0 : index
    %62 = vector.load %arg18[%c0_59, %c0_60] : memref<32x32xf32, #tpu.memory_space<vmem>>, vector<32x32xf32>
    %cst_61 = arith.constant dense<0.000000e+00> : vector<64x32xf32>
    %63 = tpu.matmul %46, %62, %cst_61 {dimension_numbers = #tpu.dot_dimension_numbers<[1], [0], [0], [1], [0, 0, 1, 1], [], []>} : vector<64x32xf32>, vector<32x32xf32>, vector<64x32xf32> -> vector<64x32xf32>
    %c0_62 = arith.constant 0 : index
    %c0_63 = arith.constant 0 : index
    %64 = vector.load %arg26[%c0_62, %c0_63] : memref<1x32xf32, #tpu.memory_space<vmem>>, vector<1x32xf32>
    %65 = vector.broadcast %64 : vector<1x32xf32> to vector<64x32xf32>
    %66 = arith.addf %63, %65 : vector<64x32xf32>
    %cst_64 = arith.constant 0.000000e+00 : f32
    %67 = vector.broadcast %cst_64 : f32 to vector<8x32xf32>
    %cst_65 = arith.constant 0.000000e+00 : f32
    %68 = vector.broadcast %cst_65 : f32 to vector<8x32xf32>
    %69 = vector.extract_strided_slice %51 {offsets = [0, 0], sizes = [8, 32], strides = [1, 1]} : vector<64x32xf32> to vector<8x32xf32>
    %c0_66 = arith.constant 0 : index
    %c0_67 = arith.constant 0 : index
    %70 = vector.load %arg19[%c0_66, %c0_67] : memref<32x32xf32, #tpu.memory_space<vmem>>, vector<32x32xf32>
    %cst_68 = arith.constant dense<0.000000e+00> : vector<8x32xf32>
    %71 = tpu.matmul %67, %70, %cst_68 {dimension_numbers = #tpu.dot_dimension_numbers<[1], [0], [0], [1], [0, 0, 1, 1], [], []>} : vector<8x32xf32>, vector<32x32xf32>, vector<8x32xf32> -> vector<8x32xf32>
    %72 = arith.addf %69, %71 : vector<8x32xf32>
    %73 = arith.negf %72 : vector<8x32xf32>
    %74 = math.exp %73 : vector<8x32xf32>
    %cst_69 = arith.constant 1.000000e+00 : f32
    %75 = vector.broadcast %cst_69 : f32 to vector<8x32xf32>
    %76 = arith.addf %75, %74 : vector<8x32xf32>
    %77 = arith.divf %75, %76 : vector<8x32xf32>
    %78 = vector.extract_strided_slice %56 {offsets = [0, 0], sizes = [8, 32], strides = [1, 1]} : vector<64x32xf32> to vector<8x32xf32>
    %c0_70 = arith.constant 0 : index
    %c0_71 = arith.constant 0 : index
    %79 = vector.load %arg20[%c0_70, %c0_71] : memref<32x32xf32, #tpu.memory_space<vmem>>, vector<32x32xf32>
    %cst_72 = arith.constant dense<0.000000e+00> : vector<8x32xf32>
    %80 = tpu.matmul %67, %79, %cst_72 {dimension_numbers = #tpu.dot_dimension_numbers<[1], [0], [0], [1], [0, 0, 1, 1], [], []>} : vector<8x32xf32>, vector<32x32xf32>, vector<8x32xf32> -> vector<8x32xf32>
    %81 = arith.addf %78, %80 : vector<8x32xf32>
    %82 = arith.negf %81 : vector<8x32xf32>
    %83 = math.exp %82 : vector<8x32xf32>
    %cst_73 = arith.constant 1.000000e+00 : f32
    %84 = vector.broadcast %cst_73 : f32 to vector<8x32xf32>
    %85 = arith.addf %84, %83 : vector<8x32xf32>
    %86 = arith.divf %84, %85 : vector<8x32xf32>
    %87 = vector.extract_strided_slice %61 {offsets = [0, 0], sizes = [8, 32], strides = [1, 1]} : vector<64x32xf32> to vector<8x32xf32>
    %c0_74 = arith.constant 0 : index
    %c0_75 = arith.constant 0 : index
    %88 = vector.load %arg21[%c0_74, %c0_75] : memref<32x32xf32, #tpu.memory_space<vmem>>, vector<32x32xf32>
    %cst_76 = arith.constant dense<0.000000e+00> : vector<8x32xf32>
    %89 = tpu.matmul %67, %88, %cst_76 {dimension_numbers = #tpu.dot_dimension_numbers<[1], [0], [0], [1], [0, 0, 1, 1], [], []>} : vector<8x32xf32>, vector<32x32xf32>, vector<8x32xf32> -> vector<8x32xf32>
    %90 = arith.addf %87, %89 : vector<8x32xf32>
    %91 = math.tanh %90 : vector<8x32xf32>
    %92 = vector.extract_strided_slice %66 {offsets = [0, 0], sizes = [8, 32], strides = [1, 1]} : vector<64x32xf32> to vector<8x32xf32>
    %c0_77 = arith.constant 0 : index
    %c0_78 = arith.constant 0 : index
    %93 = vector.load %arg22[%c0_77, %c0_78] : memref<32x32xf32, #tpu.memory_space<vmem>>, vector<32x32xf32>
    %cst_79 = arith.constant dense<0.000000e+00> : vector<8x32xf32>
    %94 = tpu.matmul %67, %93, %cst_79 {dimension_numbers = #tpu.dot_dimension_numbers<[1], [0], [0], [1], [0, 0, 1, 1], [], []>} : vector<8x32xf32>, vector<32x32xf32>, vector<8x32xf32> -> vector<8x32xf32>
    %95 = arith.addf %92, %94 : vector<8x32xf32>
    %96 = arith.negf %95 : vector<8x32xf32>
    %97 = math.exp %96 : vector<8x32xf32>
    %cst_80 = arith.constant 1.000000e+00 : f32
    %98 = vector.broadcast %cst_80 : f32 to vector<8x32xf32>
    %99 = arith.addf %98, %97 : vector<8x32xf32>
    %100 = arith.divf %98, %99 : vector<8x32xf32>
    %101 = arith.mulf %86, %68 : vector<8x32xf32>
    %102 = arith.mulf %77, %91 : vector<8x32xf32>
    %103 = arith.addf %101, %102 : vector<8x32xf32>
    %104 = math.tanh %103 : vector<8x32xf32>
    %105 = arith.mulf %100, %104 : vector<8x32xf32>
    %106 = vector.extract_strided_slice %51 {offsets = [8, 0], sizes = [8, 32], strides = [1, 1]} : vector<64x32xf32> to vector<8x32xf32>
    %c0_81 = arith.constant 0 : index
    %c0_82 = arith.constant 0 : index
    %107 = vector.load %arg19[%c0_81, %c0_82] : memref<32x32xf32, #tpu.memory_space<vmem>>, vector<32x32xf32>
    %cst_83 = arith.constant dense<0.000000e+00> : vector<8x32xf32>
    %108 = tpu.matmul %105, %107, %cst_83 {dimension_numbers = #tpu.dot_dimension_numbers<[1], [0], [0], [1], [0, 0, 1, 1], [], []>} : vector<8x32xf32>, vector<32x32xf32>, vector<8x32xf32> -> vector<8x32xf32>
    %109 = arith.addf %106, %108 : vector<8x32xf32>
    %110 = arith.negf %109 : vector<8x32xf32>
    %111 = math.exp %110 : vector<8x32xf32>
    %cst_84 = arith.constant 1.000000e+00 : f32
    %112 = vector.broadcast %cst_84 : f32 to vector<8x32xf32>
    %113 = arith.addf %112, %111 : vector<8x32xf32>
    %114 = arith.divf %112, %113 : vector<8x32xf32>
    %115 = vector.extract_strided_slice %56 {offsets = [8, 0], sizes = [8, 32], strides = [1, 1]} : vector<64x32xf32> to vector<8x32xf32>
    %c0_85 = arith.constant 0 : index
    %c0_86 = arith.constant 0 : index
    %116 = vector.load %arg20[%c0_85, %c0_86] : memref<32x32xf32, #tpu.memory_space<vmem>>, vector<32x32xf32>
    %cst_87 = arith.constant dense<0.000000e+00> : vector<8x32xf32>
    %117 = tpu.matmul %105, %116, %cst_87 {dimension_numbers = #tpu.dot_dimension_numbers<[1], [0], [0], [1], [0, 0, 1, 1], [], []>} : vector<8x32xf32>, vector<32x32xf32>, vector<8x32xf32> -> vector<8x32xf32>
    %118 = arith.addf %115, %117 : vector<8x32xf32>
    %119 = arith.negf %118 : vector<8x32xf32>
    %120 = math.exp %119 : vector<8x32xf32>
    %cst_88 = arith.constant 1.000000e+00 : f32
    %121 = vector.broadcast %cst_88 : f32 to vector<8x32xf32>
    %122 = arith.addf %121, %120 : vector<8x32xf32>
    %123 = arith.divf %121, %122 : vector<8x32xf32>
    %124 = vector.extract_strided_slice %61 {offsets = [8, 0], sizes = [8, 32], strides = [1, 1]} : vector<64x32xf32> to vector<8x32xf32>
    %c0_89 = arith.constant 0 : index
    %c0_90 = arith.constant 0 : index
    %125 = vector.load %arg21[%c0_89, %c0_90] : memref<32x32xf32, #tpu.memory_space<vmem>>, vector<32x32xf32>
    %cst_91 = arith.constant dense<0.000000e+00> : vector<8x32xf32>
    %126 = tpu.matmul %105, %125, %cst_91 {dimension_numbers = #tpu.dot_dimension_numbers<[1], [0], [0], [1], [0, 0, 1, 1], [], []>} : vector<8x32xf32>, vector<32x32xf32>, vector<8x32xf32> -> vector<8x32xf32>
    %127 = arith.addf %124, %126 : vector<8x32xf32>
    %128 = math.tanh %127 : vector<8x32xf32>
    %129 = vector.extract_strided_slice %66 {offsets = [8, 0], sizes = [8, 32], strides = [1, 1]} : vector<64x32xf32> to vector<8x32xf32>
    %c0_92 = arith.constant 0 : index
    %c0_93 = arith.constant 0 : index
    %130 = vector.load %arg22[%c0_92, %c0_93] : memref<32x32xf32, #tpu.memory_space<vmem>>, vector<32x32xf32>
    %cst_94 = arith.constant dense<0.000000e+00> : vector<8x32xf32>
    %131 = tpu.matmul %105, %130, %cst_94 {dimension_numbers = #tpu.dot_dimension_numbers<[1], [0], [0], [1], [0, 0, 1, 1], [], []>} : vector<8x32xf32>, vector<32x32xf32>, vector<8x32xf32> -> vector<8x32xf32>
    %132 = arith.addf %129, %131 : vector<8x32xf32>
    %133 = arith.negf %132 : vector<8x32xf32>
    %134 = math.exp %133 : vector<8x32xf32>
    %cst_95 = arith.constant 1.000000e+00 : f32
    %135 = vector.broadcast %cst_95 : f32 to vector<8x32xf32>
    %136 = arith.addf %135, %134 : vector<8x32xf32>
    %137 = arith.divf %135, %136 : vector<8x32xf32>
    %138 = arith.mulf %123, %103 : vector<8x32xf32>
    %139 = arith.mulf %114, %128 : vector<8x32xf32>
    %140 = arith.addf %138, %139 : vector<8x32xf32>
    %141 = math.tanh %140 : vector<8x32xf32>
    %142 = arith.mulf %137, %141 : vector<8x32xf32>
    %143 = vector.extract_strided_slice %51 {offsets = [16, 0], sizes = [8, 32], strides = [1, 1]} : vector<64x32xf32> to vector<8x32xf32>
    %c0_96 = arith.constant 0 : index
    %c0_97 = arith.constant 0 : index
    %144 = vector.load %arg19[%c0_96, %c0_97] : memref<32x32xf32, #tpu.memory_space<vmem>>, vector<32x32xf32>
    %cst_98 = arith.constant dense<0.000000e+00> : vector<8x32xf32>
    %145 = tpu.matmul %142, %144, %cst_98 {dimension_numbers = #tpu.dot_dimension_numbers<[1], [0], [0], [1], [0, 0, 1, 1], [], []>} : vector<8x32xf32>, vector<32x32xf32>, vector<8x32xf32> -> vector<8x32xf32>
    %146 = arith.addf %143, %145 : vector<8x32xf32>
    %147 = arith.negf %146 : vector<8x32xf32>
    %148 = math.exp %147 : vector<8x32xf32>
    %cst_99 = arith.constant 1.000000e+00 : f32
    %149 = vector.broadcast %cst_99 : f32 to vector<8x32xf32>
    %150 = arith.addf %149, %148 : vector<8x32xf32>
    %151 = arith.divf %149, %150 : vector<8x32xf32>
    %152 = vector.extract_strided_slice %56 {offsets = [16, 0], sizes = [8, 32], strides = [1, 1]} : vector<64x32xf32> to vector<8x32xf32>
    %c0_100 = arith.constant 0 : index
    %c0_101 = arith.constant 0 : index
    %153 = vector.load %arg20[%c0_100, %c0_101] : memref<32x32xf32, #tpu.memory_space<vmem>>, vector<32x32xf32>
    %cst_102 = arith.constant dense<0.000000e+00> : vector<8x32xf32>
    %154 = tpu.matmul %142, %153, %cst_102 {dimension_numbers = #tpu.dot_dimension_numbers<[1], [0], [0], [1], [0, 0, 1, 1], [], []>} : vector<8x32xf32>, vector<32x32xf32>, vector<8x32xf32> -> vector<8x32xf32>
    %155 = arith.addf %152, %154 : vector<8x32xf32>
    %156 = arith.negf %155 : vector<8x32xf32>
    %157 = math.exp %156 : vector<8x32xf32>
    %cst_103 = arith.constant 1.000000e+00 : f32
    %158 = vector.broadcast %cst_103 : f32 to vector<8x32xf32>
    %159 = arith.addf %158, %157 : vector<8x32xf32>
    %160 = arith.divf %158, %159 : vector<8x32xf32>
    %161 = vector.extract_strided_slice %61 {offsets = [16, 0], sizes = [8, 32], strides = [1, 1]} : vector<64x32xf32> to vector<8x32xf32>
    %c0_104 = arith.constant 0 : index
    %c0_105 = arith.constant 0 : index
    %162 = vector.load %arg21[%c0_104, %c0_105] : memref<32x32xf32, #tpu.memory_space<vmem>>, vector<32x32xf32>
    %cst_106 = arith.constant dense<0.000000e+00> : vector<8x32xf32>
    %163 = tpu.matmul %142, %162, %cst_106 {dimension_numbers = #tpu.dot_dimension_numbers<[1], [0], [0], [1], [0, 0, 1, 1], [], []>} : vector<8x32xf32>, vector<32x32xf32>, vector<8x32xf32> -> vector<8x32xf32>
    %164 = arith.addf %161, %163 : vector<8x32xf32>
    %165 = math.tanh %164 : vector<8x32xf32>
    %166 = vector.extract_strided_slice %66 {offsets = [16, 0], sizes = [8, 32], strides = [1, 1]} : vector<64x32xf32> to vector<8x32xf32>
    %c0_107 = arith.constant 0 : index
    %c0_108 = arith.constant 0 : index
    %167 = vector.load %arg22[%c0_107, %c0_108] : memref<32x32xf32, #tpu.memory_space<vmem>>, vector<32x32xf32>
    %cst_109 = arith.constant dense<0.000000e+00> : vector<8x32xf32>
    %168 = tpu.matmul %142, %167, %cst_109 {dimension_numbers = #tpu.dot_dimension_numbers<[1], [0], [0], [1], [0, 0, 1, 1], [], []>} : vector<8x32xf32>, vector<32x32xf32>, vector<8x32xf32> -> vector<8x32xf32>
    %169 = arith.addf %166, %168 : vector<8x32xf32>
    %170 = arith.negf %169 : vector<8x32xf32>
    %171 = math.exp %170 : vector<8x32xf32>
    %cst_110 = arith.constant 1.000000e+00 : f32
    %172 = vector.broadcast %cst_110 : f32 to vector<8x32xf32>
    %173 = arith.addf %172, %171 : vector<8x32xf32>
    %174 = arith.divf %172, %173 : vector<8x32xf32>
    %175 = arith.mulf %160, %140 : vector<8x32xf32>
    %176 = arith.mulf %151, %165 : vector<8x32xf32>
    %177 = arith.addf %175, %176 : vector<8x32xf32>
    %178 = math.tanh %177 : vector<8x32xf32>
    %179 = arith.mulf %174, %178 : vector<8x32xf32>
    %180 = vector.extract_strided_slice %51 {offsets = [24, 0], sizes = [8, 32], strides = [1, 1]} : vector<64x32xf32> to vector<8x32xf32>
    %c0_111 = arith.constant 0 : index
    %c0_112 = arith.constant 0 : index
    %181 = vector.load %arg19[%c0_111, %c0_112] : memref<32x32xf32, #tpu.memory_space<vmem>>, vector<32x32xf32>
    %cst_113 = arith.constant dense<0.000000e+00> : vector<8x32xf32>
    %182 = tpu.matmul %179, %181, %cst_113 {dimension_numbers = #tpu.dot_dimension_numbers<[1], [0], [0], [1], [0, 0, 1, 1], [], []>} : vector<8x32xf32>, vector<32x32xf32>, vector<8x32xf32> -> vector<8x32xf32>
    %183 = arith.addf %180, %182 : vector<8x32xf32>
    %184 = arith.negf %183 : vector<8x32xf32>
    %185 = math.exp %184 : vector<8x32xf32>
    %cst_114 = arith.constant 1.000000e+00 : f32
    %186 = vector.broadcast %cst_114 : f32 to vector<8x32xf32>
    %187 = arith.addf %186, %185 : vector<8x32xf32>
    %188 = arith.divf %186, %187 : vector<8x32xf32>
    %189 = vector.extract_strided_slice %56 {offsets = [24, 0], sizes = [8, 32], strides = [1, 1]} : vector<64x32xf32> to vector<8x32xf32>
    %c0_115 = arith.constant 0 : index
    %c0_116 = arith.constant 0 : index
    %190 = vector.load %arg20[%c0_115, %c0_116] : memref<32x32xf32, #tpu.memory_space<vmem>>, vector<32x32xf32>
    %cst_117 = arith.constant dense<0.000000e+00> : vector<8x32xf32>
    %191 = tpu.matmul %179, %190, %cst_117 {dimension_numbers = #tpu.dot_dimension_numbers<[1], [0], [0], [1], [0, 0, 1, 1], [], []>} : vector<8x32xf32>, vector<32x32xf32>, vector<8x32xf32> -> vector<8x32xf32>
    %192 = arith.addf %189, %191 : vector<8x32xf32>
    %193 = arith.negf %192 : vector<8x32xf32>
    %194 = math.exp %193 : vector<8x32xf32>
    %cst_118 = arith.constant 1.000000e+00 : f32
    %195 = vector.broadcast %cst_118 : f32 to vector<8x32xf32>
    %196 = arith.addf %195, %194 : vector<8x32xf32>
    %197 = arith.divf %195, %196 : vector<8x32xf32>
    %198 = vector.extract_strided_slice %61 {offsets = [24, 0], sizes = [8, 32], strides = [1, 1]} : vector<64x32xf32> to vector<8x32xf32>
    %c0_119 = arith.constant 0 : index
    %c0_120 = arith.constant 0 : index
    %199 = vector.load %arg21[%c0_119, %c0_120] : memref<32x32xf32, #tpu.memory_space<vmem>>, vector<32x32xf32>
    %cst_121 = arith.constant dense<0.000000e+00> : vector<8x32xf32>
    %200 = tpu.matmul %179, %199, %cst_121 {dimension_numbers = #tpu.dot_dimension_numbers<[1], [0], [0], [1], [0, 0, 1, 1], [], []>} : vector<8x32xf32>, vector<32x32xf32>, vector<8x32xf32> -> vector<8x32xf32>
    %201 = arith.addf %198, %200 : vector<8x32xf32>
    %202 = math.tanh %201 : vector<8x32xf32>
    %203 = vector.extract_strided_slice %66 {offsets = [24, 0], sizes = [8, 32], strides = [1, 1]} : vector<64x32xf32> to vector<8x32xf32>
    %c0_122 = arith.constant 0 : index
    %c0_123 = arith.constant 0 : index
    %204 = vector.load %arg22[%c0_122, %c0_123] : memref<32x32xf32, #tpu.memory_space<vmem>>, vector<32x32xf32>
    %cst_124 = arith.constant dense<0.000000e+00> : vector<8x32xf32>
    %205 = tpu.matmul %179, %204, %cst_124 {dimension_numbers = #tpu.dot_dimension_numbers<[1], [0], [0], [1], [0, 0, 1, 1], [], []>} : vector<8x32xf32>, vector<32x32xf32>, vector<8x32xf32> -> vector<8x32xf32>
    %206 = arith.addf %203, %205 : vector<8x32xf32>
    %207 = arith.negf %206 : vector<8x32xf32>
    %208 = math.exp %207 : vector<8x32xf32>
    %cst_125 = arith.constant 1.000000e+00 : f32
    %209 = vector.broadcast %cst_125 : f32 to vector<8x32xf32>
    %210 = arith.addf %209, %208 : vector<8x32xf32>
    %211 = arith.divf %209, %210 : vector<8x32xf32>
    %212 = arith.mulf %197, %177 : vector<8x32xf32>
    %213 = arith.mulf %188, %202 : vector<8x32xf32>
    %214 = arith.addf %212, %213 : vector<8x32xf32>
    %215 = math.tanh %214 : vector<8x32xf32>
    %216 = arith.mulf %211, %215 : vector<8x32xf32>
    %217 = vector.extract_strided_slice %51 {offsets = [32, 0], sizes = [8, 32], strides = [1, 1]} : vector<64x32xf32> to vector<8x32xf32>
    %c0_126 = arith.constant 0 : index
    %c0_127 = arith.constant 0 : index
    %218 = vector.load %arg19[%c0_126, %c0_127] : memref<32x32xf32, #tpu.memory_space<vmem>>, vector<32x32xf32>
    %cst_128 = arith.constant dense<0.000000e+00> : vector<8x32xf32>
    %219 = tpu.matmul %216, %218, %cst_128 {dimension_numbers = #tpu.dot_dimension_numbers<[1], [0], [0], [1], [0, 0, 1, 1], [], []>} : vector<8x32xf32>, vector<32x32xf32>, vector<8x32xf32> -> vector<8x32xf32>
    %220 = arith.addf %217, %219 : vector<8x32xf32>
    %221 = arith.negf %220 : vector<8x32xf32>
    %222 = math.exp %221 : vector<8x32xf32>
    %cst_129 = arith.constant 1.000000e+00 : f32
    %223 = vector.broadcast %cst_129 : f32 to vector<8x32xf32>
    %224 = arith.addf %223, %222 : vector<8x32xf32>
    %225 = arith.divf %223, %224 : vector<8x32xf32>
    %226 = vector.extract_strided_slice %56 {offsets = [32, 0], sizes = [8, 32], strides = [1, 1]} : vector<64x32xf32> to vector<8x32xf32>
    %c0_130 = arith.constant 0 : index
    %c0_131 = arith.constant 0 : index
    %227 = vector.load %arg20[%c0_130, %c0_131] : memref<32x32xf32, #tpu.memory_space<vmem>>, vector<32x32xf32>
    %cst_132 = arith.constant dense<0.000000e+00> : vector<8x32xf32>
    %228 = tpu.matmul %216, %227, %cst_132 {dimension_numbers = #tpu.dot_dimension_numbers<[1], [0], [0], [1], [0, 0, 1, 1], [], []>} : vector<8x32xf32>, vector<32x32xf32>, vector<8x32xf32> -> vector<8x32xf32>
    %229 = arith.addf %226, %228 : vector<8x32xf32>
    %230 = arith.negf %229 : vector<8x32xf32>
    %231 = math.exp %230 : vector<8x32xf32>
    %cst_133 = arith.constant 1.000000e+00 : f32
    %232 = vector.broadcast %cst_133 : f32 to vector<8x32xf32>
    %233 = arith.addf %232, %231 : vector<8x32xf32>
    %234 = arith.divf %232, %233 : vector<8x32xf32>
    %235 = vector.extract_strided_slice %61 {offsets = [32, 0], sizes = [8, 32], strides = [1, 1]} : vector<64x32xf32> to vector<8x32xf32>
    %c0_134 = arith.constant 0 : index
    %c0_135 = arith.constant 0 : index
    %236 = vector.load %arg21[%c0_134, %c0_135] : memref<32x32xf32, #tpu.memory_space<vmem>>, vector<32x32xf32>
    %cst_136 = arith.constant dense<0.000000e+00> : vector<8x32xf32>
    %237 = tpu.matmul %216, %236, %cst_136 {dimension_numbers = #tpu.dot_dimension_numbers<[1], [0], [0], [1], [0, 0, 1, 1], [], []>} : vector<8x32xf32>, vector<32x32xf32>, vector<8x32xf32> -> vector<8x32xf32>
    %238 = arith.addf %235, %237 : vector<8x32xf32>
    %239 = math.tanh %238 : vector<8x32xf32>
    %240 = vector.extract_strided_slice %66 {offsets = [32, 0], sizes = [8, 32], strides = [1, 1]} : vector<64x32xf32> to vector<8x32xf32>
    %c0_137 = arith.constant 0 : index
    %c0_138 = arith.constant 0 : index
    %241 = vector.load %arg22[%c0_137, %c0_138] : memref<32x32xf32, #tpu.memory_space<vmem>>, vector<32x32xf32>
    %cst_139 = arith.constant dense<0.000000e+00> : vector<8x32xf32>
    %242 = tpu.matmul %216, %241, %cst_139 {dimension_numbers = #tpu.dot_dimension_numbers<[1], [0], [0], [1], [0, 0, 1, 1], [], []>} : vector<8x32xf32>, vector<32x32xf32>, vector<8x32xf32> -> vector<8x32xf32>
    %243 = arith.addf %240, %242 : vector<8x32xf32>
    %244 = arith.negf %243 : vector<8x32xf32>
    %245 = math.exp %244 : vector<8x32xf32>
    %cst_140 = arith.constant 1.000000e+00 : f32
    %246 = vector.broadcast %cst_140 : f32 to vector<8x32xf32>
    %247 = arith.addf %246, %245 : vector<8x32xf32>
    %248 = arith.divf %246, %247 : vector<8x32xf32>
    %249 = arith.mulf %234, %214 : vector<8x32xf32>
    %250 = arith.mulf %225, %239 : vector<8x32xf32>
    %251 = arith.addf %249, %250 : vector<8x32xf32>
    %252 = math.tanh %251 : vector<8x32xf32>
    %253 = arith.mulf %248, %252 : vector<8x32xf32>
    %254 = vector.extract_strided_slice %51 {offsets = [40, 0], sizes = [8, 32], strides = [1, 1]} : vector<64x32xf32> to vector<8x32xf32>
    %c0_141 = arith.constant 0 : index
    %c0_142 = arith.constant 0 : index
    %255 = vector.load %arg19[%c0_141, %c0_142] : memref<32x32xf32, #tpu.memory_space<vmem>>, vector<32x32xf32>
    %cst_143 = arith.constant dense<0.000000e+00> : vector<8x32xf32>
    %256 = tpu.matmul %253, %255, %cst_143 {dimension_numbers = #tpu.dot_dimension_numbers<[1], [0], [0], [1], [0, 0, 1, 1], [], []>} : vector<8x32xf32>, vector<32x32xf32>, vector<8x32xf32> -> vector<8x32xf32>
    %257 = arith.addf %254, %256 : vector<8x32xf32>
    %258 = arith.negf %257 : vector<8x32xf32>
    %259 = math.exp %258 : vector<8x32xf32>
    %cst_144 = arith.constant 1.000000e+00 : f32
    %260 = vector.broadcast %cst_144 : f32 to vector<8x32xf32>
    %261 = arith.addf %260, %259 : vector<8x32xf32>
    %262 = arith.divf %260, %261 : vector<8x32xf32>
    %263 = vector.extract_strided_slice %56 {offsets = [40, 0], sizes = [8, 32], strides = [1, 1]} : vector<64x32xf32> to vector<8x32xf32>
    %c0_145 = arith.constant 0 : index
    %c0_146 = arith.constant 0 : index
    %264 = vector.load %arg20[%c0_145, %c0_146] : memref<32x32xf32, #tpu.memory_space<vmem>>, vector<32x32xf32>
    %cst_147 = arith.constant dense<0.000000e+00> : vector<8x32xf32>
    %265 = tpu.matmul %253, %264, %cst_147 {dimension_numbers = #tpu.dot_dimension_numbers<[1], [0], [0], [1], [0, 0, 1, 1], [], []>} : vector<8x32xf32>, vector<32x32xf32>, vector<8x32xf32> -> vector<8x32xf32>
    %266 = arith.addf %263, %265 : vector<8x32xf32>
    %267 = arith.negf %266 : vector<8x32xf32>
    %268 = math.exp %267 : vector<8x32xf32>
    %cst_148 = arith.constant 1.000000e+00 : f32
    %269 = vector.broadcast %cst_148 : f32 to vector<8x32xf32>
    %270 = arith.addf %269, %268 : vector<8x32xf32>
    %271 = arith.divf %269, %270 : vector<8x32xf32>
    %272 = vector.extract_strided_slice %61 {offsets = [40, 0], sizes = [8, 32], strides = [1, 1]} : vector<64x32xf32> to vector<8x32xf32>
    %c0_149 = arith.constant 0 : index
    %c0_150 = arith.constant 0 : index
    %273 = vector.load %arg21[%c0_149, %c0_150] : memref<32x32xf32, #tpu.memory_space<vmem>>, vector<32x32xf32>
    %cst_151 = arith.constant dense<0.000000e+00> : vector<8x32xf32>
    %274 = tpu.matmul %253, %273, %cst_151 {dimension_numbers = #tpu.dot_dimension_numbers<[1], [0], [0], [1], [0, 0, 1, 1], [], []>} : vector<8x32xf32>, vector<32x32xf32>, vector<8x32xf32> -> vector<8x32xf32>
    %275 = arith.addf %272, %274 : vector<8x32xf32>
    %276 = math.tanh %275 : vector<8x32xf32>
    %277 = vector.extract_strided_slice %66 {offsets = [40, 0], sizes = [8, 32], strides = [1, 1]} : vector<64x32xf32> to vector<8x32xf32>
    %c0_152 = arith.constant 0 : index
    %c0_153 = arith.constant 0 : index
    %278 = vector.load %arg22[%c0_152, %c0_153] : memref<32x32xf32, #tpu.memory_space<vmem>>, vector<32x32xf32>
    %cst_154 = arith.constant dense<0.000000e+00> : vector<8x32xf32>
    %279 = tpu.matmul %253, %278, %cst_154 {dimension_numbers = #tpu.dot_dimension_numbers<[1], [0], [0], [1], [0, 0, 1, 1], [], []>} : vector<8x32xf32>, vector<32x32xf32>, vector<8x32xf32> -> vector<8x32xf32>
    %280 = arith.addf %277, %279 : vector<8x32xf32>
    %281 = arith.negf %280 : vector<8x32xf32>
    %282 = math.exp %281 : vector<8x32xf32>
    %cst_155 = arith.constant 1.000000e+00 : f32
    %283 = vector.broadcast %cst_155 : f32 to vector<8x32xf32>
    %284 = arith.addf %283, %282 : vector<8x32xf32>
    %285 = arith.divf %283, %284 : vector<8x32xf32>
    %286 = arith.mulf %271, %251 : vector<8x32xf32>
    %287 = arith.mulf %262, %276 : vector<8x32xf32>
    %288 = arith.addf %286, %287 : vector<8x32xf32>
    %289 = math.tanh %288 : vector<8x32xf32>
    %290 = arith.mulf %285, %289 : vector<8x32xf32>
    %291 = vector.extract_strided_slice %51 {offsets = [48, 0], sizes = [8, 32], strides = [1, 1]} : vector<64x32xf32> to vector<8x32xf32>
    %c0_156 = arith.constant 0 : index
    %c0_157 = arith.constant 0 : index
    %292 = vector.load %arg19[%c0_156, %c0_157] : memref<32x32xf32, #tpu.memory_space<vmem>>, vector<32x32xf32>
    %cst_158 = arith.constant dense<0.000000e+00> : vector<8x32xf32>
    %293 = tpu.matmul %290, %292, %cst_158 {dimension_numbers = #tpu.dot_dimension_numbers<[1], [0], [0], [1], [0, 0, 1, 1], [], []>} : vector<8x32xf32>, vector<32x32xf32>, vector<8x32xf32> -> vector<8x32xf32>
    %294 = arith.addf %291, %293 : vector<8x32xf32>
    %295 = arith.negf %294 : vector<8x32xf32>
    %296 = math.exp %295 : vector<8x32xf32>
    %cst_159 = arith.constant 1.000000e+00 : f32
    %297 = vector.broadcast %cst_159 : f32 to vector<8x32xf32>
    %298 = arith.addf %297, %296 : vector<8x32xf32>
    %299 = arith.divf %297, %298 : vector<8x32xf32>
    %300 = vector.extract_strided_slice %56 {offsets = [48, 0], sizes = [8, 32], strides = [1, 1]} : vector<64x32xf32> to vector<8x32xf32>
    %c0_160 = arith.constant 0 : index
    %c0_161 = arith.constant 0 : index
    %301 = vector.load %arg20[%c0_160, %c0_161] : memref<32x32xf32, #tpu.memory_space<vmem>>, vector<32x32xf32>
    %cst_162 = arith.constant dense<0.000000e+00> : vector<8x32xf32>
    %302 = tpu.matmul %290, %301, %cst_162 {dimension_numbers = #tpu.dot_dimension_numbers<[1], [0], [0], [1], [0, 0, 1, 1], [], []>} : vector<8x32xf32>, vector<32x32xf32>, vector<8x32xf32> -> vector<8x32xf32>
    %303 = arith.addf %300, %302 : vector<8x32xf32>
    %304 = arith.negf %303 : vector<8x32xf32>
    %305 = math.exp %304 : vector<8x32xf32>
    %cst_163 = arith.constant 1.000000e+00 : f32
    %306 = vector.broadcast %cst_163 : f32 to vector<8x32xf32>
    %307 = arith.addf %306, %305 : vector<8x32xf32>
    %308 = arith.divf %306, %307 : vector<8x32xf32>
    %309 = vector.extract_strided_slice %61 {offsets = [48, 0], sizes = [8, 32], strides = [1, 1]} : vector<64x32xf32> to vector<8x32xf32>
    %c0_164 = arith.constant 0 : index
    %c0_165 = arith.constant 0 : index
    %310 = vector.load %arg21[%c0_164, %c0_165] : memref<32x32xf32, #tpu.memory_space<vmem>>, vector<32x32xf32>
    %cst_166 = arith.constant dense<0.000000e+00> : vector<8x32xf32>
    %311 = tpu.matmul %290, %310, %cst_166 {dimension_numbers = #tpu.dot_dimension_numbers<[1], [0], [0], [1], [0, 0, 1, 1], [], []>} : vector<8x32xf32>, vector<32x32xf32>, vector<8x32xf32> -> vector<8x32xf32>
    %312 = arith.addf %309, %311 : vector<8x32xf32>
    %313 = math.tanh %312 : vector<8x32xf32>
    %314 = vector.extract_strided_slice %66 {offsets = [48, 0], sizes = [8, 32], strides = [1, 1]} : vector<64x32xf32> to vector<8x32xf32>
    %c0_167 = arith.constant 0 : index
    %c0_168 = arith.constant 0 : index
    %315 = vector.load %arg22[%c0_167, %c0_168] : memref<32x32xf32, #tpu.memory_space<vmem>>, vector<32x32xf32>
    %cst_169 = arith.constant dense<0.000000e+00> : vector<8x32xf32>
    %316 = tpu.matmul %290, %315, %cst_169 {dimension_numbers = #tpu.dot_dimension_numbers<[1], [0], [0], [1], [0, 0, 1, 1], [], []>} : vector<8x32xf32>, vector<32x32xf32>, vector<8x32xf32> -> vector<8x32xf32>
    %317 = arith.addf %314, %316 : vector<8x32xf32>
    %318 = arith.negf %317 : vector<8x32xf32>
    %319 = math.exp %318 : vector<8x32xf32>
    %cst_170 = arith.constant 1.000000e+00 : f32
    %320 = vector.broadcast %cst_170 : f32 to vector<8x32xf32>
    %321 = arith.addf %320, %319 : vector<8x32xf32>
    %322 = arith.divf %320, %321 : vector<8x32xf32>
    %323 = arith.mulf %308, %288 : vector<8x32xf32>
    %324 = arith.mulf %299, %313 : vector<8x32xf32>
    %325 = arith.addf %323, %324 : vector<8x32xf32>
    %326 = math.tanh %325 : vector<8x32xf32>
    %327 = arith.mulf %322, %326 : vector<8x32xf32>
    %328 = vector.extract_strided_slice %51 {offsets = [56, 0], sizes = [8, 32], strides = [1, 1]} : vector<64x32xf32> to vector<8x32xf32>
    %c0_171 = arith.constant 0 : index
    %c0_172 = arith.constant 0 : index
    %329 = vector.load %arg19[%c0_171, %c0_172] : memref<32x32xf32, #tpu.memory_space<vmem>>, vector<32x32xf32>
    %cst_173 = arith.constant dense<0.000000e+00> : vector<8x32xf32>
    %330 = tpu.matmul %327, %329, %cst_173 {dimension_numbers = #tpu.dot_dimension_numbers<[1], [0], [0], [1], [0, 0, 1, 1], [], []>} : vector<8x32xf32>, vector<32x32xf32>, vector<8x32xf32> -> vector<8x32xf32>
    %331 = arith.addf %328, %330 : vector<8x32xf32>
    %332 = arith.negf %331 : vector<8x32xf32>
    %333 = math.exp %332 : vector<8x32xf32>
    %cst_174 = arith.constant 1.000000e+00 : f32
    %334 = vector.broadcast %cst_174 : f32 to vector<8x32xf32>
    %335 = arith.addf %334, %333 : vector<8x32xf32>
    %336 = arith.divf %334, %335 : vector<8x32xf32>
    %337 = vector.extract_strided_slice %56 {offsets = [56, 0], sizes = [8, 32], strides = [1, 1]} : vector<64x32xf32> to vector<8x32xf32>
    %c0_175 = arith.constant 0 : index
    %c0_176 = arith.constant 0 : index
    %338 = vector.load %arg20[%c0_175, %c0_176] : memref<32x32xf32, #tpu.memory_space<vmem>>, vector<32x32xf32>
    %cst_177 = arith.constant dense<0.000000e+00> : vector<8x32xf32>
    %339 = tpu.matmul %327, %338, %cst_177 {dimension_numbers = #tpu.dot_dimension_numbers<[1], [0], [0], [1], [0, 0, 1, 1], [], []>} : vector<8x32xf32>, vector<32x32xf32>, vector<8x32xf32> -> vector<8x32xf32>
    %340 = arith.addf %337, %339 : vector<8x32xf32>
    %341 = arith.negf %340 : vector<8x32xf32>
    %342 = math.exp %341 : vector<8x32xf32>
    %cst_178 = arith.constant 1.000000e+00 : f32
    %343 = vector.broadcast %cst_178 : f32 to vector<8x32xf32>
    %344 = arith.addf %343, %342 : vector<8x32xf32>
    %345 = arith.divf %343, %344 : vector<8x32xf32>
    %346 = vector.extract_strided_slice %61 {offsets = [56, 0], sizes = [8, 32], strides = [1, 1]} : vector<64x32xf32> to vector<8x32xf32>
    %c0_179 = arith.constant 0 : index
    %c0_180 = arith.constant 0 : index
    %347 = vector.load %arg21[%c0_179, %c0_180] : memref<32x32xf32, #tpu.memory_space<vmem>>, vector<32x32xf32>
    %cst_181 = arith.constant dense<0.000000e+00> : vector<8x32xf32>
    %348 = tpu.matmul %327, %347, %cst_181 {dimension_numbers = #tpu.dot_dimension_numbers<[1], [0], [0], [1], [0, 0, 1, 1], [], []>} : vector<8x32xf32>, vector<32x32xf32>, vector<8x32xf32> -> vector<8x32xf32>
    %349 = arith.addf %346, %348 : vector<8x32xf32>
    %350 = math.tanh %349 : vector<8x32xf32>
    %351 = vector.extract_strided_slice %66 {offsets = [56, 0], sizes = [8, 32], strides = [1, 1]} : vector<64x32xf32> to vector<8x32xf32>
    %c0_182 = arith.constant 0 : index
    %c0_183 = arith.constant 0 : index
    %352 = vector.load %arg22[%c0_182, %c0_183] : memref<32x32xf32, #tpu.memory_space<vmem>>, vector<32x32xf32>
    %cst_184 = arith.constant dense<0.000000e+00> : vector<8x32xf32>
    %353 = tpu.matmul %327, %352, %cst_184 {dimension_numbers = #tpu.dot_dimension_numbers<[1], [0], [0], [1], [0, 0, 1, 1], [], []>} : vector<8x32xf32>, vector<32x32xf32>, vector<8x32xf32> -> vector<8x32xf32>
    %354 = arith.addf %351, %353 : vector<8x32xf32>
    %355 = arith.negf %354 : vector<8x32xf32>
    %356 = math.exp %355 : vector<8x32xf32>
    %cst_185 = arith.constant 1.000000e+00 : f32
    %357 = vector.broadcast %cst_185 : f32 to vector<8x32xf32>
    %358 = arith.addf %357, %356 : vector<8x32xf32>
    %359 = arith.divf %357, %358 : vector<8x32xf32>
    %360 = arith.mulf %345, %325 : vector<8x32xf32>
    %361 = arith.mulf %336, %350 : vector<8x32xf32>
    %362 = arith.addf %360, %361 : vector<8x32xf32>
    %363 = math.tanh %362 : vector<8x32xf32>
    %364 = arith.mulf %359, %363 : vector<8x32xf32>
    %c0_186 = arith.constant 0 : index
    %c0_187 = arith.constant 0 : index
    %365 = vector.load %arg27[%c0_186, %c0_187] : memref<32x32xf32, #tpu.memory_space<vmem>>, vector<32x32xf32>
    %cst_188 = arith.constant dense<0.000000e+00> : vector<8x32xf32>
    %366 = tpu.matmul %364, %365, %cst_188 {dimension_numbers = #tpu.dot_dimension_numbers<[1], [0], [0], [1], [0, 0, 1, 1], [], []>} : vector<8x32xf32>, vector<32x32xf32>, vector<8x32xf32> -> vector<8x32xf32>
    %c0_189 = arith.constant 0 : index
    %c0_190 = arith.constant 0 : index
    %367 = vector.load %arg28[%c0_189, %c0_190] : memref<1x32xf32, #tpu.memory_space<vmem>>, vector<1x32xf32>
    %368 = vector.broadcast %367 : vector<1x32xf32> to vector<8x32xf32>
    %369 = arith.addf %366, %368 : vector<8x32xf32>
    %c0_191 = arith.constant 0 : index
    %c0_192 = arith.constant 0 : index
    %370 = vector.load %arg37[%c0_191, %c0_192] : memref<8x32xf32, #tpu.memory_space<vmem>>, vector<8x32xf32>
    tpu.vector_store %arg37[%c0_191, %c0_192], %369 {strides = array<i32>} : memref<8x32xf32, #tpu.memory_space<vmem>>, vector<8x32xf32>,
    %371 = tpu.concatenate %21, %44, %369 in 1 : vector<8x16xf32>, vector<8x16xf32>, vector<8x32xf32> -> vector<8x64xf32>
    %c0_193 = arith.constant 0 : index
    %c0_194 = arith.constant 0 : index
    %372 = vector.load %arg38[%c0_193, %c0_194] : memref<8x64xf32, #tpu.memory_space<vmem>>, vector<8x64xf32>
    tpu.vector_store %arg38[%c0_193, %c0_194], %371 {strides = array<i32>} : memref<8x64xf32, #tpu.memory_space<vmem>>, vector<8x64xf32>,
    %c0_195 = arith.constant 0 : index
    %c0_196 = arith.constant 0 : index
    %373 = vector.load %arg29[%c0_195, %c0_196] : memref<64x32xf32, #tpu.memory_space<vmem>>, vector<64x32xf32>
    %cst_197 = arith.constant dense<0.000000e+00> : vector<8x32xf32>
    %374 = tpu.matmul %371, %373, %cst_197 {dimension_numbers = #tpu.dot_dimension_numbers<[1], [0], [0], [1], [0, 0, 1, 1], [], []>} : vector<8x64xf32>, vector<64x32xf32>, vector<8x32xf32> -> vector<8x32xf32>
    %c0_198 = arith.constant 0 : index
    %c0_199 = arith.constant 0 : index
    %375 = vector.load %arg30[%c0_198, %c0_199] : memref<1x32xf32, #tpu.memory_space<vmem>>, vector<1x32xf32>
    %376 = vector.broadcast %375 : vector<1x32xf32> to vector<8x32xf32>
    %377 = arith.addf %374, %376 : vector<8x32xf32>
    %cst_200 = arith.constant 0.000000e+00 : f32
    %378 = vector.broadcast %cst_200 : f32 to vector<8x32xf32>
    %379 = arith.maximumf %377, %378 : vector<8x32xf32>
    %c0_201 = arith.constant 0 : index
    %c0_202 = arith.constant 0 : index
    %380 = vector.load %arg31[%c0_201, %c0_202] : memref<32x32xf32, #tpu.memory_space<vmem>>, vector<32x32xf32>
    %cst_203 = arith.constant dense<0.000000e+00> : vector<8x32xf32>
    %381 = tpu.matmul %379, %380, %cst_203 {dimension_numbers = #tpu.dot_dimension_numbers<[1], [0], [0], [1], [0, 0, 1, 1], [], []>} : vector<8x32xf32>, vector<32x32xf32>, vector<8x32xf32> -> vector<8x32xf32>
    %c0_204 = arith.constant 0 : index
    %c0_205 = arith.constant 0 : index
    %382 = vector.load %arg32[%c0_204, %c0_205] : memref<1x32xf32, #tpu.memory_space<vmem>>, vector<1x32xf32>
    %383 = vector.broadcast %382 : vector<1x32xf32> to vector<8x32xf32>
    %384 = arith.addf %381, %383 : vector<8x32xf32>
    %cst_206 = arith.constant 0.000000e+00 : f32
    %385 = vector.broadcast %cst_206 : f32 to vector<8x32xf32>
    %386 = arith.maximumf %384, %385 : vector<8x32xf32>
    %c0_207 = arith.constant 0 : index
    %c0_208 = arith.constant 0 : index
    %387 = vector.load %arg33[%c0_207, %c0_208] : memref<32x1xf32, #tpu.memory_space<vmem>>, vector<32x1xf32>
    %cst_209 = arith.constant dense<0.000000e+00> : vector<8x1xf32>
    %388 = tpu.matmul %386, %387, %cst_209 {dimension_numbers = #tpu.dot_dimension_numbers<[1], [0], [0], [1], [0, 0, 1, 1], [], []>} : vector<8x32xf32>, vector<32x1xf32>, vector<8x1xf32> -> vector<8x1xf32>
    %c0_210 = arith.constant 0 : index
    %c0_211 = arith.constant 0 : index
    %389 = vector.load %arg34[%c0_210, %c0_211] : memref<1x1xf32, #tpu.memory_space<vmem>>, vector<1x1xf32>
    %390 = vector.broadcast %389 : vector<1x1xf32> to vector<8x1xf32>
    %391 = arith.addf %388, %390 : vector<8x1xf32>
    %c0_212 = arith.constant 0 : index
    %c0_213 = arith.constant 0 : index
    %392 = vector.load %arg39[%c0_212, %c0_213] : memref<8x1xf32, #tpu.memory_space<vmem>>, vector<8x1xf32>
    tpu.vector_store %arg39[%c0_212, %c0_213], %391 {strides = array<i32>} : memref<8x1xf32, #tpu.memory_space<vmem>>, vector<8x1xf32>,
    return
  }
}

</mosaic_0001>

<bundles_post_ra>
// kernel: lf_dnn_forward.1
= control target key start
LH: loop header
LB: loop body
LE: loop exit
PB: predicated region body
PF: predicated region fallthrough
CT: control target
= control target key end

     0   :  { %s6097_s6 = smov 1   ;;  %s6098_s10 = smov 2   ;;  %s6998_s0 = inlined_call_operand.smem [shape: u32[40], index: -1, kind: input, shape index: {}] }
   0x1   :  { %s6170_s5 = sld [smem:[%s6998_s0]]   ;;  %s6099_s14 = smov 3  }
   0x2   :  { %s6175_s9 = sld [smem:[%s6998_s0 + %s6097_s6]]   ;;  %s6100_s18 = smov 4  }
   0x3   :  { %s6180_s13 = sld [smem:[%s6998_s0 + %s6098_s10]]   ;;  %s6101_s22 = smov 5  }
   0x4   :  { %s6185_s17 = sld [smem:[%s6998_s0 + %s6099_s14]]   ;;  %s6102_s26 = smov 6  }
   0x5   :  { %s6190_s21 = sld [smem:[%s6998_s0 + %s6100_s18]]   ;;  %s6103_s30 = smov 7  }
   0x6   :  { %s6195_s25 = sld [smem:[%s6998_s0 + %s6101_s22]]   ;;  %s6104_s4 = smov 8  }
   0x7   :  { %s6200_s29 = sld [smem:[%s6998_s0 + %s6102_s26]]   ;;  %s6105_s10 = smov 9  }
   0x8   :  { %s6205_s3 = sld [smem:[%s6998_s0 + %s6103_s30]]   ;;  %s6106_s15 = smov 10  }
   0x9   :  { %7017 = sst [smem:[#allocation44_spill]] %s6180_s13  ;;  %s6107_s20 = smov 11  }
   0xa   :  { %s6210_s8 = sld [smem:[%s6998_s0 + %s6104_s4]]   ;;  %s6108_s26 = smov 12  }
   0xb   :  { %7018 = sst [smem:[#allocation45_spill]] %s6190_s21  ;;  %s6109_s1 = smov 13  }
   0xc   :  { %s6215_s14 = sld [smem:[%s6998_s0 + %s6105_s10]]   ;;  %s6110_s7 = smov 14  }
   0xd   :  { %s6220_s19 = sld [smem:[%s6998_s0 + %s6106_s15]]   ;;  %s6111_s15 = smov 15  }
   0xe   :  { %s6225_s24 = sld [smem:[%s6998_s0 + %s6107_s20]]   ;;  %s6112_s22 = smov 16  }
   0xf   :  { %s6230_s30 = sld [smem:[%s6998_s0 + %s6108_s26]]   ;;  %s6113_s28 = smov 17  }
  0x10   :  { %s6235_s6 = sld [smem:[%s6998_s0 + %s6109_s1]]   ;;  %s6131_s16 = smov 35  }
  0x11   :  { %s6240_s12 = sld [smem:[%s6998_s0 + %s6110_s7]]   ;;  %s6114_s7 = smov 18  }
  0x12   :  { %7019 = sst [smem:[#allocation46_spill]] %s6215_s14  ;;  %s6132_s23 = smov 36  }
  0x13   :  { %7020 = sst [smem:[#allocation47_spill]] %s6220_s19  ;;  %s6133_s1 = smov 37  }
  0x14   :  { %7021 = sst [smem:[#allocation48_spill]] %s6225_s24  ;;  %s6134_s10 = smov 38  }
  0x15   :  { %7022 = sst [smem:[#allocation49_spill]] %s6230_s30 }
  0x16   :  { %7023 = sst [smem:[#allocation50_spill]] %s6235_s6 }
  0x17   :  { %7024 = sst [smem:[#allocation51_spill]] %s6240_s12 }
  0x18   :  { %s6245_s20 = sld [smem:[%s6998_s0 + %s6111_s15]]   ;;  %s6115_s15 = smov 19  }
  0x19   :  { %s6250_s27 = sld [smem:[%s6998_s0 + %s6112_s22]]   ;;  %s6116_s22 = smov 20  }
  0x1a   :  { %s6255_s4 = sld [smem:[%s6998_s0 + %s6113_s28]]   ;;  %s6117_s28 = smov 21  }
  0x1b   :  { %s6260_s12 = sld [smem:[%s6998_s0 + %s6114_s7]]   ;;  %s6118_s7 = smov 22  }
  0x1c   :  { %s6265_s30 = sld [smem:[%s6998_s0 + %s6115_s15]]   ;;  %s6119_s15 = smov 23  }
  0x1d   :  { %s6275_s6 = sld [smem:[%s6998_s0 + %s6117_s28]]   ;;  %s6121_s28 = smov 25  }
  0x1e   :  { %7025 = sst [smem:[#allocation52_spill]] %s6245_s20 }
  0x1f   :  { %7026 = sst [smem:[#allocation53_spill]] %s6250_s27 }
  0x20   :  { %7027 = sst [smem:[#allocation54_spill]] %s6255_s4 }
  0x21   :  { %7028 = sst [smem:[#allocation55_spill]] %s6260_s12 }
  0x22   :  { %7029 = sst [smem:[#allocation56_spill]] %s6265_s30 }
  0x23   :  { %s6270_s27 = sld [smem:[%s6998_s0 + %s6116_s22]]   ;;  %s6120_s22 = smov 24  }
  0x24   :  { %7031 = sst [smem:[#allocation58_spill]] %s6275_s6 }
  0x25   :  { %s6280_s12 = sld [smem:[%s6998_s0 + %s6118_s7]]   ;;  %s6122_s7 = smov 26  }
  0x26   :  { %s6285_s30 = sld [smem:[%s6998_s0 + %s6119_s15]]   ;;  %s6123_s15 = smov 27  }
  0x27   :  { %s6295_s6 = sld [smem:[%s6998_s0 + %s6121_s28]]   ;;  %s6125_s28 = smov 29  }
  0x28   :  { %s6305_s4 = sld [smem:[%s6998_s0 + %s6123_s15]]   ;;  %s6127_s15 = smov 31  }
  0x29   :  { %7030 = sst [smem:[#allocation57_spill]] %s6270_s27 }
  0x2a   :  { %s6290_s27 = sld [smem:[%s6998_s0 + %s6120_s22]]   ;;  %s6124_s22 = smov 28  }
  0x2b   :  { %7032 = sst [smem:[#allocation59_spill]] %s6280_s12 }
  0x2c   :  { %s6300_s12 = sld [smem:[%s6998_s0 + %s6122_s7]]   ;;  %s6126_s7 = smov 30  }
  0x2d   :  { %s6310_s13 = sld [smem:[%s6998_s0 + %s6124_s22]]   ;;  %s6128_s22 = smov 32  }
  0x2e   :  { %7033 = sst [smem:[#allocation60_spill]] %s6305_s4 }
  0x2f   :  { %s6315_s19 = sld [smem:[%s6998_s0 + %s6125_s28]]   ;;  %s6129_s28 = smov 33  }
  0x30   :  { %s6320_s20 = sld [smem:[%s6998_s0 + %s6126_s7]]   ;;  %s6130_s7 = smov 34  }
  0x31   :  { %s6325_s4 = sld [smem:[%s6998_s0 + %s6127_s15]]  }
  0x32   :  { %s6330_s24 = sld [smem:[%s6998_s0 + %s6128_s22]]  }
  0x33   :  { %s4302_s14 = sld [smem:[%s6998_s0 + %s6130_s7]]  }
  0x34   :  { %s6343_s21 = sld [smem:[%s6998_s0 + %s6131_s16]]   ;;  %s6135_s16 = smov 39  }
  0x35   :  { %7034 = sst [smem:[#allocation61_spill]] %s6315_s19 }
  0x36   :  { %7035 = sst [smem:[#allocation62_spill]] %s6320_s20 }
  0x37   :  { %s6335_s19 = sld [smem:[%s6998_s0 + %s6129_s28]]  }
  0x38   :  { %7036 = sst [smem:[#allocation63_spill]] %s6330_s24 }
  0x39   :  { %s6348_s24 = sld [smem:[%s6998_s0 + %s6132_s23]]   ;;  %v85_v0 = vstv %s4302_s14 }
  0x3a   :  { %7038 = sst [smem:[#allocation65_spill]] %s6343_s21  ;;  %86 = vst [vmem:[#allocation2] sm:$0x1] %v85_v0 }
  0x3b   :  { %s6358_s20 = sld [smem:[%s6998_s0 + %s6134_s10]]  }
  0x3c   :  { %s6363_s21 = sld [smem:[%s6998_s0 + %s6135_s16]]  }
  0x3d   :  { %7037 = sst [smem:[#allocation64_spill]] %s6335_s19 }
  0x3e   :  { %s6353_s19 = sld [smem:[%s6998_s0 + %s6133_s1]]  }
  0x3f   :  { %87 = vsyncpa [#allocation4], 0 }
  0x40   :  { %88 = vsyncpa [#allocation7], 0 }
  0x41   :  { %89 = vsyncpa [#allocation10], 0 }
  0x42   :  { %90 = vsyncpa [#allocation13], 0 }
  0x43   :  { %91 = vsyncpa [#allocation16], 0 }
  0x44   :  { %92 = vsyncpa [#allocation19], 0 }
  0x45   :  { %93 = vsyncpa [#allocation22], 0 }
  0x46   :  { %94 = vsyncpa [#allocation25], 0 }
  0x47   :  { %95 = vsyncpa [#allocation5], 0 }
  0x48   :  { %96 = vsyncpa [#allocation29], 0 }
  0x49   :  { %97 = vsyncpa [#allocation32], 0  ;;  %s6136_s23 = smov [#allocation6]   ;;  %s5657_s0 = scalar_lea.hbm %s6175_s9, 128 }
  0x4a   :  { %s114_s22 = sshll.u32 %s6136_s23, 4  ;;  %p5658_p0 = scmp.ne.s32.totalorder %s6175_s9, %s5657_s0  ;;  %s115_s22 = int_to_ptr.vmem [resolvable:$true] %s114_s22 }
  0x4b   :  { %p5661_p1 = scmp.lt.u32.totalorder %s5657_s0, %s6175_s9 }
  0x4d   :  { %p5663_p2 = pnand %p5661_p1, %p5658_p0 }
  0x4f   :  { %5666 = shalt.err (!%p5663_p2)
}
  0x50   :  { %s5667_s14 = scalar_lea.vmem %s115_s22, 128  ;;  %p5672_p4 = scmp.lt.s32.totalorder %s115_s22, %s115_s22 }
  0x51   :  { %p5668_p3 = scmp.ne.s32.totalorder %s115_s22, %s5667_s14  ;;  %p5673_p5 = scmp.lt.s32.totalorder %s5667_s14, %s5667_s14 }
  0x53   :  { %p5674_p6 = por %p5673_p5, %p5672_p4 }
  0x55   :  { %p5675_p7 = pnand %p5674_p6, %p5668_p3 }
  0x57   :  { %5678 = shalt.err (!%p5675_p7)
}
  0x58   :  { %117 = dma.hbm_to_vmem [thread:$0]  %s6175_s9, 128, %s115_s22, [#allocation7]  }
  0x59   :  { %s6137_s26 = smov [#allocation9]   ;;  %s6138_s28 = smov [#allocation12]  }
  0x5a   :  { %s139_s1 = sshll.u32 %s6137_s26, 4  ;;  %s161_s2 = sshll.u32 %s6138_s28, 4  ;;  %s140_s1 = int_to_ptr.vmem [resolvable:$true] %s139_s1  ;;  %s162_s2 = int_to_ptr.vmem [resolvable:$true] %s161_s2 }
  0x5b   :  { %s5679_s10 = scalar_lea.hbm %s6195_s25, 256 }
  0x5c   :  { %p5680_p8 = scmp.ne.s32.totalorder %s6195_s25, %s5679_s10  ;;  %p5683_p9 = scmp.lt.u32.totalorder %s5679_s10, %s6195_s25 }
  0x5e   :  { %p5685_p10 = pnand %p5683_p9, %p5680_p8 }
  0x60   :  { %5688 = shalt.err (!%p5685_p10)
}
  0x61   :  { %s5689_s7 = scalar_lea.vmem %s140_s1, 256  ;;  %p5694_p12 = scmp.lt.s32.totalorder %s140_s1, %s140_s1 }
  0x62   :  { %p5690_p11 = scmp.ne.s32.totalorder %s140_s1, %s5689_s7  ;;  %p5695_p13 = scmp.lt.s32.totalorder %s5689_s7, %s5689_s7 }
  0x64   :  { %p5696_p0 = por %p5695_p13, %p5694_p12 }
  0x66   :  { %p5697_p1 = pnand %p5696_p0, %p5690_p11 }
  0x68   :  { %5700 = shalt.err (!%p5697_p1)
}
  0x69   :  { %s6139_s11 = smov 128   ;;  %s6140_s9 = smov 8  }
  0x6a   :  { %145 = dma.hbm_to_vmem [thread:$0]  %s6195_s25, 256, %s140_s1, [#allocation10], %s6139_s11, %s6139_s11, %s6140_s9  }
  0x6b   :  { %s5701_s16 = scalar_lea.hbm %s6205_s3, 256 }
  0x6c   :  { %p5702_p2 = scmp.ne.s32.totalorder %s6205_s3, %s5701_s16  ;;  %p5705_p3 = scmp.lt.u32.totalorder %s5701_s16, %s6205_s3 }
  0x6e   :  { %p5707_p4 = pnand %p5705_p3, %p5702_p2 }
  0x70   :  { %5710 = shalt.err (!%p5707_p4)
}
  0x71   :  { %s5711_s15 = scalar_lea.vmem %s162_s2, 256  ;;  %p5716_p6 = scmp.lt.s32.totalorder %s162_s2, %s162_s2 }
  0x72   :  { %p5712_p5 = scmp.ne.s32.totalorder %s162_s2, %s5711_s15  ;;  %p5717_p7 = scmp.lt.s32.totalorder %s5711_s15, %s5711_s15 }
  0x74   :  { %p5718_p8 = por %p5717_p7, %p5716_p6 }
  0x76   :  { %p5719_p9 = pnand %p5718_p8, %p5712_p5 }
  0x78   :  { %5722 = shalt.err (!%p5719_p9)
}
  0x79   :  { %167 = dma.hbm_to_vmem [thread:$0]  %s6205_s3, 256, %s162_s2, [#allocation13], %s6139_s11, %s6139_s11, %s6140_s9  }
  0x7a   :  { %s6141_s25 = smov [#allocation15]   ;;  %s6142_s23 = smov [#allocation18]  }
  0x7b   :  { %s212_s18 = sshll.u32 %s6141_s25, 4  ;;  %s232_s22 = sshll.u32 %s6142_s23, 4  ;;  %s213_s18 = int_to_ptr.vmem [resolvable:$true] %s212_s18  ;;  %s233_s22 = int_to_ptr.vmem [resolvable:$true] %s232_s22 }
  0x7c   :  { %s5723_s0 = scalar_lea.hbm %s6285_s30, 16 }
  0x7d   :  { %p5724_p10 = scmp.ne.s32.totalorder %s6285_s30, %s5723_s0  ;;  %p5727_p11 = scmp.lt.u32.totalorder %s5723_s0, %s6285_s30 }
  0x7f   :  { %p5729_p12 = pnand %p5727_p11, %p5724_p10 }
  0x81   :  { %5732 = shalt.err (!%p5729_p12)
}
  0x82   :  { %s5733_s14 = scalar_lea.vmem %s213_s18, 16  ;;  %s5737_s26 = scalar_lea.vmem %s213_s18, 32 }
  0x83   :  { %p5734_p13 = scmp.ne.s32.totalorder %s213_s18, %s5733_s14  ;;  %p5738_p0 = scmp.lt.s32.totalorder %s213_s18, %s213_s18 }
  0x84   :  { %p5739_p1 = scmp.lt.s32.totalorder %s5737_s26, %s5733_s14 }
  0x86   :  { %p5740_p2 = por %p5739_p1, %p5738_p0 }
  0x88   :  { %p5741_p3 = pnand %p5740_p2, %p5734_p13 }
  0x8a   :  { %5744 = shalt.err (!%p5741_p3)
}
  0x8b   :  { %215 = dma.hbm_to_vmem [thread:$0]  %s6285_s30, 16, %s213_s18, [#allocation16]  }
  0x8c   :  { %s5745_s3 = scalar_lea.hbm %s6295_s6, 16 }
  0x8d   :  { %p5746_p4 = scmp.ne.s32.totalorder %s6295_s6, %s5745_s3  ;;  %p5749_p5 = scmp.lt.u32.totalorder %s5745_s3, %s6295_s6 }
  0x8f   :  { %p5751_p6 = pnand %p5749_p5, %p5746_p4 }
  0x91   :  { %5754 = shalt.err (!%p5751_p6)
}
  0x92   :  { %s5755_s1 = scalar_lea.vmem %s233_s22, 16  ;;  %s5759_s28 = scalar_lea.vmem %s233_s22, 32 }
  0x93   :  { %p5756_p7 = scmp.ne.s32.totalorder %s233_s22, %s5755_s1  ;;  %p5760_p8 = scmp.lt.s32.totalorder %s233_s22, %s233_s22 }
  0x94   :  { %p5761_p9 = scmp.lt.s32.totalorder %s5759_s28, %s5755_s1 }
  0x96   :  { %p5762_p10 = por %p5761_p9, %p5760_p8 }
  0x98   :  { %p5763_p11 = pnand %p5762_p10, %p5756_p7 }
  0x9a   :  { %5766 = shalt.err (!%p5763_p11)
}
  0x9b   :  { %235 = dma.hbm_to_vmem [thread:$0]  %s6295_s6, 16, %s233_s22, [#allocation19]  }
  0x9c   :  { %s6143_s30 = smov [#allocation21]   ;;  %s6144_s10 = smov [#allocation24]  }
  0x9d   :  { %s254_s2 = sshll.u32 %s6143_s30, 4  ;;  %s275_s7 = sshll.u32 %s6144_s10, 4  ;;  %s255_s2 = int_to_ptr.vmem [resolvable:$true] %s254_s2  ;;  %s276_s7 = int_to_ptr.vmem [resolvable:$true] %s275_s7 }
  0x9e   :  { %s5767_s16 = scalar_lea.hbm %s6310_s13, 16 }
  0x9f   :  { %p5768_p12 = scmp.ne.s32.totalorder %s6310_s13, %s5767_s16  ;;  %p5771_p13 = scmp.lt.u32.totalorder %s5767_s16, %s6310_s13 }
  0xa1   :  { %p5773_p0 = pnand %p5771_p13, %p5768_p12 }
  0xa3   :  { %5776 = shalt.err (!%p5773_p0)
}
  0xa4   :  { %s5777_s15 = scalar_lea.vmem %s255_s2, 16  ;;  %s5781_s25 = scalar_lea.vmem %s255_s2, 32 }
  0xa5   :  { %p5778_p1 = scmp.ne.s32.totalorder %s255_s2, %s5777_s15  ;;  %p5782_p2 = scmp.lt.s32.totalorder %s255_s2, %s255_s2 }
  0xa6   :  { %p5783_p3 = scmp.lt.s32.totalorder %s5781_s25, %s5777_s15 }
  0xa8   :  { %p5784_p4 = por %p5783_p3, %p5782_p2 }
  0xaa   :  { %p5785_p5 = pnand %p5784_p4, %p5778_p1 }
  0xac   :  { %5788 = shalt.err (!%p5785_p5)
}
  0xad   :  { %257 = dma.hbm_to_vmem [thread:$0]  %s6310_s13, 16, %s255_s2, [#allocation22]  }
  0xae   :  { %s5789_s6 = scalar_lea.hbm %s6325_s4, 512 }
  0xaf   :  { %p5790_p6 = scmp.ne.s32.totalorder %s6325_s4, %s5789_s6  ;;  %p5793_p7 = scmp.lt.u32.totalorder %s5789_s6, %s6325_s4 }
  0xb1   :  { %p5795_p8 = pnand %p5793_p7, %p5790_p6 }
  0xb3   :  { %5798 = shalt.err (!%p5795_p8)
}
  0xb4   :  { %s5799_s18 = scalar_lea.vmem %s276_s7, 512  ;;  %p5804_p10 = scmp.lt.s32.totalorder %s276_s7, %s276_s7 }
  0xb5   :  { %p5800_p9 = scmp.ne.s32.totalorder %s276_s7, %s5799_s18  ;;  %p5805_p11 = scmp.lt.s32.totalorder %s5799_s18, %s5799_s18 }
  0xb7   :  { %p5806_p12 = por %p5805_p11, %p5804_p10 }
  0xb9   :  { %p5807_p13 = pnand %p5806_p12, %p5800_p9 }
  0xbb   :  { %5810 = shalt.err (!%p5807_p13)
}
  0xbc   :  { %281 = dma.hbm_to_vmem [thread:$0]  %s6325_s4, 512, %s276_s7, [#allocation25], %s6139_s11, %s6139_s11, %s6140_s9  }
  0xbd   :  { %s6145_s13 = smov [#allocation3]   ;;  %s6146_s22 = smov [#allocation8]  }
  0xbe   :  { %s104_s23 = sshll.u32 %s6145_s13, 4  ;;  %s125_s0 = sshll.u32 %s6146_s22, 4  ;;  %s105_s23 = int_to_ptr.vmem [resolvable:$true] %s104_s23  ;;  %s126_s0 = int_to_ptr.vmem [resolvable:$true] %s125_s0 }
  0xbf   :  { %s5811_s14 = scalar_lea.hbm %s6170_s5, 128 }
  0xc0   :  { %p5812_p0 = scmp.ne.s32.totalorder %s6170_s5, %s5811_s14  ;;  %p5815_p1 = scmp.lt.u32.totalorder %s5811_s14, %s6170_s5 }
  0xc2   :  { %p5817_p2 = pnand %p5815_p1, %p5812_p0 }
  0xc4   :  { %5820 = shalt.err (!%p5817_p2)
}
  0xc5   :  { %s5821_s26 = scalar_lea.vmem %s105_s23, 128  ;;  %p5826_p4 = scmp.lt.s32.totalorder %s105_s23, %s105_s23 }
  0xc6   :  { %p5822_p3 = scmp.ne.s32.totalorder %s105_s23, %s5821_s26  ;;  %p5827_p5 = scmp.lt.s32.totalorder %s5821_s26, %s5821_s26 }
  0xc8   :  { %p5828_p6 = por %p5827_p5, %p5826_p4 }
  0xca   :  { %p5829_p7 = pnand %p5828_p6, %p5822_p3 }
  0xcc   :  { %5832 = shalt.err (!%p5829_p7)
}
  0xcd   :  { %107 = dma.hbm_to_vmem [thread:$0]  %s6170_s5, 128, %s105_s23, [#allocation4]  }
  0xce   :  { %s5833_s4 = scalar_lea.hbm %s6185_s17, 256 }
  0xcf   :  { %p5834_p8 = scmp.ne.s32.totalorder %s6185_s17, %s5833_s4  ;;  %p5837_p9 = scmp.lt.u32.totalorder %s5833_s4, %s6185_s17 }
  0xd1   :  { %p5839_p10 = pnand %p5837_p9, %p5834_p8 }
  0xd3   :  { %5842 = shalt.err (!%p5839_p10)
}
  0xd4   :  { %s5843_s3 = scalar_lea.vmem %s126_s0, 256  ;;  %p5848_p12 = scmp.lt.s32.totalorder %s126_s0, %s126_s0 }
  0xd5   :  { %p5844_p11 = scmp.ne.s32.totalorder %s126_s0, %s5843_s3  ;;  %p5849_p13 = scmp.lt.s32.totalorder %s5843_s3, %s5843_s3 }
  0xd7   :  { %p5850_p0 = por %p5849_p13, %p5848_p12 }
  0xd9   :  { %p5851_p1 = pnand %p5850_p0, %p5844_p11 }
  0xdb   :  { %5854 = shalt.err (!%p5851_p1)
}
  0xdc   :  { %131 = dma.hbm_to_vmem [thread:$0]  %s6185_s17, 256, %s126_s0, [#allocation7], %s6139_s11, %s6139_s11, %s6140_s9  }
  0xdd   :  { %s6147_s5 = smov [#allocation11]   ;;  %s6148_s28 = smov [#allocation14]  }
  0xde   :  { %s152_s1 = sshll.u32 %s6147_s5, 4  ;;  %s174_s30 = sshll.u32 %s6148_s28, 4  ;;  %s153_s1 = int_to_ptr.vmem [resolvable:$true] %s152_s1  ;;  %s175_s30 = int_to_ptr.vmem [resolvable:$true] %s174_s30 }
  0xdf   :  { %s5855_s2 = scalar_lea.hbm %s6200_s29, 16 }
  0xe0   :  { %p5856_p2 = scmp.ne.s32.totalorder %s6200_s29, %s5855_s2  ;;  %p5859_p3 = scmp.lt.u32.totalorder %s5855_s2, %s6200_s29 }
  0xe2   :  { %p5861_p4 = pnand %p5859_p3, %p5856_p2 }
  0xe4   :  { %5864 = shalt.err (!%p5861_p4)
}
  0xe5   :  { %s5865_s10 = scalar_lea.vmem %s153_s1, 16  ;;  %s5869_s7 = scalar_lea.vmem %s153_s1, 32 }
  0xe6   :  { %p5866_p5 = scmp.ne.s32.totalorder %s153_s1, %s5865_s10  ;;  %p5870_p6 = scmp.lt.s32.totalorder %s153_s1, %s153_s1 }
  0xe7   :  { %p5871_p7 = scmp.lt.s32.totalorder %s5869_s7, %s5865_s10 }
  0xe9   :  { %p5872_p8 = por %p5871_p7, %p5870_p6 }
  0xeb   :  { %p5873_p9 = pnand %p5872_p8, %p5866_p5 }
  0xed   :  { %5876 = shalt.err (!%p5873_p9)
}
  0xee   :  { %155 = dma.hbm_to_vmem [thread:$0]  %s6200_s29, 16, %s153_s1, [#allocation10]  }
  0xef   :  { %s5877_s17 = scalar_lea.hbm %s6210_s8, 16 }
  0xf0   :  { %p5878_p10 = scmp.ne.s32.totalorder %s6210_s8, %s5877_s17  ;;  %p5881_p11 = scmp.lt.u32.totalorder %s5877_s17, %s6210_s8 }
  0xf2   :  { %p5883_p12 = pnand %p5881_p11, %p5878_p10 }
  0xf4   :  { %5886 = shalt.err (!%p5883_p12)
}
  0xf5   :  { %s5887_s11 = scalar_lea.vmem %s175_s30, 16  ;;  %s5891_s9 = scalar_lea.vmem %s175_s30, 32 }
  0xf6   :  { %p5888_p13 = scmp.ne.s32.totalorder %s175_s30, %s5887_s11  ;;  %p5892_p0 = scmp.lt.s32.totalorder %s175_s30, %s175_s30 }
  0xf7   :  { %p5893_p1 = scmp.lt.s32.totalorder %s5891_s9, %s5887_s11 }
  0xf9   :  { %p5894_p2 = por %p5893_p1, %p5892_p0 }
  0xfb   :  { %p5895_p3 = pnand %p5894_p2, %p5888_p13 }
  0xfd   :  { %5898 = shalt.err (!%p5895_p3)
}
  0xfe   :  { %177 = dma.hbm_to_vmem [thread:$0]  %s6210_s8, 16, %s175_s30, [#allocation13]  }
  0xff   :  { %s6149_s29 = smov [#allocation17]   ;;  %s6150_s15 = smov [#allocation20]  }
 0x100   :  { %s222_s16 = sshll.u32 %s6149_s29, 4  ;;  %s242_s25 = sshll.u32 %s6150_s15, 4  ;;  %s223_s16 = int_to_ptr.vmem [resolvable:$true] %s222_s16  ;;  %s243_s25 = int_to_ptr.vmem [resolvable:$true] %s242_s25 }
 0x101   :  { %s5899_s6 = scalar_lea.hbm %s6290_s27, 16 }
 0x102   :  { %p5900_p4 = scmp.ne.s32.totalorder %s6290_s27, %s5899_s6  ;;  %p5903_p5 = scmp.lt.u32.totalorder %s5899_s6, %s6290_s27 }
 0x104   :  { %p5905_p6 = pnand %p5903_p5, %p5900_p4 }
 0x106   :  { %5908 = shalt.err (!%p5905_p6)
}
 0x107   :  { %s5909_s18 = scalar_lea.vmem %s223_s16, 16  ;;  %s5913_s13 = scalar_lea.vmem %s223_s16, 32 }
 0x108   :  { %p5910_p7 = scmp.ne.s32.totalorder %s223_s16, %s5909_s18  ;;  %p5914_p8 = scmp.lt.s32.totalorder %s223_s16, %s223_s16 }
 0x109   :  { %p5915_p9 = scmp.lt.s32.totalorder %s5913_s13, %s5909_s18 }
 0x10b   :  { %p5916_p10 = por %p5915_p9, %p5914_p8 }
 0x10d   :  { %p5917_p11 = pnand %p5916_p10, %p5910_p7 }
 0x10f   :  { %5920 = shalt.err (!%p5917_p11)
}
 0x110   :  { %225 = dma.hbm_to_vmem [thread:$0]  %s6290_s27, 16, %s223_s16, [#allocation16]  }
 0x111   :  { %s5921_s8 = scalar_lea.hbm %s6300_s12, 16 }
 0x112   :  { %p5922_p12 = scmp.ne.s32.totalorder %s6300_s12, %s5921_s8  ;;  %p5925_p13 = scmp.lt.u32.totalorder %s5921_s8, %s6300_s12 }
 0x114   :  { %p5927_p0 = pnand %p5925_p13, %p5922_p12 }
 0x116   :  { %5930 = shalt.err (!%p5927_p0)
}
 0x117   :  { %s5931_s23 = scalar_lea.vmem %s243_s25, 16  ;;  %s5935_s22 = scalar_lea.vmem %s243_s25, 32 }
 0x118   :  { %p5932_p1 = scmp.ne.s32.totalorder %s243_s25, %s5931_s23  ;;  %p5936_p2 = scmp.lt.s32.totalorder %s243_s25, %s243_s25 }
 0x119   :  { %p5937_p3 = scmp.lt.s32.totalorder %s5935_s22, %s5931_s23 }
 0x11b   :  { %p5938_p4 = por %p5937_p3, %p5936_p2 }
 0x11d   :  { %p5939_p5 = pnand %p5938_p4, %p5932_p1 }
 0x11f   :  { %5942 = shalt.err (!%p5939_p5)
}
 0x120   :  { %s7039_s0 = sld [smem:[#allocation62_spill]]  ;;  %s6151_s27 = smov [#allocation23]  }
 0x121   :  { %245 = dma.hbm_to_vmem [thread:$0]  %s6300_s12, 16, %s243_s25, [#allocation19]  }
 0x122   :  { %s266_s14 = sshll.u32 %s6151_s27, 4  ;;  %s6152_s26 = smov [#allocation26]   ;;  %s267_s14 = int_to_ptr.vmem [resolvable:$true] %s266_s14 }
 0x123   :  { %s288_s4 = sshll.u32 %s6152_s26, 4  ;;  %s289_s4 = int_to_ptr.vmem [resolvable:$true] %s288_s4 }
 0x126   :  { %s5943_s3 = scalar_lea.hbm %s7039_s0, 16 }
 0x127   :  { %p5944_p6 = scmp.ne.s32.totalorder %s7039_s0, %s5943_s3  ;;  %p5947_p7 = scmp.lt.u32.totalorder %s5943_s3, %s7039_s0 }
 0x129   :  { %p5949_p8 = pnand %p5947_p7, %p5944_p6 }
 0x12b   :  { %5952 = shalt.err (!%p5949_p8)
}
 0x12c   :  { %s5953_s5 = scalar_lea.vmem %s267_s14, 16  ;;  %s5957_s1 = scalar_lea.vmem %s267_s14, 32 }
 0x12d   :  { %p5954_p9 = scmp.ne.s32.totalorder %s267_s14, %s5953_s5  ;;  %p5958_p10 = scmp.lt.s32.totalorder %s267_s14, %s267_s14 }
 0x12e   :  { %p5959_p11 = scmp.lt.s32.totalorder %s5957_s1, %s5953_s5 }
 0x130   :  { %p5960_p12 = por %p5959_p11, %p5958_p10 }
 0x132   :  { %p5961_p13 = pnand %p5960_p12, %p5954_p9 }
 0x134   :  { %5964 = shalt.err (!%p5961_p13)
}
 0x135   :  { %s7040_s12 = sld [smem:[#allocation63_spill]] }
 0x136   :  { %269 = dma.hbm_to_vmem [thread:$0]  %s7039_s0, 16, %s267_s14, [#allocation22]  }
 0x13b   :  { %s5965_s28 = scalar_lea.hbm %s7040_s12, 16 }
 0x13c   :  { %p5966_p0 = scmp.ne.s32.totalorder %s7040_s12, %s5965_s28  ;;  %p5969_p1 = scmp.lt.u32.totalorder %s5965_s28, %s7040_s12 }
 0x13e   :  { %p5971_p2 = pnand %p5969_p1, %p5966_p0 }
 0x140   :  { %5974 = shalt.err (!%p5971_p2)
}
 0x141   :  { %s5975_s30 = scalar_lea.vmem %s289_s4, 16  ;;  %s5979_s2 = scalar_lea.vmem %s289_s4, 32 }
 0x142   :  { %p5976_p3 = scmp.ne.s32.totalorder %s289_s4, %s5975_s30  ;;  %p5980_p4 = scmp.lt.s32.totalorder %s289_s4, %s289_s4 }
 0x143   :  { %p5981_p5 = scmp.lt.s32.totalorder %s5979_s2, %s5975_s30 }
 0x145   :  { %p5982_p6 = por %p5981_p5, %p5980_p4 }
 0x147   :  { %p5983_p7 = pnand %p5982_p6, %p5976_p3 }
 0x149   :  { %5986 = shalt.err (!%p5983_p7)
}
 0x14a   :  { %291 = dma.hbm_to_vmem [thread:$0]  %s7040_s12, 16, %s289_s4, [#allocation25]  }
 0x14b   :  { %6075 = dma.done.wait [#allocation4], 128  }
 0x14c   :  { %6076 = vsyncadd [#allocation4], 4294967168 }
 0x14d   :  { %6077 = dma.done.wait [#allocation7], 384  }
 0x14e   :  { %6078 = vsyncadd [#allocation7], 4294966912 }
 0x14f   :  { %6079 = dma.done.wait [#allocation10], 272  }
 0x150   :  { %6080 = vsyncadd [#allocation10], 4294967024 }
 0x151   :  { %6081 = dma.done.wait [#allocation13], 272  }
 0x152   :  { %6082 = vsyncadd [#allocation13], 4294967024 }
 0x153   :  { %6083 = dma.done.wait [#allocation16], 32  }
 0x154   :  { %6084 = vsyncadd [#allocation16], 4294967264 }
 0x155   :  { %6085 = dma.done.wait [#allocation19], 32  }
 0x156   :  { %6086 = vsyncadd [#allocation19], 4294967264 }
 0x157   :  { %6087 = dma.done.wait [#allocation22], 32  }
 0x158   :  { %6088 = vsyncadd [#allocation22], 4294967264 }
 0x159   :  { %6089 = dma.done.wait [#allocation25], 528  }
 0x15a   :  { %6090 = vsyncadd [#allocation25], 4294966768  ;;  %v6153_v1 = vmov 0.0|0.0   ;;  %vm6154_vm0 = vmmov 0   ;;  %v6155_v2 = vmov 0.0   ;;  %s7041_s10 = sld [smem:[#allocation45_spill]] }
 0x15b   :  { %5192 = vmatprep.subr.bf16.mxu1 %v6153_v1  ;;  %4670 = vmatprep.mubr.msk.f32.mxu1 %vm6154_vm0, %v6155_v2  ;;  %s7042_s7 = sld [smem:[#allocation46_spill]]  ;;  %v342_v3 = vld [vmem:[#allocation8] sm:$0xff]  ;;  %v343_v4 = vld [vmem:[#allocation8 + $0x8] sm:$0xff]  ;;  %v341_v6 = vld [vmem:[#allocation3] sm:$0xff]  ;;  %vm351_vm1 = vcmask 130048   ;;  %s7043_s17 = sld [smem:[#allocation48_spill]] }
 0x15c   :  { %5198 = vmatprep.subr.bf16.mxu0 %v6153_v1  ;;  %4684 = vmatprep.mubr.msk.f32.mxu0 %vm6154_vm0, %v6155_v2  ;;  %v5193_v5 = vpack.c.bf16 %v343_v4, %v342_v3  ;;  %v426_v7 = vld [vmem:[#allocation9] sm:$0xff]  ;;  %v427_v8 = vld [vmem:[#allocation9 + $0x8] sm:$0xff]  ;;  %s7044_s11 = sld [smem:[#allocation52_spill]]  ;;  %s7045_s9 = sld [smem:[#allocation47_spill]]  ;;  %v509_v19 = vld [vmem:[#allocation12] sm:$0xff]  ;;  %vm863_vm2 = vcmask 261120  }
 0x15d   :  { %v5196_v9 = vpack.c.bf16 %v427_v8, %v426_v7  ;;  %v593_v18 = vld [vmem:[#allocation6] sm:$0xff]  ;;  %v510_v20 = vld [vmem:[#allocation12 + $0x8] sm:$0xff]  ;;  %v4310_v22 = vld [vmem:[#allocation11] ss:$0 sm:$0xff]  ;;  %s7046_s29 = sld [smem:[#allocation44_spill]]  ;;  %s7047_s16 = sld [smem:[#allocation54_spill]] }
 0x15e   :  { %5194 = vmatpush3.bf16.msra.mxu1 %v5193_v5  ;;  %v5199_v21 = vpack.c.bf16 %v510_v20, %v509_v19  ;;  %s7048_s15 = sld [smem:[#allocation50_spill]]  ;;  %s7049_s25 = sld [smem:[#allocation53_spill]]  ;;  %vm3940_vm3 = vcmask 523264  }
 0x15f   :  { %5195 = vmatprep.subr.bf16.mxu1 %v6153_v1  ;;  %s7050_s6 = sld [smem:[#allocation56_spill]]  ;;  %s7051_s18 = sld [smem:[#allocation58_spill]] }
 0x160   :  { %v4308_v10 = vld [vmem:[%s7041_s10] ss:$0 sm:$0xff]  ;;  %5200 = vmatpush3.bf16.msra.mxu0 %v5199_v21  ;;  %s7052_s13 = sld [smem:[#allocation49_spill]]  ;;  %s7053_s8 = sld [smem:[#allocation55_spill]] }
 0x161   :  { %4671 = vmatmul.mubr.msk.f32.vlgmr.msra.gmra.mrb[0].mxu1 %vm351_vm1, %v341_v6  ;;  %v594_v11 = vld [vmem:[%s7042_s7] sm:$0xff]  ;;  %v595_v12 = vld [vmem:[%s7042_s7 + $0x8] sm:$0xff]  ;;  %5204 = vmatprep.subr.bf16.mxu0 %v6153_v1  ;;  %s7054_s23 = sld [smem:[#allocation57_spill]]  ;;  %s7055_s22 = sld [smem:[#allocation59_spill]] }
 0x162   :  { %4677 = vmatprep.mubr.msk.f32.mxu1 %vm6154_vm0, %v6155_v2  ;;  %5197 = vmatpush3.bf16.msra.mxu1 %v5196_v9  ;;  %v5202_v16 = vpack.c.bf16 %v595_v12, %v594_v11  ;;  %v677_v23 = vld [vmem:[%s7043_s17] sm:$0xff]  ;;  %v678_v24 = vld [vmem:[%s7043_s17 + $0x8] sm:$0xff]  ;;  %v854_v35 = vld [vmem:[%s7044_s11 + $0x10] sm:$0xff]  ;;  %s7056_s0 = sld [smem:[#allocation51_spill]]  ;;  %s6156_s27 = smov 16  }
 0x163   :  { %5201 = vmatprep.subr.bf16.mxu1 %v6153_v1  ;;  %v852_v26 = vld [vmem:[%s7044_s11] sm:$0xff]  ;;  %v853_v27 = vld [vmem:[%s7044_s11 + $0x8] sm:$0xff]  ;;  %v5205_v31 = vpack.c.bf16 %v678_v24, %v677_v23  ;;  %v855_v36 = vld [vmem:[%s7044_s11 + $0x18] sm:$0xff]  ;;  %s7057_s14 = sld [smem:[#allocation60_spill]]  ;;  %s7058_s26 = sld [smem:[#allocation61_spill]] }
 0x164   :  { %v4314_v30 = vld [vmem:[%s7045_s9] ss:$0 sm:$0xff]  ;;  %v5210_v33 = vpack.c.bf16 %v853_v27, %v852_v26  ;;  %v5214_v40 = vpack.c.bf16 %v855_v36, %v854_v35  ;;  %v1110_v43 = vld [vmem:[%s7047_s16 + $0x8] sm:$0xff]  ;;  %v1111_v45 = vld [vmem:[%s7047_s16 + $0x10] sm:$0xff]  ;;  %s7059_s4 = sld [smem:[#allocation64_spill]]  ;;  %s6157_s3 = smov 32  }
 0x165   :  { %v6470_v41 = vld [vmem:[%s7046_s29] sm:$0xff]  ;;  %v1112_v46 = vld [vmem:[%s7047_s16 + $0x18] sm:$0xff]  ;;  %v6480_v47 = vld [vmem:[%s7046_s29 + $0x8] sm:$0xff]  ;;  %s6158_s5 = smov [#allocation28]   ;;  %s6159_s12 = smov [#allocation27]  }
 0x166   :  { %v1109_v42 = vld [vmem:[%s7047_s16] sm:$0xff]  ;;  %v6483_v48 = vld [vmem:[%s7046_s29 + $0x10] sm:$0xff]  ;;  %v5230_v49 = vpack.c.bf16 %v1112_v46, %v1111_v45  ;;  %v6490_v50 = vld [vmem:[%s7046_s29 + $0x18] sm:$0xff]  ;;  %s4218_s1 = sshll.u32 %s6158_s5, 4  ;;  %s4208_s28 = sshll.u32 %s6159_s12, 4  ;;  %s4219_s1 = int_to_ptr.vmem [resolvable:$true] %s4218_s1  ;;  %s4209_s28 = int_to_ptr.vmem [resolvable:$true] %s4208_s28 }
 0x167   :  { %v5226_v44 = vpack.c.bf16 %v1110_v43, %v1109_v42  ;;  %v6493_v51 = vld [vmem:[%s7046_s29 + $0x20] sm:$0xff]  ;;  %v6500_v52 = vld [vmem:[%s7046_s29 + $0x28] sm:$0xff]  ;;  %v6503_v53 = vld [vmem:[%s7046_s29 + $0x30] sm:$0xff]  ;;  %s5987_s30 = scalar_lea.vmem %s4219_s1, 128  ;;  %p5992_p9 = scmp.lt.s32.totalorder %s4219_s1, %s4219_s1 }
 0x168   :  { %v6511_v54 = vld [vmem:[%s7046_s29 + $0x38] sm:$0xff]  ;;  %v760_v55 = vld [vmem:[%s7048_s15] sm:$0xff]  ;;  %v761_v56 = vld [vmem:[%s7048_s15 + $0x8] sm:$0xff]  ;;  %p5988_p8 = scmp.ne.s32.totalorder %s4219_s1, %s5987_s30  ;;  %p5993_p10 = scmp.lt.s32.totalorder %s5987_s30, %s5987_s30 }
 0x169   :  { %v5208_v57 = vpack.c.bf16 %v761_v56, %v760_v55  ;;  %v993_v58 = vld [vmem:[%s7049_s25] sm:$0xff]  ;;  %v994_v59 = vld [vmem:[%s7049_s25 + $0x8] sm:$0xff]  ;;  %v1343_v0 = vld [vmem:[%s7050_s6 + $0x10] sm:$0xff] }
 0x16a   :  { %v5218_v60 = vpack.c.bf16 %v994_v59, %v993_v58  ;;  %v1341_v61 = vld [vmem:[%s7050_s6] sm:$0xff]  ;;  %v1342_v62 = vld [vmem:[%s7050_s6 + $0x8] sm:$0xff]  ;;  %v1344_v3 = vld [vmem:[%s7050_s6 + $0x18] sm:$0xff]  ;;  %p5994_p11 = por %p5993_p10, %p5992_p9 }
 0x16b   :  { %v6539_v63 = vpack.c.bf16 %v1342_v62, %v1341_v61  ;;  %v6545_v4 = vpack.c.bf16 %v1344_v3, %v1343_v0  ;;  %v1506_v5 = vld [vmem:[%s7051_s18] sm:$0xff]  ;;  %v1507_v6 = vld [vmem:[%s7051_s18 + $0x8] sm:$0xff]  ;;  %v1508_v8 = vld [vmem:[%s7051_s18 + $0x10] sm:$0xff] }
 0x16c   :  { %v6554_v7 = vpack.c.bf16 %v1507_v6, %v1506_v5  ;;  %v1509_v9 = vld [vmem:[%s7051_s18 + $0x18] sm:$0xff]  ;;  %v4312_v11 = vld [vmem:[#allocation14] ss:$0 sm:$0xff]  ;;  %v1227_v27 = vld [vmem:[%s7053_s8 + $0x10] sm:$0xff]  ;;  %p5995_p12 = pnand %p5994_p11, %p5988_p8 }
 0x16d   :  { %v996_v19 = vld [vmem:[%s7049_s25 + $0x18] sm:$0xff]  ;;  %v1225_v24 = vld [vmem:[%s7053_s8] sm:$0xff]  ;;  %v1583_v43 = vld [vmem:[%s7055_s22 + $0x8] sm:$0xff] }
 0x16e   :  { %v1425_v36 = vld [vmem:[%s7054_s23] sm:$0xff]  ;;  %v1584_v45 = vld [vmem:[%s7055_s22 + $0x10] sm:$0xff]  ;;  %v1585_v46 = vld [vmem:[%s7055_s22 + $0x18] sm:$0xff] }
 0x234   :  { %v421_v13 = vpop.f32.mrb[0].mxu1 }
 0x235   :  { %v422_v14 = vadd.f32 %v4308_v10, %v421_v13  ;;  %v4672_v15 = vpop.f32.mrb[1].mxu1  ;;  %v6560_v10 = vpack.c.bf16 %v1509_v9, %v1508_v8 }
 0x236   :  { %v4316_v15 = vld [vmem:[%s7052_s13] ss:$0 sm:$0xff] }
 0x237   :  { %v425_v17 = vmax.f32 %v422_v14, 0.0 }
 0x239   :  { %4678 = vmatmul.mubr.msk.f32.vlgmr.msra.gmra.mrb[2].mxu1 %vm351_vm1, %v425_v17 }
 0x23a   :  { %5203 = vmatpush3.bf16.msra.mxu1 %v5202_v16  ;;  %4691 = vmatprep.mubr.msk.f32.mxu1 %vm6154_vm0, %v6155_v2 }
 0x23b   :  { %5207 = vmatprep.subr.bf16.mxu1 %v6153_v1 }
 0x23d   :  { %4692 = vmatmul.mubr.msk.f32.vlgmr.msra.gmra.mrb[4].mxu1 %vm351_vm1, %v593_v18  ;;  %v995_v18 = vld [vmem:[%s7049_s25 + $0x10] sm:$0xff] }
 0x23e   :  { %4705 = vmatprep.mubr.msk.f32.mxu1 %vm6154_vm0, %v6155_v2  ;;  %5209 = vmatpush3.bf16.msra.mxu1 %v5208_v57  ;;  %v5222_v23 = vpack.c.bf16 %v996_v19, %v995_v18 }
 0x23f   :  { %5219 = vmatprep.subr.bf16.mxu1 %v5218_v60 }
 0x30c   :  { %v504_v25 = vpop.f32.mrb[2].mxu1 }
 0x30d   :  { %v505_v28 = vadd.f32 %v4310_v22, %v504_v25  ;;  %v4679_v29 = vpop.f32.mrb[3].mxu1  ;;  %v1226_v25 = vld [vmem:[%s7053_s8 + $0x8] sm:$0xff] }
 0x30e   :  { %v5234_v26 = vpack.c.bf16 %v1226_v25, %v1225_v24  ;;  %v4318_v25 = vld [vmem:[%s7056_s0] ss:$0 sm:$0xff] }
 0x30f   :  { %v508_v32 = vmax.f32 %v505_v28, 0.0  ;;  %v1228_v28 = vld [vmem:[%s7053_s8 + $0x18] sm:$0xff] }
 0x310   :  { %v672_v34 = vpop.f32.mrb[4].mxu1 }
 0x311   :  { %v673_v37 = vadd.f32 %v4314_v30, %v672_v34  ;;  %4685 = vmatmul.mubr.msk.f32.vlgmr.msra.gmra.mrb[0].mxu0 %vm351_vm1, %v508_v32  ;;  %v4693_v38 = vpop.f32.mrb[5].mxu1 }
 0x312   :  { %5206 = vmatpush3.bf16.msra.mxu0 %v5205_v31  ;;  %4698 = vmatprep.mubr.msk.f32.mxu0 %vm6154_vm0, %v6155_v2  ;;  %v5238_v31 = vpack.c.bf16 %v1228_v28, %v1227_v27 }
 0x313   :  { %v676_v39 = vmax.f32 %v673_v37, 0.0  ;;  %5211 = vmatprep.subr.bf16.mxu0 %v5210_v33  ;;  %v1426_v37 = vld [vmem:[%s7054_s23 + $0x8] sm:$0xff] }
 0x314   :  { %v6618_v38 = vpack.c.bf16 %v1426_v37, %v1425_v36 }
 0x315   :  { %4699 = vmatmul.mubr.msk.f32.vlgmr.msra.gmra.mrb[2].mxu0 %vm351_vm1, %v676_v39  ;;  %v1427_v39 = vld [vmem:[%s7054_s23 + $0x10] sm:$0xff] }
 0x316   :  { %5213 = vmatpush3.bf16.msra.mxu0 %v5210_v33  ;;  %4716 = vmatprep.mubr.msk.f32.mxu0 %vm863_vm2, %v6470_v41 }
 0x317   :  { %5215 = vmatprep.subr.bf16.mxu0 %v5214_v40 }
 0x31a   :  { %5217 = vmatpush3.bf16.msra.mxu0 %v5214_v40  ;;  %v1428_v40 = vld [vmem:[%s7054_s23 + $0x18] sm:$0xff] }
 0x31b   :  { %5227 = vmatprep.subr.bf16.mxu0 %v5226_v44  ;;  %v6627_v42 = vpack.c.bf16 %v1428_v40, %v1427_v39 }
 0x31d   :  { %4717 = vmatmul.mubr.msk.f32.vlgmr.msra.gmra.mrb[4].mxu0 %vm863_vm2, %v6480_v47 }
 0x31e   :  { %4719 = vmatprep.mubr.msk.f32.mxu0 %vm863_vm2, %v6483_v48  ;;  %5229 = vmatpush3.bf16.msra.mxu0 %v5226_v44 }
 0x31f   :  { %5231 = vmatprep.subr.bf16.mxu0 %v5230_v49 }
 0x321   :  { %4720 = vmatmul.mubr.msk.f32.gmra.mrb[6].mxu0 %vm863_vm2, %v6490_v50 }
 0x322   :  { %4722 = vmatprep.mubr.msk.f32.mxu0 %vm863_vm2, %v6493_v51  ;;  %5233 = vmatpush3.bf16.msra.mxu0 %v5230_v49 }
 0x323   :  { %5242 = vmatprep.subr.bf16.mxu0 %v6153_v1 }
 0x325   :  { %4723 = vmatmul.mubr.msk.f32.gmra.mrb[8].mxu0 %vm863_vm2, %v6500_v52 }
 0x326   :  { %4725 = vmatprep.mubr.msk.f32.mxu0 %vm863_vm2, %v6503_v53 }
 0x329   :  { %4726 = vmatmul.mubr.msk.f32.gmra.mrb[10].mxu0 %vm863_vm2, %v6511_v54 }
 0x32a   :  { %4756 = vmatprep.mubr.msk.f32.mxu0 %vm863_vm2, %v6470_v41 }
 0x32d   :  { %4757 = vmatmul.mubr.msk.f32.vlgmr.msra.gmra.mrb[12].mxu0 %vm863_vm2, %v6480_v47 }
 0x32e   :  { %4759 = vmatprep.mubr.msk.f32.mxu0 %vm863_vm2, %v6483_v48  ;;  %5244 = vmatpush3.bf16.msra.mxu0 %v6539_v63 }
 0x32f   :  { %5245 = vmatprep.subr.bf16.mxu0 %v6153_v1 }
 0x331   :  { %4760 = vmatmul.mubr.msk.f32.gmra.mrb[14].mxu0 %vm863_vm2, %v6490_v50 }
 0x332   :  { %4762 = vmatprep.mubr.msk.f32.mxu0 %vm863_vm2, %v6493_v51  ;;  %5247 = vmatpush3.bf16.msra.mxu0 %v6545_v4 }
 0x333   :  { %5254 = vmatprep.subr.bf16.mxu0 %v6153_v1 }
 0x335   :  { %4763 = vmatmul.mubr.msk.f32.gmra.mrb[16].mxu0 %vm863_vm2, %v6500_v52 }
 0x336   :  { %4765 = vmatprep.mubr.msk.f32.mxu0 %vm863_vm2, %v6503_v53 }
 0x339   :  { %4766 = vmatmul.mubr.msk.f32.gmra.mrb[18].mxu0 %vm863_vm2, %v6511_v54 }
 0x33a   :  { %4796 = vmatprep.mubr.msk.f32.mxu0 %vm6154_vm0, %v6155_v2 }
 0x33d   :  { %4797 = vmatmul.mubr.f32.vlgmr.msra.gmra.mrb[20].mxu0 %v6155_v2 }
 0x33e   :  { %4818 = vmatprep.mubr.msk.f32.mxu0 %vm6154_vm0, %v6155_v2  ;;  %5256 = vmatpush3.bf16.msra.mxu0 %v6554_v7 }
 0x33f   :  { %5257 = vmatprep.subr.bf16.mxu0 %v6153_v1 }
 0x342   :  { %5259 = vmatpush3.bf16.msra.mxu0 %v6560_v10 }
 0x343   :  { %5266 = vmatprep.subr.bf16.mxu0 %v6153_v1 }
 0x345   :  { %4819 = vmatmul.mubr.f32.vlgmr.msra.gmra.mrb[22].mxu0 %v6155_v2 }
 0x346   :  { %5268 = vmatpush3.bf16.msra.mxu0 %v6539_v63  ;;  %4840 = vmatprep.mubr.msk.f32.mxu0 %vm6154_vm0, %v6155_v2 }
 0x347   :  { %5269 = vmatprep.subr.bf16.mxu0 %v6153_v1 }
 0x34a   :  { %5271 = vmatpush3.bf16.msra.mxu0 %v6545_v4 }
 0x34b   :  { %5278 = vmatprep.subr.bf16.mxu0 %v6153_v1 }
 0x3e4   :  { %v587_v12 = vpop.f32.mrb[0].mxu0 }
 0x3e5   :  { %v6571_v13 = vadd.f32 %v4312_v11, %v587_v12  ;;  %v4686_v14 = vpop.f32.mrb[1].mxu0 }
 0x3e7   :  { %v591_v16 = vmax.f32 %v6571_v13, 0.0 }
 0x3e8   :  { %v755_v17 = vpop.f32.mrb[2].mxu0 }
 0x3e9   :  { %592 = vst.msk [vmem:[#allocation27] sm:$0xff] %vm351_vm1, %v591_v16  ;;  %v756_v20 = vadd.f32 %v4316_v15, %v755_v17  ;;  %v4700_v21 = vpop.f32.mrb[3].mxu0 }
 0x3eb   :  { %v759_v22 = vmax.f32 %v756_v20, 0.0 }
 0x3ed   :  { %4706 = vmatmul.mubr.msk.f32.vlgmr.msra.gmra.mrb[6].mxu1 %vm351_vm1, %v759_v22 }
 0x3ee   :  { %5221 = vmatpush3.bf16.msra.mxu1 %v5218_v60  ;;  %4736 = vmatprep.mubr.msk.f32.mxu1 %vm863_vm2, %v6470_v41 }
 0x3ef   :  { %5223 = vmatprep.subr.bf16.mxu1 %v5222_v23 }
 0x3f0   :  { %v6587_v29 = vpop.f32.mrb[4].mxu0 }
 0x3f1   :  { %v6589_v30 = vpop.f32.mrb[5].mxu0 }
 0x3f2   :  { %5225 = vmatpush3.bf16.msra.mxu1 %v5222_v23 }
 0x3f3   :  { %5235 = vmatprep.subr.bf16.mxu1 %v5234_v26 }
 0x3f4   :  { %v6591_v32 = vpop.f32.mrb[6].mxu0 }
 0x3f5   :  { %4737 = vmatmul.mubr.msk.f32.vlgmr.msra.gmra.mrb[8].mxu1 %vm863_vm2, %v6480_v47  ;;  %v6595_v33 = vpop.f32.mrb[7].mxu0 }
 0x3f6   :  { %5237 = vmatpush3.bf16.msra.mxu1 %v5234_v26  ;;  %4739 = vmatprep.mubr.msk.f32.mxu1 %vm863_vm2, %v6483_v48 }
 0x3f7   :  { %5239 = vmatprep.subr.bf16.mxu1 %v5238_v31 }
 0x3f8   :  { %v6599_v34 = vpop.f32.mrb[8].mxu0 }
 0x3f9   :  { %4740 = vmatmul.mubr.msk.f32.gmra.mrb[10].mxu1 %vm863_vm2, %v6490_v50  ;;  %v6603_v35 = vpop.f32.mrb[9].mxu0 }
 0x3fa   :  { %4742 = vmatprep.mubr.msk.f32.mxu1 %vm863_vm2, %v6493_v51  ;;  %5241 = vmatpush3.bf16.msra.mxu1 %v5238_v31  ;;  %v4329_v31 = vld [vmem:[#allocation17] ss:$0 sm:$0xff] }
 0x3fb   :  { %5248 = vmatprep.subr.bf16.mxu1 %v6153_v1 }
 0x3fd   :  { %4743 = vmatmul.mubr.msk.f32.gmra.mrb[12].mxu1 %vm863_vm2, %v6500_v52 }
 0x3fe   :  { %4745 = vmatprep.mubr.msk.f32.mxu1 %vm863_vm2, %v6503_v53 }
 0x401   :  { %4746 = vmatmul.mubr.msk.f32.gmra.mrb[14].mxu1 %vm863_vm2, %v6511_v54 }
 0x402   :  { %4776 = vmatprep.mubr.msk.f32.mxu1 %vm863_vm2, %v6470_v41  ;;  %v1582_v41 = vld [vmem:[%s7055_s22] sm:$0xff] }
 0x403   :  { %v6646_v44 = vpack.c.bf16 %v1583_v43, %v1582_v41 }
 0x405   :  { %4777 = vmatmul.mubr.msk.f32.vlgmr.msra.gmra.mrb[16].mxu1 %vm863_vm2, %v6480_v47  ;;  %v6652_v47 = vpack.c.bf16 %v1585_v46, %v1584_v45 }
 0x406   :  { %5250 = vmatpush3.bf16.msra.mxu1 %v6618_v38  ;;  %4779 = vmatprep.mubr.msk.f32.mxu1 %vm863_vm2, %v6483_v48  ;;  %v6666_v48 = vpop.f32.mrb[10].mxu0 }
 0x407   :  { %5251 = vmatprep.subr.bf16.mxu1 %v6153_v1  ;;  %v6668_v49 = vpop.f32.mrb[11].mxu0 }
 0x409   :  { %4780 = vmatmul.mubr.msk.f32.gmra.mrb[18].mxu1 %vm863_vm2, %v6490_v50  ;;  %v4758_v50 = vpop.f32.mrb[12].mxu0 }
 0x40a   :  { %4782 = vmatprep.mubr.msk.f32.mxu1 %vm863_vm2, %v6493_v51  ;;  %5253 = vmatpush3.bf16.msra.mxu1 %v6627_v42  ;;  %v1186_v51 = vpop.f32.mrb[13].mxu0 }
 0x40b   :  { %5260 = vmatprep.subr.bf16.mxu1 %v6153_v1 }
 0x40d   :  { %4783 = vmatmul.mubr.msk.f32.gmra.mrb[20].mxu1 %vm863_vm2, %v6500_v52  ;;  %v6670_v52 = vld [vmem:[#allocation15] ss:$0 sm:$0xff] }
 0x40e   :  { %4785 = vmatprep.mubr.msk.f32.mxu1 %vm863_vm2, %v6503_v53  ;;  %v4338_v53 = vld [vmem:[#allocation18] ss:$0 sm:$0xff]  ;;  %v955_v60 = vadd.f32 %v6670_v52, %v6589_v30 }
 0x40f   :  { %v6672_v55 = vadd.f32 %v4758_v50, %v4338_v53  ;;  %v1187_v15 = vadd.f32 %v4338_v53, %v1186_v51 }
 0x411   :  { %4786 = vmatmul.mubr.msk.f32.gmra.mrb[22].mxu1 %vm863_vm2, %v6511_v54  ;;  %v4761_v54 = vpop.f32.mrb[14].mxu0 }
 0x412   :  { %4807 = vmatprep.mubr.msk.f32.mxu1 %vm6154_vm0, %v6155_v2  ;;  %v6674_v56 = vadd.f32 %v4761_v54, %v4338_v53  ;;  %v1196_v57 = vpop.f32.mrb[15].mxu0 }
 0x413   :  { %v6676_v58 = vadd.f32 %v4338_v53, %v1196_v57  ;;  %v4764_v59 = vpop.f32.mrb[16].mxu0 }
 0x414   :  { %v6680_v61 = vadd.f32 %v4764_v59, %v4338_v53  ;;  %v1206_v62 = vpop.f32.mrb[17].mxu0 }
 0x415   :  { %4808 = vmatmul.mubr.f32.vlgmr.msra.gmra.mrb[24].mxu1 %v6155_v2  ;;  %v6682_v0 = vadd.f32 %v4338_v53, %v1206_v62  ;;  %v4767_v3 = vpop.f32.mrb[18].mxu0  ;;  %v4347_v62 = vld [vmem:[#allocation20] ss:$0 sm:$0xff] }
 0x416   :  { %5262 = vmatpush3.bf16.msra.mxu1 %v6646_v44  ;;  %4829 = vmatprep.mubr.msk.f32.mxu1 %vm6154_vm0, %v6155_v2  ;;  %v6684_v5 = vadd.f32 %v4767_v3, %v4338_v53  ;;  %v1216_v6 = vpop.f32.mrb[19].mxu0 }
 0x417   :  { %5263 = vmatprep.subr.bf16.mxu1 %v6153_v1  ;;  %v6686_v8 = vadd.f32 %v4338_v53, %v1216_v6  ;;  %v1414_v9 = vpop.f32.mrb[20].mxu0 }
 0x418   :  { %v1418_v11 = vadd.f32 %v1414_v9, %v955_v60  ;;  %v4798_v12 = vpop.f32.mrb[21].mxu0 }
 0x419   :  { %v1576_v18 = vpop.f32.mrb[22].mxu0 }
 0x41a   :  { %5265 = vmatpush3.bf16.msra.mxu1 %v6652_v47  ;;  %v4356_v14 = vmul.f32 -1.442695, %v1418_v11  ;;  %v1580_v20 = vadd.f32 %v1576_v18, %v1187_v15  ;;  %v4820_v21 = vpop.f32.mrb[23].mxu0 }
 0x41b   :  { %5272 = vmatprep.subr.bf16.mxu1 %v6153_v1 }
 0x41c   :  { %5529 = vpow2.f32 %v4356_v14 }
 0x41d   :  { %4830 = vmatmul.mubr.f32.vlgmr.msra.gmra.mrb[26].mxu1 %v6155_v2 }
 0x41e   :  { %5274 = vmatpush3.bf16.msra.mxu1 %v6618_v38  ;;  %4851 = vmatprep.mubr.msk.f32.mxu1 %vm6154_vm0, %v6155_v2 }
 0x41f   :  { %5275 = vmatprep.subr.bf16.mxu1 %v6153_v1 }
 0x422   :  { %5277 = vmatpush3.bf16.msra.mxu1 %v6627_v42 }
 0x423   :  { %5284 = vmatprep.subr.bf16.mxu1 %v6153_v1 }
 0x426   :  { %v5530_v17 = vpop.eup %5529 }
 0x427   :  { %v1422_v19 = vadd.f32 1.0, %v5530_v17 }
 0x429   :  { %5531 = vrcp.f32 %v1422_v19 }
 0x42a   :  { %5533 = vtanh.f32 %v1580_v20 }
 0x433   :  { %v5532_v22 = vpop.eup %5531 }
 0x434   :  { %v5534_v23 = vpop.eup %5533 }
 0x435   :  { %v1664_v24 = vmul.f32 %v5534_v23, %v5532_v22 }
 0x4c0   :  { %v838_v26 = vpop.f32.mrb[6].mxu1 }
 0x4c1   :  { %v839_v27 = vadd.f32 %v4318_v25, %v838_v26  ;;  %v4707_v28 = vpop.f32.mrb[7].mxu1 }
 0x4c3   :  { %v842_v30 = vmax.f32 %v839_v27, 0.0 }
 0x4c5   :  { %843 = vst.msk [vmem:[#allocation28] sm:$0xff] %vm351_vm1, %v842_v30  ;;  %3931 = vrot.lane.b32.xlu0 %v842_v30, %s6156_s27 }
 0x4c8   :  { %v4738_v36 = vpop.f32.mrb[8].mxu1 }
 0x4c9   :  { %v6690_v37 = vadd.f32 %v4738_v36, %v4329_v31  ;;  %v1070_v39 = vpop.f32.mrb[9].mxu1 }
 0x4ca   :  { %v1071_v26 = vadd.f32 %v4329_v31, %v1070_v39 }
 0x4cc   :  { %v4741_v40 = vpop.f32.mrb[10].mxu1 }
 0x4cd   :  { %v6692_v41 = vadd.f32 %v4741_v40, %v4329_v31  ;;  %v1080_v43 = vpop.f32.mrb[11].mxu1 }
 0x4ce   :  { %v6694_v45 = vadd.f32 %v4329_v31, %v1080_v43 }
 0x4d0   :  { %v4744_v46 = vpop.f32.mrb[12].mxu1 }
 0x4d1   :  { %v6696_v50 = vadd.f32 %v4744_v46, %v4329_v31  ;;  %v1090_v51 = vpop.f32.mrb[13].mxu1 }
 0x4d2   :  { %v6698_v53 = vadd.f32 %v4329_v31, %v1090_v51 }
 0x4d4   :  { %v4747_v54 = vpop.f32.mrb[14].mxu1 }
 0x4d5   :  { %v6700_v57 = vadd.f32 %v4747_v54, %v4329_v31  ;;  %v1100_v59 = vpop.f32.mrb[15].mxu1 }
 0x4d6   :  { %v6702_v60 = vadd.f32 %v4329_v31, %v1100_v59 }
 0x4d8   :  { %v4778_v3 = vpop.f32.mrb[16].mxu1 }
 0x4d9   :  { %v6704_v6 = vadd.f32 %v4778_v3, %v4347_v62  ;;  %v1302_v9 = vpop.f32.mrb[17].mxu1 }
 0x4da   :  { %v1303_v40 = vadd.f32 %v4347_v62, %v1302_v9 }
 0x4dc   :  { %v4781_v11 = vpop.f32.mrb[18].mxu1 }
 0x4dd   :  { %v6706_v12 = vadd.f32 %v4781_v11, %v4347_v62  ;;  %v1312_v14 = vpop.f32.mrb[19].mxu1 }
 0x4de   :  { %v6708_v15 = vadd.f32 %v4347_v62, %v1312_v14 }
 0x4e0   :  { %v4784_v17 = vpop.f32.mrb[20].mxu1 }
 0x4e1   :  { %v6710_v18 = vadd.f32 %v4784_v17, %v4347_v62  ;;  %v1322_v19 = vpop.f32.mrb[21].mxu1 }
 0x4e2   :  { %v6712_v20 = vadd.f32 %v4347_v62, %v1322_v19 }
 0x4e4   :  { %v4787_v21 = vpop.f32.mrb[22].mxu1 }
 0x4e5   :  { %v6714_v22 = vadd.f32 %v4787_v21, %v4347_v62  ;;  %v1332_v23 = vpop.f32.mrb[23].mxu1 }
 0x4e6   :  { %v6716_v25 = vadd.f32 %v4347_v62, %v1332_v23 }
 0x4e8   :  { %v1495_v27 = vpop.f32.mrb[24].mxu1 }
 0x4e9   :  { %v1499_v28 = vadd.f32 %v1495_v27, %v1071_v26  ;;  %v4809_v30 = vpop.f32.mrb[25].mxu1 }
 0x4eb   :  { %v4357_v36 = vmul.f32 -1.442695, %v1499_v28 }
 0x4ed   :  { %5535 = vpow2.f32 %v4357_v36 }
 0x4f0   :  { %v1652_v43 = vpop.f32.mrb[26].mxu1 }
 0x4f1   :  { %v1656_v46 = vadd.f32 %v1652_v43, %v1303_v40  ;;  %v4831_v51 = vpop.f32.mrb[27].mxu1 }
 0x4f3   :  { %v4358_v54 = vmul.f32 -1.442695, %v1656_v46 }
 0x4f5   :  { %5537 = vpow2.f32 %v4358_v54 }
 0x4f7   :  { %v5536_v59 = vpop.eup %5535 }
 0x4f8   :  { %v1503_v3 = vadd.f32 1.0, %v5536_v59 }
 0x4fa   :  { %5539 = vrcp.f32 %v1503_v3 }
 0x4ff   :  { %v5538_v11 = vpop.eup %5537 }
 0x500   :  { %v1660_v17 = vadd.f32 1.0, %v5538_v11 }
 0x502   :  { %5541 = vrcp.f32 %v1660_v17 }
 0x504   :  { %v5540_v14 = vpop.eup %5539 }
 0x505   :  { %v1663_v19 = vmul.f32 0.0, %v5540_v14 }
 0x507   :  { %v1665_v21 = vadd.f32 %v1664_v24, %v1663_v19  ;;  %v960_v24 = vadd.f32 %v6587_v29, %v6670_v52 }
 0x509   :  { %5543 = vtanh.f32 %v1665_v21 }
 0x50c   :  { %v5542_v31 = vpop.eup %5541 }
 0x513   :  { %v5544_v39 = vpop.eup %5543 }
 0x514   :  { %v1667_v23 = vmul.f32 %v5544_v39, %v5542_v31 }
 0x516   :  { %4841 = vmatmul.mubr.msk.f32.vlgmr.msra.gmra.mrb[24].mxu0 %vm863_vm2, %v1667_v23  ;;  %4852 = vmatmul.mubr.msk.f32.vlgmr.msra.gmra.mrb[28].mxu1 %vm863_vm2, %v1667_v23 }
 0x517   :  { %5280 = vmatpush3.bf16.msra.mxu0 %v6554_v7  ;;  %5286 = vmatpush3.bf16.msra.mxu1 %v6646_v44 }
 0x518   :  { %5281 = vmatprep.subr.bf16.mxu0 %v6153_v1  ;;  %5287 = vmatprep.subr.bf16.mxu1 %v6153_v1 }
 0x519   :  { %4862 = vmatprep.mubr.msk.f32.mxu0 %vm6154_vm0, %v6155_v2  ;;  %4873 = vmatprep.mubr.msk.f32.mxu1 %vm6154_vm0, %v6155_v2 }
 0x51b   :  { %5283 = vmatpush3.bf16.msra.mxu0 %v6560_v10  ;;  %5289 = vmatpush3.bf16.msra.mxu1 %v6652_v47 }
 0x51c   :  { %5290 = vmatprep.subr.bf16.mxu0 %v6153_v1  ;;  %5296 = vmatprep.subr.bf16.mxu1 %v6153_v1 }
 0x51e   :  { %4863 = vmatmul.mubr.msk.f32.vlgmr.msra.gmra.mrb[26].mxu0 %vm863_vm2, %v1667_v23  ;;  %4874 = vmatmul.mubr.msk.f32.vlgmr.msra.gmra.mrb[30].mxu1 %vm863_vm2, %v1667_v23 }
 0x51f   :  { %5292 = vmatpush3.bf16.msra.mxu0 %v6539_v63  ;;  %5298 = vmatpush3.bf16.msra.mxu1 %v6618_v38 }
 0x520   :  { %5293 = vmatprep.subr.bf16.mxu0 %v6153_v1  ;;  %5299 = vmatprep.subr.bf16.mxu1 %v6153_v1 }
 0x521   :  { %4884 = vmatprep.mubr.msk.f32.mxu0 %vm6154_vm0, %v6155_v2  ;;  %4895 = vmatprep.mubr.msk.f32.mxu1 %vm6154_vm0, %v6155_v2 }
 0x523   :  { %5295 = vmatpush3.bf16.msra.mxu0 %v6545_v4  ;;  %5301 = vmatpush3.bf16.msra.mxu1 %v6627_v42 }
 0x524   :  { %5302 = vmatprep.subr.bf16.mxu0 %v6153_v1  ;;  %5308 = vmatprep.subr.bf16.mxu1 %v6153_v1 }
 0x5e9   :  { %v1737_v62 = vpop.f32.mrb[24].mxu0  ;;  %v1814_v9 = vpop.f32.mrb[28].mxu1 }
 0x5ea   :  { %v1741_v26 = vadd.f32 %v1737_v62, %v960_v24  ;;  %v1818_v27 = vadd.f32 %v1814_v9, %v6690_v37  ;;  %v4842_v28 = vpop.f32.mrb[25].mxu0  ;;  %v4853_v30 = vpop.f32.mrb[29].mxu1 }
 0x5ec   :  { %v4360_v36 = vmul.f32 -1.442695, %v1741_v26  ;;  %v4362_v40 = vmul.f32 -1.442695, %v1818_v27 }
 0x5ee   :  { %5545 = vpow2.f32 %v4360_v36 }
 0x5ef   :  { %5547 = vpow2.f32 %v4362_v40 }
 0x5f1   :  { %v1891_v43 = vpop.f32.mrb[26].mxu0  ;;  %v1963_v46 = vpop.f32.mrb[30].mxu1 }
 0x5f2   :  { %v1895_v51 = vadd.f32 %v1891_v43, %v6672_v55  ;;  %v1967_v54 = vadd.f32 %v1963_v46, %v6704_v6  ;;  %v4864_v59 = vpop.f32.mrb[27].mxu0  ;;  %v4875_v3 = vpop.f32.mrb[31].mxu1 }
 0x5f4   :  { %v4365_v29 = vmul.f32 -1.442695, %v1967_v54 }
 0x5f6   :  { %5549 = vpow2.f32 %v4365_v29 }
 0x5f7   :  { %5551 = vtanh.f32 %v1895_v51 }
 0x5f8   :  { %v5546_v11 = vpop.eup %5545 }
 0x5f9   :  { %v5548_v14 = vpop.eup %5547  ;;  %v1745_v17 = vadd.f32 1.0, %v5546_v11 }
 0x5fa   :  { %v1822_v37 = vadd.f32 1.0, %v5548_v14 }
 0x5fb   :  { %5553 = vrcp.f32 %v1745_v17 }
 0x5fc   :  { %5555 = vrcp.f32 %v1822_v37 }
 0x600   :  { %v5550_v19 = vpop.eup %5549 }
 0x601   :  { %v5552_v31 = vpop.eup %5551  ;;  %v1971_v62 = vadd.f32 1.0, %v5550_v19 }
 0x603   :  { %5557 = vrcp.f32 %v1971_v62 }
 0x605   :  { %v5554_v39 = vpop.eup %5553 }
 0x606   :  { %v5556_v23 = vpop.eup %5555  ;;  %v1975_v24 = vmul.f32 %v5554_v39, %v5552_v31 }
 0x607   :  { %v1974_v55 = vmul.f32 %v5556_v23, %v1665_v21  ;;  %v965_v21 = vadd.f32 %v6670_v52, %v6595_v33 }
 0x609   :  { %v1976_v9 = vadd.f32 %v1975_v24, %v1974_v55 }
 0x60b   :  { %5559 = vtanh.f32 %v1976_v9 }
 0x60d   :  { %v5558_v6 = vpop.eup %5557 }
 0x615   :  { %v5560_v26 = vpop.eup %5559 }
 0x616   :  { %v1978_v27 = vmul.f32 %v5560_v26, %v5558_v6 }
 0x618   :  { %4885 = vmatmul.mubr.msk.f32.vlgmr.msra.gmra.mrb[28].mxu0 %vm863_vm2, %v1978_v27  ;;  %4896 = vmatmul.mubr.msk.f32.vlgmr.msra.gmra.mrb[32].mxu1 %vm863_vm2, %v1978_v27 }
 0x619   :  { %5304 = vmatpush3.bf16.msra.mxu0 %v6554_v7  ;;  %5310 = vmatpush3.bf16.msra.mxu1 %v6646_v44 }
 0x61a   :  { %5305 = vmatprep.subr.bf16.mxu0 %v6153_v1  ;;  %5311 = vmatprep.subr.bf16.mxu1 %v6153_v1 }
 0x61b   :  { %4906 = vmatprep.mubr.msk.f32.mxu0 %vm6154_vm0, %v6155_v2  ;;  %4917 = vmatprep.mubr.msk.f32.mxu1 %vm6154_vm0, %v6155_v2 }
 0x61d   :  { %5307 = vmatpush3.bf16.msra.mxu0 %v6560_v10  ;;  %5313 = vmatpush3.bf16.msra.mxu1 %v6652_v47 }
 0x61e   :  { %5314 = vmatprep.subr.bf16.mxu0 %v6153_v1  ;;  %5320 = vmatprep.subr.bf16.mxu1 %v6153_v1 }
 0x620   :  { %4907 = vmatmul.mubr.msk.f32.vlgmr.msra.gmra.mrb[30].mxu0 %vm863_vm2, %v1978_v27  ;;  %4918 = vmatmul.mubr.msk.f32.vlgmr.msra.gmra.mrb[34].mxu1 %vm863_vm2, %v1978_v27 }
 0x621   :  { %5316 = vmatpush3.bf16.msra.mxu0 %v6539_v63  ;;  %5322 = vmatpush3.bf16.msra.mxu1 %v6618_v38 }
 0x622   :  { %5317 = vmatprep.subr.bf16.mxu0 %v6153_v1  ;;  %5323 = vmatprep.subr.bf16.mxu1 %v6153_v1 }
 0x623   :  { %4928 = vmatprep.mubr.msk.f32.mxu0 %vm6154_vm0, %v6155_v2  ;;  %4939 = vmatprep.mubr.msk.f32.mxu1 %vm6154_vm0, %v6155_v2 }
 0x625   :  { %5319 = vmatpush3.bf16.msra.mxu0 %v6545_v4  ;;  %5325 = vmatpush3.bf16.msra.mxu1 %v6627_v42 }
 0x626   :  { %5326 = vmatprep.subr.bf16.mxu0 %v6153_v1  ;;  %5332 = vmatprep.subr.bf16.mxu1 %v6153_v1 }
 0x6eb   :  { %v2048_v28 = vpop.f32.mrb[28].mxu0  ;;  %v2125_v30 = vpop.f32.mrb[32].mxu1 }
 0x6ec   :  { %v2052_v36 = vadd.f32 %v2048_v28, %v965_v21  ;;  %v2129_v40 = vadd.f32 %v2125_v30, %v6694_v45  ;;  %v4886_v43 = vpop.f32.mrb[29].mxu0  ;;  %v4897_v46 = vpop.f32.mrb[33].mxu1 }
 0x6ee   :  { %v4367_v51 = vmul.f32 -1.442695, %v2052_v36  ;;  %v4369_v54 = vmul.f32 -1.442695, %v2129_v40 }
 0x6f0   :  { %5561 = vpow2.f32 %v4367_v51 }
 0x6f1   :  { %5563 = vpow2.f32 %v4369_v54 }
 0x6f3   :  { %v2202_v59 = vpop.f32.mrb[30].mxu0  ;;  %v2274_v3 = vpop.f32.mrb[34].mxu1 }
 0x6f4   :  { %v2206_v29 = vadd.f32 %v2202_v59, %v6676_v58  ;;  %v2278_v11 = vadd.f32 %v2274_v3, %v6708_v15  ;;  %v4908_v14 = vpop.f32.mrb[31].mxu0  ;;  %v4919_v17 = vpop.f32.mrb[35].mxu1 }
 0x6f6   :  { %v4372_v33 = vmul.f32 -1.442695, %v2278_v11 }
 0x6f8   :  { %5565 = vpow2.f32 %v4372_v33 }
 0x6f9   :  { %5567 = vtanh.f32 %v2206_v29 }
 0x6fa   :  { %v5562_v37 = vpop.eup %5561 }
 0x6fb   :  { %v5564_v19 = vpop.eup %5563  ;;  %v2056_v31 = vadd.f32 1.0, %v5562_v37 }
 0x6fc   :  { %v2133_v45 = vadd.f32 1.0, %v5564_v19 }
 0x6fd   :  { %5569 = vrcp.f32 %v2056_v31 }
 0x6fe   :  { %5571 = vrcp.f32 %v2133_v45 }
 0x702   :  { %v5566_v39 = vpop.eup %5565 }
 0x703   :  { %v5568_v23 = vpop.eup %5567  ;;  %v2282_v6 = vadd.f32 1.0, %v5566_v39 }
 0x705   :  { %5573 = vrcp.f32 %v2282_v6 }
 0x707   :  { %v5570_v24 = vpop.eup %5569 }
 0x708   :  { %v5572_v62 = vpop.eup %5571  ;;  %v2286_v55 = vmul.f32 %v5570_v24, %v5568_v23 }
 0x709   :  { %v2285_v58 = vmul.f32 %v5572_v62, %v1976_v9  ;;  %v970_v9 = vadd.f32 %v6591_v32, %v6670_v52 }
 0x70b   :  { %v2287_v26 = vadd.f32 %v2286_v55, %v2285_v58 }
 0x70d   :  { %5575 = vtanh.f32 %v2287_v26 }
 0x70f   :  { %v5574_v15 = vpop.eup %5573 }
 0x717   :  { %v5576_v27 = vpop.eup %5575 }
 0x718   :  { %v2289_v21 = vmul.f32 %v5576_v27, %v5574_v15 }
 0x71a   :  { %4929 = vmatmul.mubr.msk.f32.vlgmr.msra.gmra.mrb[32].mxu0 %vm863_vm2, %v2289_v21  ;;  %4940 = vmatmul.mubr.msk.f32.vlgmr.msra.gmra.mrb[36].mxu1 %vm863_vm2, %v2289_v21 }
 0x71b   :  { %5328 = vmatpush3.bf16.msra.mxu0 %v6554_v7  ;;  %5334 = vmatpush3.bf16.msra.mxu1 %v6646_v44 }
 0x71c   :  { %5329 = vmatprep.subr.bf16.mxu0 %v6153_v1  ;;  %5335 = vmatprep.subr.bf16.mxu1 %v6153_v1 }
 0x71d   :  { %4950 = vmatprep.mubr.msk.f32.mxu0 %vm6154_vm0, %v6155_v2  ;;  %4961 = vmatprep.mubr.msk.f32.mxu1 %vm6154_vm0, %v6155_v2 }
 0x71f   :  { %5331 = vmatpush3.bf16.msra.mxu0 %v6560_v10  ;;  %5337 = vmatpush3.bf16.msra.mxu1 %v6652_v47 }
 0x720   :  { %5338 = vmatprep.subr.bf16.mxu0 %v6153_v1  ;;  %5344 = vmatprep.subr.bf16.mxu1 %v6153_v1 }
 0x722   :  { %4951 = vmatmul.mubr.msk.f32.vlgmr.msra.gmra.mrb[34].mxu0 %vm863_vm2, %v2289_v21  ;;  %4962 = vmatmul.mubr.msk.f32.vlgmr.msra.gmra.mrb[38].mxu1 %vm863_vm2, %v2289_v21 }
 0x723   :  { %5340 = vmatpush3.bf16.msra.mxu0 %v6539_v63  ;;  %5346 = vmatpush3.bf16.msra.mxu1 %v6618_v38 }
 0x724   :  { %5341 = vmatprep.subr.bf16.mxu0 %v6153_v1  ;;  %5347 = vmatprep.subr.bf16.mxu1 %v6153_v1 }
 0x725   :  { %4972 = vmatprep.mubr.msk.f32.mxu0 %vm6154_vm0, %v6155_v2  ;;  %4983 = vmatprep.mubr.msk.f32.mxu1 %vm6154_vm0, %v6155_v2 }
 0x727   :  { %5343 = vmatpush3.bf16.msra.mxu0 %v6545_v4  ;;  %5349 = vmatpush3.bf16.msra.mxu1 %v6627_v42 }
 0x728   :  { %5350 = vmatprep.subr.bf16.mxu0 %v6153_v1  ;;  %5356 = vmatprep.subr.bf16.mxu1 %v6153_v1 }
 0x7ed   :  { %v2359_v28 = vpop.f32.mrb[32].mxu0  ;;  %v2436_v30 = vpop.f32.mrb[36].mxu1 }
 0x7ee   :  { %v2363_v36 = vadd.f32 %v2359_v28, %v970_v9  ;;  %v2440_v40 = vadd.f32 %v2436_v30, %v6692_v41  ;;  %v4930_v43 = vpop.f32.mrb[33].mxu0  ;;  %v4941_v46 = vpop.f32.mrb[37].mxu1 }
 0x7f0   :  { %v4374_v51 = vmul.f32 -1.442695, %v2363_v36  ;;  %v4376_v54 = vmul.f32 -1.442695, %v2440_v40 }
 0x7f2   :  { %5577 = vpow2.f32 %v4374_v51 }
 0x7f3   :  { %5579 = vpow2.f32 %v4376_v54 }
 0x7f5   :  { %v2513_v59 = vpop.f32.mrb[34].mxu0  ;;  %v2585_v3 = vpop.f32.mrb[38].mxu1 }
 0x7f6   :  { %v2517_v29 = vadd.f32 %v2513_v59, %v6674_v56  ;;  %v2589_v11 = vadd.f32 %v2585_v3, %v6706_v12  ;;  %v4952_v14 = vpop.f32.mrb[35].mxu0  ;;  %v4963_v17 = vpop.f32.mrb[39].mxu1 }
 0x7f8   :  { %v4379_v32 = vmul.f32 -1.442695, %v2589_v11 }
 0x7fa   :  { %5581 = vpow2.f32 %v4379_v32 }
 0x7fb   :  { %5583 = vtanh.f32 %v2517_v29 }
 0x7fc   :  { %v5578_v33 = vpop.eup %5577 }
 0x7fd   :  { %v5580_v37 = vpop.eup %5579  ;;  %v2367_v19 = vadd.f32 1.0, %v5578_v33 }
 0x7fe   :  { %v2444_v41 = vadd.f32 1.0, %v5580_v37 }
 0x7ff   :  { %5585 = vrcp.f32 %v2367_v19 }
 0x800   :  { %5587 = vrcp.f32 %v2444_v41 }
 0x804   :  { %v5582_v31 = vpop.eup %5581 }
 0x805   :  { %v5584_v45 = vpop.eup %5583  ;;  %v2593_v62 = vadd.f32 1.0, %v5582_v31 }
 0x807   :  { %5589 = vrcp.f32 %v2593_v62 }
 0x809   :  { %v5586_v39 = vpop.eup %5585 }
 0x80a   :  { %v5588_v23 = vpop.eup %5587  ;;  %v2597_v24 = vmul.f32 %v5586_v39, %v5584_v45 }
 0x80b   :  { %v2596_v56 = vmul.f32 %v5588_v23, %v2287_v26  ;;  %v975_v26 = vadd.f32 %v6670_v52, %v6603_v35  ;;  %v980_v23 = vadd.f32 %v6599_v34, %v6670_v52 }
 0x80d   :  { %v2598_v55 = vadd.f32 %v2597_v24, %v2596_v56 }
 0x80f   :  { %5591 = vtanh.f32 %v2598_v55 }
 0x811   :  { %v5590_v12 = vpop.eup %5589 }
 0x819   :  { %v5592_v6 = vpop.eup %5591 }
 0x81a   :  { %v2600_v58 = vmul.f32 %v5592_v6, %v5590_v12 }
 0x81c   :  { %4973 = vmatmul.mubr.msk.f32.vlgmr.msra.gmra.mrb[36].mxu0 %vm863_vm2, %v2600_v58  ;;  %4984 = vmatmul.mubr.msk.f32.vlgmr.msra.gmra.mrb[40].mxu1 %vm863_vm2, %v2600_v58 }
 0x81d   :  { %5352 = vmatpush3.bf16.msra.mxu0 %v6554_v7  ;;  %5358 = vmatpush3.bf16.msra.mxu1 %v6646_v44 }
 0x81e   :  { %5353 = vmatprep.subr.bf16.mxu0 %v6153_v1  ;;  %5359 = vmatprep.subr.bf16.mxu1 %v6153_v1 }
 0x81f   :  { %4994 = vmatprep.mubr.msk.f32.mxu0 %vm6154_vm0, %v6155_v2  ;;  %5005 = vmatprep.mubr.msk.f32.mxu1 %vm6154_vm0, %v6155_v2 }
 0x821   :  { %5355 = vmatpush3.bf16.msra.mxu0 %v6560_v10  ;;  %5361 = vmatpush3.bf16.msra.mxu1 %v6652_v47 }
 0x822   :  { %5362 = vmatprep.subr.bf16.mxu0 %v6153_v1  ;;  %5368 = vmatprep.subr.bf16.mxu1 %v6153_v1 }
 0x824   :  { %4995 = vmatmul.mubr.msk.f32.vlgmr.msra.gmra.mrb[38].mxu0 %vm863_vm2, %v2600_v58  ;;  %5006 = vmatmul.mubr.msk.f32.vlgmr.msra.gmra.mrb[42].mxu1 %vm863_vm2, %v2600_v58 }
 0x825   :  { %5364 = vmatpush3.bf16.msra.mxu0 %v6539_v63  ;;  %5370 = vmatpush3.bf16.msra.mxu1 %v6618_v38 }
 0x826   :  { %5365 = vmatprep.subr.bf16.mxu0 %v6153_v1  ;;  %5371 = vmatprep.subr.bf16.mxu1 %v6153_v1 }
 0x827   :  { %5016 = vmatprep.mubr.msk.f32.mxu0 %vm6154_vm0, %v6155_v2  ;;  %5027 = vmatprep.mubr.msk.f32.mxu1 %vm6154_vm0, %v6155_v2 }
 0x829   :  { %5367 = vmatpush3.bf16.msra.mxu0 %v6545_v4  ;;  %5373 = vmatpush3.bf16.msra.mxu1 %v6627_v42 }
 0x82a   :  { %5374 = vmatprep.subr.bf16.mxu0 %v6153_v1  ;;  %5380 = vmatprep.subr.bf16.mxu1 %v6153_v1 }
 0x8ef   :  { %v2670_v15 = vpop.f32.mrb[36].mxu0  ;;  %v2747_v27 = vpop.f32.mrb[40].mxu1 }
 0x8f0   :  { %v2674_v21 = vadd.f32 %v2670_v15, %v975_v26  ;;  %v2751_v9 = vadd.f32 %v2747_v27, %v6698_v53  ;;  %v4974_v28 = vpop.f32.mrb[37].mxu0  ;;  %v4985_v30 = vpop.f32.mrb[41].mxu1 }
 0x8f2   :  { %v4381_v36 = vmul.f32 -1.442695, %v2674_v21  ;;  %v4383_v40 = vmul.f32 -1.442695, %v2751_v9 }
 0x8f4   :  { %5593 = vpow2.f32 %v4381_v36 }
 0x8f5   :  { %5595 = vpow2.f32 %v4383_v40 }
 0x8f7   :  { %v2824_v43 = vpop.f32.mrb[38].mxu0  ;;  %v2896_v46 = vpop.f32.mrb[42].mxu1 }
 0x8f8   :  { %v2828_v51 = vadd.f32 %v2824_v43, %v6682_v0  ;;  %v2900_v54 = vadd.f32 %v2896_v46, %v6712_v20  ;;  %v4996_v59 = vpop.f32.mrb[39].mxu0  ;;  %v5007_v3 = vpop.f32.mrb[43].mxu1 }
 0x8fa   :  { %v4386_v35 = vmul.f32 -1.442695, %v2900_v54 }
 0x8fc   :  { %5597 = vpow2.f32 %v4386_v35 }
 0x8fd   :  { %5599 = vtanh.f32 %v2828_v51 }
 0x8fe   :  { %v5594_v29 = vpop.eup %5593 }
 0x8ff   :  { %v5596_v11 = vpop.eup %5595  ;;  %v2678_v14 = vadd.f32 1.0, %v5594_v29 }
 0x900   :  { %v2755_v53 = vadd.f32 1.0, %v5596_v11 }
 0x901   :  { %5601 = vrcp.f32 %v2678_v14 }
 0x902   :  { %5603 = vrcp.f32 %v2755_v53 }
 0x906   :  { %v5598_v17 = vpop.eup %5597 }
 0x907   :  { %v5600_v32 = vpop.eup %5599  ;;  %v2904_v41 = vadd.f32 1.0, %v5598_v17 }
 0x909   :  { %5605 = vrcp.f32 %v2904_v41 }
 0x90b   :  { %v5602_v33 = vpop.eup %5601 }
 0x90c   :  { %v5604_v37 = vpop.eup %5603  ;;  %v2908_v19 = vmul.f32 %v5602_v33, %v5600_v32 }
 0x90d   :  { %v2907_v0 = vmul.f32 %v5604_v37, %v2598_v55 }
 0x90f   :  { %v2909_v31 = vadd.f32 %v2908_v19, %v2907_v0 }
 0x911   :  { %5607 = vtanh.f32 %v2909_v31 }
 0x913   :  { %v5606_v20 = vpop.eup %5605 }
 0x91b   :  { %v5608_v45 = vpop.eup %5607 }
 0x91c   :  { %v2911_v39 = vmul.f32 %v5608_v45, %v5606_v20 }
 0x91e   :  { %5017 = vmatmul.mubr.msk.f32.vlgmr.msra.gmra.mrb[40].mxu0 %vm863_vm2, %v2911_v39  ;;  %5028 = vmatmul.mubr.msk.f32.vlgmr.msra.gmra.mrb[44].mxu1 %vm863_vm2, %v2911_v39 }
 0x91f   :  { %5376 = vmatpush3.bf16.msra.mxu0 %v6554_v7  ;;  %5382 = vmatpush3.bf16.msra.mxu1 %v6646_v44 }
 0x920   :  { %5377 = vmatprep.subr.bf16.mxu0 %v6153_v1  ;;  %5383 = vmatprep.subr.bf16.mxu1 %v6153_v1 }
 0x921   :  { %5038 = vmatprep.mubr.msk.f32.mxu0 %vm6154_vm0, %v6155_v2  ;;  %5049 = vmatprep.mubr.msk.f32.mxu1 %vm6154_vm0, %v6155_v2 }
 0x923   :  { %5379 = vmatpush3.bf16.msra.mxu0 %v6560_v10  ;;  %5385 = vmatpush3.bf16.msra.mxu1 %v6652_v47 }
 0x924   :  { %5386 = vmatprep.subr.bf16.mxu0 %v6153_v1  ;;  %5392 = vmatprep.subr.bf16.mxu1 %v6153_v1 }
 0x926   :  { %5039 = vmatmul.mubr.msk.f32.vlgmr.msra.gmra.mrb[42].mxu0 %vm863_vm2, %v2911_v39  ;;  %5050 = vmatmul.mubr.msk.f32.vlgmr.msra.gmra.mrb[46].mxu1 %vm863_vm2, %v2911_v39 }
 0x927   :  { %5388 = vmatpush3.bf16.msra.mxu0 %v6539_v63  ;;  %5394 = vmatpush3.bf16.msra.mxu1 %v6618_v38 }
 0x928   :  { %5389 = vmatprep.subr.bf16.mxu0 %v6153_v1  ;;  %5395 = vmatprep.subr.bf16.mxu1 %v6153_v1 }
 0x929   :  { %5060 = vmatprep.mubr.msk.f32.mxu0 %vm6154_vm0, %v6155_v2  ;;  %5071 = vmatprep.mubr.msk.f32.mxu1 %vm6154_vm0, %v6155_v2 }
 0x92b   :  { %5391 = vmatpush3.bf16.msra.mxu0 %v6545_v4  ;;  %5397 = vmatpush3.bf16.msra.mxu1 %v6627_v42 }
 0x92c   :  { %5398 = vmatprep.subr.bf16.mxu0 %v6153_v1  ;;  %5404 = vmatprep.subr.bf16.mxu1 %v6153_v1 }
 0x9f1   :  { %v2981_v24 = vpop.f32.mrb[40].mxu0  ;;  %v3058_v62 = vpop.f32.mrb[44].mxu1 }
 0x9f2   :  { %v2985_v56 = vadd.f32 %v2981_v24, %v980_v23  ;;  %v3062_v55 = vadd.f32 %v3058_v62, %v6696_v50  ;;  %v5018_v12 = vpop.f32.mrb[41].mxu0  ;;  %v5029_v6 = vpop.f32.mrb[45].mxu1 }
 0x9f4   :  { %v4388_v58 = vmul.f32 -1.442695, %v2985_v56  ;;  %v4390_v26 = vmul.f32 -1.442695, %v3062_v55 }
 0x9f6   :  { %5609 = vpow2.f32 %v4388_v58 }
 0x9f7   :  { %5611 = vpow2.f32 %v4390_v26 }
 0x9f9   :  { %v3135_v15 = vpop.f32.mrb[42].mxu0  ;;  %v3207_v27 = vpop.f32.mrb[46].mxu1 }
 0x9fa   :  { %v3139_v21 = vadd.f32 %v3135_v15, %v6680_v61  ;;  %v3211_v9 = vadd.f32 %v3207_v27, %v6710_v18  ;;  %v5040_v28 = vpop.f32.mrb[43].mxu0  ;;  %v5051_v30 = vpop.f32.mrb[47].mxu1 }
 0x9fb   :  { %v990_v28 = vadd.f32 %v6666_v48, %v6670_v52 }
 0x9fc   :  { %v4393_v34 = vmul.f32 -1.442695, %v3211_v9  ;;  %v3848_v9 = vld [vmem:[%s7057_s14 + $0x18] sm:$0xff] }
 0x9fe   :  { %5613 = vpow2.f32 %v4393_v34 }
 0x9ff   :  { %5615 = vtanh.f32 %v3139_v21  ;;  %v3847_v21 = vld [vmem:[%s7057_s14 + $0x10] sm:$0xff] }
 0xa00   :  { %v5610_v36 = vpop.eup %5609 }
 0xa01   :  { %v5612_v40 = vpop.eup %5611  ;;  %v2989_v43 = vadd.f32 1.0, %v5610_v36 }
 0xa02   :  { %v3066_v50 = vadd.f32 1.0, %v5612_v40 }
 0xa03   :  { %5617 = vrcp.f32 %v2989_v43 }
 0xa04   :  { %5619 = vrcp.f32 %v3066_v50 }
 0xa08   :  { %v5614_v46 = vpop.eup %5613 }
 0xa09   :  { %v5616_v51 = vpop.eup %5615  ;;  %v3215_v35 = vadd.f32 1.0, %v5614_v46 }
 0xa0b   :  { %5621 = vrcp.f32 %v3215_v35 }
 0xa0d   :  { %v5618_v54 = vpop.eup %5617 }
 0xa0e   :  { %v5620_v59 = vpop.eup %5619  ;;  %v3219_v3 = vmul.f32 %v5618_v54, %v5616_v51 }
 0xa0f   :  { %v3218_v61 = vmul.f32 %v5620_v59, %v2909_v31 }
 0xa11   :  { %v3220_v29 = vadd.f32 %v3219_v3, %v3218_v61 }
 0xa13   :  { %5623 = vtanh.f32 %v3220_v29 }
 0xa15   :  { %v5622_v18 = vpop.eup %5621 }
 0xa1d   :  { %v5624_v11 = vpop.eup %5623 }
 0xa1e   :  { %v3222_v14 = vmul.f32 %v5624_v11, %v5622_v18 }
 0xa20   :  { %5061 = vmatmul.mubr.msk.f32.vlgmr.msra.gmra.mrb[44].mxu0 %vm863_vm2, %v3222_v14  ;;  %5072 = vmatmul.mubr.msk.f32.vlgmr.msra.gmra.mrb[48].mxu1 %vm863_vm2, %v3222_v14 }
 0xa21   :  { %5400 = vmatpush3.bf16.msra.mxu0 %v6554_v7  ;;  %5406 = vmatpush3.bf16.msra.mxu1 %v6646_v44 }
 0xa22   :  { %5401 = vmatprep.subr.bf16.mxu0 %v6153_v1  ;;  %5407 = vmatprep.subr.bf16.mxu1 %v6153_v1 }
 0xa23   :  { %5082 = vmatprep.mubr.msk.f32.mxu0 %vm6154_vm0, %v6155_v2  ;;  %5093 = vmatprep.mubr.msk.f32.mxu1 %vm6154_vm0, %v6155_v2 }
 0xa25   :  { %5403 = vmatpush3.bf16.msra.mxu0 %v6560_v10  ;;  %5409 = vmatpush3.bf16.msra.mxu1 %v6652_v47 }
 0xa26   :  { %5410 = vmatprep.subr.bf16.mxu0 %v6153_v1  ;;  %5416 = vmatprep.subr.bf16.mxu1 %v6153_v1 }
 0xa28   :  { %5083 = vmatmul.mubr.msk.f32.vlgmr.msra.gmra.mrb[46].mxu0 %vm863_vm2, %v3222_v14  ;;  %5094 = vmatmul.mubr.msk.f32.vlgmr.msra.gmra.mrb[50].mxu1 %vm863_vm2, %v3222_v14 }
 0xa29   :  { %5412 = vmatpush3.bf16.msra.mxu0 %v6539_v63  ;;  %5418 = vmatpush3.bf16.msra.mxu1 %v6618_v38  ;;  %v985_v63 = vadd.f32 %v6670_v52, %v6668_v49 }
 0xa2a   :  { %5413 = vmatprep.subr.bf16.mxu0 %v6153_v1  ;;  %5419 = vmatprep.subr.bf16.mxu1 %v6153_v1 }
 0xa2b   :  { %5104 = vmatprep.mubr.msk.f32.mxu0 %vm6154_vm0, %v6155_v2  ;;  %5115 = vmatprep.mubr.msk.f32.mxu1 %vm6154_vm0, %v6155_v2 }
 0xa2d   :  { %5415 = vmatpush3.bf16.msra.mxu0 %v6545_v4  ;;  %5421 = vmatpush3.bf16.msra.mxu1 %v6627_v42 }
 0xa2e   :  { %5422 = vmatprep.subr.bf16.mxu0 %v6153_v1  ;;  %5428 = vmatprep.subr.bf16.mxu1 %v6153_v1 }
 0xaf3   :  { %v3292_v38 = vpop.f32.mrb[44].mxu0  ;;  %v3369_v53 = vpop.f32.mrb[48].mxu1 }
 0xaf4   :  { %v3296_v17 = vadd.f32 %v3292_v38, %v985_v63  ;;  %v3373_v32 = vadd.f32 %v3369_v53, %v6702_v60  ;;  %v5062_v33 = vpop.f32.mrb[45].mxu0  ;;  %v5073_v37 = vpop.f32.mrb[49].mxu1 }
 0xaf6   :  { %v4395_v19 = vmul.f32 -1.442695, %v3296_v17  ;;  %v4397_v41 = vmul.f32 -1.442695, %v3373_v32 }
 0xaf8   :  { %5625 = vpow2.f32 %v4395_v19 }
 0xaf9   :  { %5627 = vpow2.f32 %v4397_v41  ;;  %v3942_v41 = vld [vmem:[%s7058_s26] sm:$0xff] }
 0xafb   :  { %v3446_v4 = vpop.f32.mrb[46].mxu0  ;;  %v3518_v42 = vpop.f32.mrb[50].mxu1 }
 0xafc   :  { %v3450_v0 = vadd.f32 %v3446_v4, %v6686_v8  ;;  %v3522_v31 = vadd.f32 %v3518_v42, %v6716_v25  ;;  %v5084_v20 = vpop.f32.mrb[47].mxu0  ;;  %v5095_v45 = vpop.f32.mrb[51].mxu1  ;;  %v3943_v4 = vld [vmem:[%s7058_s26 + $0x8] sm:$0xff]  ;;  %v3944_v42 = vld [vmem:[%s7058_s26 + $0x10] sm:$0xff] }
 0xafd   :  { %v3946_v45 = vld [vmem:[%s7058_s26 + $0x20] sm:$0xff] }
 0xafe   :  { %v4400_v49 = vmul.f32 -1.442695, %v3522_v31  ;;  %v3945_v31 = vld [vmem:[%s7058_s26 + $0x18] sm:$0xff] }
 0xaff   :  { %v5444_v20 = vpack.c.bf16 %v3945_v31, %v3944_v42 }
 0xb00   :  { %5629 = vpow2.f32 %v4400_v49  ;;  %v3947_v49 = vld [vmem:[%s7058_s26 + $0x28] sm:$0xff] }
 0xb01   :  { %5631 = vtanh.f32 %v3450_v0  ;;  %v5441_v0 = vpack.c.bf16 %v3943_v4, %v3942_v41 }
 0xb02   :  { %v5626_v39 = vpop.eup %5625 }
 0xb03   :  { %v5628_v23 = vpop.eup %5627  ;;  %v3300_v24 = vadd.f32 1.0, %v5626_v39  ;;  %v5447_v39 = vpack.c.bf16 %v3947_v49, %v3946_v45 }
 0xb04   :  { %v3377_v60 = vadd.f32 1.0, %v5628_v23  ;;  %v3948_v23 = vld [vmem:[%s7058_s26 + $0x30] sm:$0xff] }
 0xb05   :  { %5633 = vrcp.f32 %v3300_v24  ;;  %v3949_v24 = vld [vmem:[%s7058_s26 + $0x38] sm:$0xff] }
 0xb06   :  { %5635 = vrcp.f32 %v3377_v60  ;;  %v5450_v60 = vpack.c.bf16 %v3949_v24, %v3948_v23 }
 0xb0a   :  { %v5630_v62 = vpop.eup %5629 }
 0xb0b   :  { %v5632_v56 = vpop.eup %5631  ;;  %v3526_v58 = vadd.f32 1.0, %v5630_v62  ;;  %v4031_v62 = vld [vmem:[#allocation24] sm:$0xff] }
 0xb0d   :  { %5637 = vrcp.f32 %v3526_v58 }
 0xb0f   :  { %v5634_v55 = vpop.eup %5633 }
 0xb10   :  { %v5636_v12 = vpop.eup %5635  ;;  %v3530_v6 = vmul.f32 %v5634_v55, %v5632_v56  ;;  %v4032_v56 = vld [vmem:[#allocation24 + $0x8] sm:$0xff] }
 0xb11   :  { %v3529_v8 = vmul.f32 %v5636_v12, %v3220_v29  ;;  %v5453_v55 = vpack.c.bf16 %v4032_v56, %v4031_v62  ;;  %v4408_v12 = vld [vmem:[#allocation21] ss:$0 sm:$0xff] }
 0xb13   :  { %v6916_v26 = vadd.f32 %v3530_v6, %v3529_v8 }
 0xb15   :  { %5639 = vtanh.f32 %v6916_v26 }
 0xb17   :  { %v5638_v25 = vpop.eup %5637 }
 0xb1f   :  { %v5640_v15 = vpop.eup %5639 }
 0xb20   :  { %v3533_v27 = vmul.f32 %v5640_v15, %v5638_v25 }
 0xb22   :  { %5105 = vmatmul.mubr.msk.f32.vlgmr.msra.gmra.mrb[48].mxu0 %vm863_vm2, %v3533_v27  ;;  %5116 = vmatmul.mubr.msk.f32.vlgmr.msra.gmra.mrb[52].mxu1 %vm863_vm2, %v3533_v27 }
 0xb23   :  { %5424 = vmatpush3.bf16.msra.mxu0 %v6554_v7  ;;  %5430 = vmatpush3.bf16.msra.mxu1 %v6646_v44  ;;  %v3845_v7 = vld [vmem:[%s7057_s14] sm:$0xff]  ;;  %v3846_v44 = vld [vmem:[%s7057_s14 + $0x8] sm:$0xff] }
 0xb24   :  { %5425 = vmatprep.subr.bf16.mxu0 %v6153_v1  ;;  %5431 = vmatprep.subr.bf16.mxu1 %v6153_v1 }
 0xb25   :  { %5126 = vmatprep.mubr.msk.f32.mxu0 %vm6154_vm0, %v6155_v2  ;;  %5137 = vmatprep.mubr.msk.f32.mxu1 %vm6154_vm0, %v6155_v2 }
 0xb27   :  { %5427 = vmatpush3.bf16.msra.mxu0 %v6560_v10  ;;  %5433 = vmatpush3.bf16.msra.mxu1 %v6652_v47  ;;  %v5435_v10 = vpack.c.bf16 %v3846_v44, %v3845_v7  ;;  %v5438_v47 = vpack.c.bf16 %v3848_v9, %v3847_v21  ;;  %v4033_v7 = vld [vmem:[#allocation24 + $0x10] sm:$0xff]  ;;  %v4034_v44 = vld [vmem:[#allocation24 + $0x18] sm:$0xff] }
 0xb28   :  { %5434 = vmatprep.subr.bf16.mxu0 %v6153_v1  ;;  %5440 = vmatprep.subr.bf16.mxu1 %v6153_v1  ;;  %v5456_v21 = vpack.c.bf16 %v4034_v44, %v4033_v7  ;;  %v4116_v9 = vld [vmem:[%s7059_s4] sm:$0xff] }
 0xb2a   :  { %5127 = vmatmul.mubr.msk.f32.vlgmr.msra.gmra.mrb[50].mxu0 %vm863_vm2, %v3533_v27  ;;  %5138 = vmatmul.mubr.msk.f32.vlgmr.msra.gmra.mrb[54].mxu1 %vm863_vm2, %v3533_v27 }
 0xb2b   :  { %5148 = vmatprep.mubr.msk.f32.mxu0 %vm6154_vm0, %v6155_v2  ;;  %5167 = vmatprep.mubr.msk.f32.mxu1 %vm6154_vm0, %v6155_v2 }
 0xb2c   :  { %5436 = vmatpush3.bf16.msra.mxu0 %v5435_v10  ;;  %5442 = vmatpush3.bf16.msra.mxu1 %v5441_v0  ;;  %v4410_v10 = vld [vmem:[#allocation23] ss:$0 sm:$0xff] }
 0xb2d   :  { %5437 = vmatprep.subr.bf16.mxu0 %v6153_v1  ;;  %5443 = vmatprep.subr.bf16.mxu1 %v6153_v1 }
 0xb30   :  { %5439 = vmatpush3.bf16.msra.mxu0 %v5438_v47  ;;  %5445 = vmatpush3.bf16.msra.mxu1 %v5444_v20  ;;  %v4117_v47 = vld [vmem:[%s7059_s4 + $0x8] sm:$0xff] }
 0xb31   :  { %5452 = vmatprep.subr.bf16.mxu0 %v6153_v1  ;;  %5446 = vmatprep.subr.bf16.mxu1 %v6153_v1 }
 0xb34   :  { %5448 = vmatpush3.bf16.msra.mxu1 %v5447_v39 }
 0xb35   :  { %5449 = vmatprep.subr.bf16.mxu1 %v6153_v1 }
 0xb38   :  { %5451 = vmatpush3.bf16.msra.mxu1 %v5450_v60 }
 0xbf5   :  { %v3603_v30 = vpop.f32.mrb[48].mxu0  ;;  %v3680_v34 = vpop.f32.mrb[52].mxu1 }
 0xbf6   :  { %v3607_v36 = vadd.f32 %v3603_v30, %v990_v28  ;;  %v3684_v40 = vadd.f32 %v3680_v34, %v6700_v57  ;;  %v5106_v43 = vpop.f32.mrb[49].mxu0  ;;  %v5117_v50 = vpop.f32.mrb[53].mxu1 }
 0xbf7   :  { %v4412_v50 = vld [vmem:[#allocation26] ss:$0 sm:$0xff] }
 0xbf8   :  { %v4402_v46 = vmul.f32 -1.442695, %v3607_v36  ;;  %v4404_v51 = vmul.f32 -1.442695, %v3684_v40  ;;  %v4118_v36 = vld [vmem:[%s7059_s4 + $0x10] sm:$0xff]  ;;  %v4119_v40 = vld [vmem:[%s7059_s4 + $0x18] sm:$0xff] }
 0xbf9   :  { %v5462_v43 = vpack.c.bf16 %v4119_v40, %v4118_v36 }
 0xbfa   :  { %5641 = vpow2.f32 %v4402_v46 }
 0xbfb   :  { %5643 = vpow2.f32 %v4404_v51 }
 0xbfd   :  { %v3757_v54 = vpop.f32.mrb[50].mxu0  ;;  %v3829_v59 = vpop.f32.mrb[54].mxu1 }
 0xbfe   :  { %v3761_v3 = vadd.f32 %v3757_v54, %v6684_v5  ;;  %v3833_v35 = vadd.f32 %v3829_v59, %v6714_v22  ;;  %v5128_v61 = vpop.f32.mrb[51].mxu0  ;;  %v5139_v29 = vpop.f32.mrb[55].mxu1 }
 0xc00   :  { %v4407_v48 = vmul.f32 -1.442695, %v3833_v35 }
 0xc02   :  { %5645 = vpow2.f32 %v4407_v48 }
 0xc03   :  { %5647 = vtanh.f32 %v3761_v3 }
 0xc04   :  { %v5642_v52 = vpop.eup %5641 }
 0xc05   :  { %v5644_v18 = vpop.eup %5643  ;;  %v3611_v11 = vadd.f32 1.0, %v5642_v52 }
 0xc06   :  { %v3688_v57 = vadd.f32 1.0, %v5644_v18 }
 0xc07   :  { %5649 = vrcp.f32 %v3611_v11 }
 0xc08   :  { %5651 = vrcp.f32 %v3688_v57 }
 0xc0c   :  { %v5646_v14 = vpop.eup %5645 }
 0xc0d   :  { %v5648_v63 = vpop.eup %5647  ;;  %v3837_v53 = vadd.f32 1.0, %v5646_v14 }
 0xc0f   :  { %5653 = vrcp.f32 %v3837_v53 }
 0xc11   :  { %v5650_v38 = vpop.eup %5649 }
 0xc12   :  { %v5652_v5 = vpop.eup %5651  ;;  %v3841_v22 = vmul.f32 %v5650_v38, %v5648_v63 }
 0xc13   :  { %v3840_v17 = vmul.f32 %v5652_v5, %v6916_v26  ;;  %v3932_v26 = vpop.permute.xlu0 %3931 }
 0xc14   :  { %v3938_v25 = vsel %vm351_vm1, %v591_v16, %v3932_v26  ;;  %v5459_v16 = vpack.c.bf16 %v4117_v47, %v4116_v9 }
 0xc15   :  { %v3842_v32 = vadd.f32 %v3841_v22, %v3840_v17 }
 0xc17   :  { %5655 = vtanh.f32 %v3842_v32 }
 0xc19   :  { %v5654_v33 = vpop.eup %5653 }
 0xc21   :  { %v5656_v37 = vpop.eup %5655 }
 0xc22   :  { %v3844_v19 = vmul.f32 %v5656_v37, %v5654_v33 }
 0xc24   :  { %5149 = vmatmul.mubr.msk.f32.vlgmr.msra.gmra.mrb[52].mxu0 %vm863_vm2, %v3844_v19 }
 0xc25   :  { %5178 = vmatprep.mubr.msk.f32.mxu0 %vm6154_vm0, %v6155_v2  ;;  %5454 = vmatpush3.bf16.msra.mxu0 %v5453_v55 }
 0xc26   :  { %5455 = vmatprep.subr.bf16.mxu0 %v6153_v1 }
 0xc29   :  { %5457 = vmatpush3.bf16.msra.mxu0 %v5456_v21 }
 0xc2a   :  { %5458 = vmatprep.subr.bf16.mxu0 %v6153_v1 }
 0xcf7   :  { %v3925_v6 = vpop.f32.mrb[52].mxu0 }
 0xcf8   :  { %v3926_v58 = vadd.f32 %v4408_v12, %v3925_v6  ;;  %v5150_v8 = vpop.f32.mrb[53].mxu0 }
 0xcfa   :  { %3929 = vst.msk [vmem:[#allocation30] sm:$0xff] %vm863_vm2, %v3926_v58  ;;  %3935 = vrot.lane.b32.xlu0 %v3926_v58, %s6157_s3 }
 0xd6c   :  { %v3936_v15 = vpop.permute.xlu0 %3935 }
 0xd6d   :  { %v3939_v27 = vsel %vm863_vm2, %v3938_v25, %v3936_v15 }
 0xd6e   :  { %5168 = vmatmul.mubr.msk.f32.vlgmr.msra.gmra.mrb[56].mxu1 %vm3940_vm3, %v3939_v27  ;;  %3941 = vst.msk [vmem:[#allocation31] sm:$0xff] %vm3940_vm3, %v3939_v27 }
 0xe41   :  { %v4026_v28 = vpop.f32.mrb[56].mxu1 }
 0xe42   :  { %v4027_v13 = vadd.f32 %v4410_v10, %v4026_v28  ;;  %v5169_v30 = vpop.f32.mrb[57].mxu1 }
 0xe44   :  { %v4030_v34 = vmax.f32 %v4027_v13, 0.0 }
 0xe46   :  { %5179 = vmatmul.mubr.msk.f32.vlgmr.msra.gmra.mrb[54].mxu0 %vm863_vm2, %v4030_v34 }
 0xe47   :  { %5460 = vmatpush3.bf16.msra.mxu0 %v5459_v16  ;;  %5189 = vmatprep.mubr.msk.f32.mxu0 %vm6154_vm0, %v6155_v2 }
 0xe48   :  { %5461 = vmatprep.subr.bf16.mxu0 %v6153_v1 }
 0xe4b   :  { %5463 = vmatpush3.bf16.msra.mxu0 %v5462_v43 }
 0xf19   :  { %v4111_v46 = vpop.f32.mrb[54].mxu0 }
 0xf1a   :  { %v4112_v51 = vadd.f32 %v4412_v50, %v4111_v46  ;;  %v5180_v54 = vpop.f32.mrb[55].mxu0 }
 0xf1c   :  { %v4115_v59 = vmax.f32 %v4112_v51, 0.0 }
 0xf1e   :  { %5190 = vmatmul.mubr.msk.f32.vlgmr.msra.gmra.mrb[56].mxu0 %vm863_vm2, %v4115_v59 }
 0xf1f   :  { %5998 = shalt.err (!%p5995_p12)
}
 0xf20   :  { %s5999_s2 = scalar_lea.hbm %s6348_s24, 128 }
 0xf21   :  { %p6000_p13 = scmp.ne.s32.totalorder %s6348_s24, %s5999_s2  ;;  %p6003_p0 = scmp.lt.u32.totalorder %s5999_s2, %s6348_s24 }
 0xf23   :  { %p6005_p1 = pnand %p6003_p0, %p6000_p13 }
 0xf25   :  { %6008 = shalt.err (!%p6005_p1)
}
 0xf26   :  { %4221 = dma.vmem_to_hbm [thread:$0]  %s4219_s1, 128, %s6348_s24, [#allocation29]  }
 0xf27   :  { %s6009_s10 = scalar_lea.vmem %s4209_s28, 128  ;;  %p6014_p3 = scmp.lt.s32.totalorder %s4209_s28, %s4209_s28 }
 0xf28   :  { %p6010_p2 = scmp.ne.s32.totalorder %s4209_s28, %s6009_s10  ;;  %p6015_p4 = scmp.lt.s32.totalorder %s6009_s10, %s6009_s10 }
 0xf2a   :  { %p6016_p5 = por %p6015_p4, %p6014_p3 }
 0xf2c   :  { %p6017_p6 = pnand %p6016_p5, %p6010_p2 }
 0xf2e   :  { %6020 = shalt.err (!%p6017_p6)
}
 0xf2f   :  { %s7060_s7 = sld [smem:[#allocation65_spill]] }
 0xf35   :  { %s6021_s17 = scalar_lea.hbm %s7060_s7, 128 }
 0xf36   :  { %p6022_p7 = scmp.ne.s32.totalorder %s7060_s7, %s6021_s17  ;;  %p6025_p8 = scmp.lt.u32.totalorder %s6021_s17, %s7060_s7 }
 0xf38   :  { %p6027_p9 = pnand %p6025_p8, %p6022_p7 }
 0xf3a   :  { %6030 = shalt.err (!%p6027_p9)
}
 0xf3b   :  { %4211 = dma.vmem_to_hbm [thread:$0]  %s4209_s28, 128, %s7060_s7, [#allocation5]  }
 0xf3c   :  { %s6160_s11 = smov [#allocation30]   ;;  %s6161_s9 = smov [#allocation31]  }
 0xf3d   :  { %s4228_s24 = sshll.u32 %s6160_s11, 4  ;;  %s4238_s29 = sshll.u32 %s6161_s9, 4  ;;  %s4229_s24 = int_to_ptr.vmem [resolvable:$true] %s4228_s24  ;;  %s4239_s29 = int_to_ptr.vmem [resolvable:$true] %s4238_s29 }
 0xf3e   :  { %s6031_s16 = scalar_lea.vmem %s4229_s24, 128  ;;  %p6036_p11 = scmp.lt.s32.totalorder %s4229_s24, %s4229_s24 }
 0xf3f   :  { %p6032_p10 = scmp.ne.s32.totalorder %s4229_s24, %s6031_s16  ;;  %p6037_p12 = scmp.lt.s32.totalorder %s6031_s16, %s6031_s16 }
 0xf41   :  { %p6038_p13 = por %p6037_p12, %p6036_p11 }
 0xf43   :  { %p6039_p0 = pnand %p6038_p13, %p6032_p10 }
 0xf45   :  { %6042 = shalt.err (!%p6039_p0)
}
 0xf46   :  { %s6043_s15 = scalar_lea.hbm %s6353_s19, 128 }
 0xf47   :  { %p6044_p1 = scmp.ne.s32.totalorder %s6353_s19, %s6043_s15  ;;  %p6047_p2 = scmp.lt.u32.totalorder %s6043_s15, %s6353_s19 }
 0xf49   :  { %p6049_p3 = pnand %p6047_p2, %p6044_p1 }
 0xf4b   :  { %6052 = shalt.err (!%p6049_p3)
}
 0xf4c   :  { %4231 = dma.vmem_to_hbm [thread:$0]  %s4229_s24, 128, %s6353_s19, [#allocation29]  }
 0xf4d   :  { %s6053_s25 = scalar_lea.vmem %s4239_s29, 128  ;;  %p6058_p5 = scmp.lt.s32.totalorder %s4239_s29, %s4239_s29 }
 0xf4e   :  { %p6054_p4 = scmp.ne.s32.totalorder %s4239_s29, %s6053_s25  ;;  %p6059_p6 = scmp.lt.s32.totalorder %s6053_s25, %s6053_s25 }
 0xf50   :  { %p6060_p7 = por %p6059_p6, %p6058_p5 }
 0xf52   :  { %p6061_p8 = pnand %p6060_p7, %p6054_p4 }
 0xf54   :  { %6064 = shalt.err (!%p6061_p8)
}
 0xf55   :  { %s6065_s6 = scalar_lea.hbm %s6358_s20, 128 }
 0xf56   :  { %p6066_p9 = scmp.ne.s32.totalorder %s6358_s20, %s6065_s6  ;;  %p6069_p10 = scmp.lt.u32.totalorder %s6065_s6, %s6358_s20 }
 0xf58   :  { %p6071_p11 = pnand %p6069_p10, %p6066_p9 }
 0xf5a   :  { %6074 = shalt.err (!%p6071_p11)
}
 0xf5b   :  { %4241 = dma.vmem_to_hbm [thread:$0]  %s4239_s29, 128, %s6358_s20, [#allocation32]   ;;  %v4414_v1 = vld [vmem:[#allocation2] ss:$0 sm:$0xff]  ;;  %vm4200_vm4 = vcmask 7168  }
 0xff1   :  { %v4196_v2 = vpop.f32.mrb[56].mxu0 }
 0xff2   :  { %v4197_v3 = vadd.f32 %v4414_v1, %v4196_v2  ;;  %v5191_v35 = vpop.f32.mrb[57].mxu0 }
 0xff4   :  { %4201 = vst.msk [vmem:[%s6363_s21] sm:$0xff] %vm4200_vm4, %v4197_v3 }
 0xff5   :  { %6091 = dma.done.wait [#allocation5], 128  }
 0xff6   :  { %6092 = vsyncadd [#allocation5], 4294967168 }
 0xff7   :  { %6093 = dma.done.wait [#allocation29], 256  }
 0xff8   :  { %6094 = vsyncadd [#allocation29], 4294967040 }
 0xff9   :  { %6095 = dma.done.wait [#allocation32], 128  }
 0xffa   :  { %6096 = vsyncadd [#allocation32], 4294967168 }
 0xffb   :  { %4258 = vsyncpa [#allocation4], 1 }
 0xffc   :  { %4259 = vsyncpa [#allocation7], 1 }
 0xffd   :  { %4260 = vsyncpa [#allocation10], 1 }
 0xffe   :  { %4261 = vsyncpa [#allocation13], 1 }
 0xfff   :  { %4262 = vsyncpa [#allocation16], 1 }
0x1000   :  { %4263 = vsyncpa [#allocation19], 1 }
0x1001   :  { %4264 = vsyncpa [#allocation22], 1 }
0x1002   :  { %4265 = vsyncpa [#allocation25], 1 }
0x1003   :  { %4266 = vsyncpa [#allocation5], 1 }
0x1004   :  { %4267 = vsyncpa [#allocation29], 1 }
0x1005   :  { %4268 = vsyncpa [#allocation32], 1 }

</bundles_post_ra>
